<compile_context>
chip_gen: v5e
topology: v5e:2x2
jax: 0.10.0
libtpu: 0.0.40
codegen_flags: <defaults>
</compile_context>

<pallas_src>
import functools

import jax
import jax.numpy as jnp
from jax import lax
from jax.experimental import pallas as pl
from jax.experimental.pallas import tpu as pltpu


# ----------------------------------------------------------------------------
# Fused Bottleneck kernel: one batch element per grid step, NHWC layout
# (channels on the lane axis), everything resident in VMEM.
# ----------------------------------------------------------------------------
def _bottleneck_kernel(x_ref, w1_ref, s1_ref, t1_ref,
                       w2_ref, s2_ref, t2_ref,
                       w3_ref, s3_ref, t3_ref,
                       *rest,
                       H, W, Cin, P, Cp, stride, has_conv_shortcut):
    if has_conv_shortcut:
        wsc_ref, ssc_ref, tsc_ref, o_ref, pad_ref = rest
    else:
        o_ref, pad_ref = rest

    Ho = (H - 1) // stride + 1
    Wo = (W - 1) // stride + 1

    x = x_ref[0]                                     # (H, W, Cin) f32
    x2d = x.reshape(H * W, Cin)

    # --- conv1 (1x1) + bn1 + relu -------------------------------------------
    h = jnp.dot(x2d.astype(jnp.bfloat16), w1_ref[...],
                preferred_element_type=jnp.float32)            # (H*W, P)
    h = jnp.maximum(h * s1_ref[...] + t1_ref[...], 0.0)

    # --- conv2 (3x3, pad=1, stride) as a single im2col matmul ---------------
    pad_ref[...] = jnp.zeros_like(pad_ref)           # keep borders zero
    pad_ref[1:H + 1, 1:W + 1, :] = h.reshape(H, W, P)
    xp = pad_ref[...]                                # (H+2, W+2, P) f32

    taps = []
    for dh in range(3):
        for dw in range(3):
            t = xp[dh:dh + (Ho - 1) * stride + 1:stride,
                   dw:dw + (Wo - 1) * stride + 1:stride, :]
            taps.append(t.reshape(Ho * Wo, P).astype(jnp.bfloat16))
    patches = jnp.concatenate(taps, axis=-1)         # (Ho*Wo, 9P) bf16
    h = jnp.dot(patches, w2_ref[...],
                preferred_element_type=jnp.float32)            # (Ho*Wo, P)
    h = jnp.maximum(h * s2_ref[...] + t2_ref[...], 0.0)

    # --- conv3 (1x1, output channels padded to Cp lanes) + bn3 ---------------
    out = jnp.dot(h.astype(jnp.bfloat16), w3_ref[...],
                  preferred_element_type=jnp.float32)          # (Ho*Wo, Cp)
    out = out * s3_ref[...] + t3_ref[...]

    # --- shortcut -------------------------------------------------------------
    if has_conv_shortcut:
        xs = x[::stride, ::stride, :].reshape(Ho * Wo, Cin)
        sc = jnp.dot(xs.astype(jnp.bfloat16), wsc_ref[...],
                     preferred_element_type=jnp.float32)       # (Ho*Wo, Cp)
        sc = sc * ssc_ref[...] + tsc_ref[...]
    else:
        sc = x2d                                     # Cin == 4P, stride == 1
        if Cp > Cin:
            sc = jnp.concatenate(
                [sc, jnp.zeros((Ho * Wo, Cp - Cin), jnp.float32)], axis=-1)

    o_ref[0] = jnp.maximum(out + sc, 0.0).astype(o_ref.dtype)  # lane-dense store


# ----------------------------------------------------------------------------
# Wrapper: NCHW in / NCHW out, BN folded to scale/shift, weights in bf16.
# ----------------------------------------------------------------------------
def bottleneck_forward(x_nchw, params, *, stride=1, eps=1e-5):
    B, Cin, H, W = x_nchw.shape
    P = params["w1"].shape[-1]
    C4 = 4 * P
    Cp = ((C4 + 127) // 128) * 128                  # lane-pad output channels
    n_pad = Cp - C4
    Ho = (H - 1) // stride + 1
    Wo = (W - 1) // stride + 1
    has_conv_shortcut = (stride != 1) or (Cin != C4)

    x_nhwc = jnp.transpose(x_nchw, (0, 2, 3, 1)).astype(jnp.float32)

    def fold_bn(prefix, pad=0):
        g = params[prefix + "_gamma"]
        b = params[prefix + "_beta"]
        m = params[prefix + "_mean"]
        v = params[prefix + "_var"]
        s = g * lax.rsqrt(v + eps)
        t = b - m * s
        if pad:
            s = jnp.pad(s, (0, pad))
            t = jnp.pad(t, (0, pad))
        return (s.reshape(1, -1).astype(jnp.float32),
                t.reshape(1, -1).astype(jnp.float32))

    def pad_cols(w, pad):
        return jnp.pad(w, ((0, 0), (0, pad))) if pad else w

    w1 = params["w1"].reshape(Cin, P).astype(jnp.bfloat16)
    w2 = params["w2"].reshape(9 * P, P).astype(jnp.bfloat16)   # (kh,kw,cin) rows
    w3 = pad_cols(params["w3"].reshape(P, C4), n_pad).astype(jnp.bfloat16)
    s1, t1 = fold_bn("bn1")
    s2, t2 = fold_bn("bn2")
    s3, t3 = fold_bn("bn3", n_pad)

    inputs = [x_nhwc, w1, s1, t1, w2, s2, t2, w3, s3, t3]
    in_specs = [
        pl.BlockSpec((1, H, W, Cin), lambda b: (b, 0, 0, 0)),
        pl.BlockSpec(w1.shape, lambda b: (0, 0)),
        pl.BlockSpec(s1.shape, lambda b: (0, 0)),
        pl.BlockSpec(t1.shape, lambda b: (0, 0)),
        pl.BlockSpec(w2.shape, lambda b: (0, 0)),
        pl.BlockSpec(s2.shape, lambda b: (0, 0)),
        pl.BlockSpec(t2.shape, lambda b: (0, 0)),
        pl.BlockSpec(w3.shape, lambda b: (0, 0)),
        pl.BlockSpec(s3.shape, lambda b: (0, 0)),
        pl.BlockSpec(t3.shape, lambda b: (0, 0)),
    ]
    if has_conv_shortcut:
        w_sc = pad_cols(params["w_sc"].reshape(Cin, C4),
                        n_pad).astype(jnp.bfloat16)
        s_sc, t_sc = fold_bn("bn_sc", n_pad)
        inputs += [w_sc, s_sc, t_sc]
        in_specs += [
            pl.BlockSpec(w_sc.shape, lambda b: (0, 0)),
            pl.BlockSpec(s_sc.shape, lambda b: (0, 0)),
            pl.BlockSpec(t_sc.shape, lambda b: (0, 0)),
        ]

    flops = 2 * B * (H * W * Cin * P
                     + Ho * Wo * 9 * P * P
                     + Ho * Wo * P * C4
                     + (Ho * Wo * Cin * C4 if has_conv_shortcut else 0))
    bytes_accessed = int(x_nhwc.size * 4
                         + sum(int(a.size) * a.dtype.itemsize for a in inputs[1:])
                         + B * Ho * Wo * Cp * 4)

    kernel = functools.partial(
        _bottleneck_kernel, H=H, W=W, Cin=Cin, P=P, Cp=Cp,
        stride=stride, has_conv_shortcut=has_conv_shortcut)

    out = pl.pallas_call(
        kernel,
        out_shape=jax.ShapeDtypeStruct((B, Ho * Wo, Cp), jnp.float32),
        grid_spec=pltpu.PrefetchScalarGridSpec(
            num_scalar_prefetch=0,
            grid=(B,),
            in_specs=in_specs,
            out_specs=pl.BlockSpec((1, Ho * Wo, Cp), lambda b: (b, 0, 0)),
            scratch_shapes=[pltpu.VMEM((H + 2, W + 2, P), jnp.float32)],
        ),
        compiler_params=pltpu.CompilerParams(
            dimension_semantics=("parallel",),
        ),
        cost_estimate=pl.CostEstimate(
            flops=flops, transcendentals=0, bytes_accessed=bytes_accessed),
    )(*inputs)

    out = out[:, :, :C4].reshape(B, Ho, Wo, C4)      # strip lane pad, un-flatten
    return jnp.transpose(out, (0, 3, 1, 2))          # NHWC -> NCHW


# ----------------------------------------------------------------------------
# Deterministic parameter init (conv weights in HWIO, BN as eval-mode stats).
# ----------------------------------------------------------------------------
def init_params(key, in_planes, planes):
    C4 = 4 * planes
    ks = jax.random.split(key, 8)
    params = {}

    def conv_w(k, kh, kw, cin, cout):
        bound = 1.0 / jnp.sqrt(jnp.float32(cin * kh * kw))
        return jax.random.uniform(k, (kh, kw, cin, cout), jnp.float32,
                                  -bound, bound)

    def bn_p(k, c, prefix):
        k1, k2, k3, k4 = jax.random.split(k, 4)
        params[prefix + "_gamma"] = jax.random.uniform(k1, (c,), jnp.float32,
                                                       0.5, 1.5)
        params[prefix + "_beta"] = 0.1 * jax.random.normal(k2, (c,), jnp.float32)
        params[prefix + "_mean"] = 0.1 * jax.random.normal(k3, (c,), jnp.float32)
        params[prefix + "_var"] = jax.random.uniform(k4, (c,), jnp.float32,
                                                     0.5, 1.5)

    params["w1"] = conv_w(ks[0], 1, 1, in_planes, planes)
    bn_p(ks[1], planes, "bn1")
    params["w2"] = conv_w(ks[2], 3, 3, planes, planes)
    bn_p(ks[3], planes, "bn2")
    params["w3"] = conv_w(ks[4], 1, 1, planes, C4)
    bn_p(ks[5], C4, "bn3")
    params["w_sc"] = conv_w(ks[6], 1, 1, in_planes, C4)
    bn_p(ks[7], C4, "bn_sc")
    return params


# ----------------------------------------------------------------------------
# Pure-JAX reference (eval-mode BN, bf16 conv inputs / f32 accumulation to
# mirror the kernel's MXU numerics).
# ----------------------------------------------------------------------------
def reference_forward(x_nchw, params, *, stride=1, eps=1e-5):
    Cin = x_nchw.shape[1]
    P = params["w1"].shape[-1]
    C4 = 4 * P
    has_conv_shortcut = (stride != 1) or (Cin != C4)

    def bn(y, prefix):
        g = params[prefix + "_gamma"]
        b = params[prefix + "_beta"]
        m = params[prefix + "_mean"]
        v = params[prefix + "_var"]
        return (y - m) * (g * lax.rsqrt(v + eps)) + b

    def conv(y, w, s, pad):
        return lax.conv_general_dilated(
            y.astype(jnp.bfloat16), w.astype(jnp.bfloat16),
            window_strides=(s, s), padding=pad,
            dimension_numbers=("NHWC", "HWIO", "NHWC"),
            preferred_element_type=jnp.float32)

    x = jnp.transpose(x_nchw, (0, 2, 3, 1)).astype(jnp.float32)
    out = jnp.maximum(bn(conv(x, params["w1"], 1, "VALID"), "bn1"), 0.0)
    out = jnp.maximum(
        bn(conv(out, params["w2"], stride, [(1, 1), (1, 1)]), "bn2"), 0.0)
    out = bn(conv(out, params["w3"], 1, "VALID"), "bn3")
    if has_conv_shortcut:
        sc = bn(conv(x, params["w_sc"], stride, "VALID"), "bn_sc")
    else:
        sc = x
    out = jnp.maximum(out + sc, 0.0)
    return jnp.transpose(out, (0, 3, 1, 2))


if __name__ == "__main__":
    key = jax.random.PRNGKey(0)
    k_params, k_x = jax.random.split(key)

    in_planes, planes, stride = 4, 4, 1          # 4*planes=16 != in_planes -> conv shortcut
    params = init_params(k_params, in_planes, planes)
    x = jax.random.normal(k_x, (2, in_planes, 16, 16), jnp.float32)

    out = jax.block_until_ready(bottleneck_forward(x, params, stride=stride))
    ref = jax.block_until_ready(reference_forward(x, params, stride=stride))

    assert out.shape == (2, 4 * planes, 16, 16), out.shape
    max_err = float(jnp.max(jnp.abs(out - ref)))
    assert jnp.allclose(out, ref, rtol=1e-2, atol=1e-2), max_err
    print("KERNEL_OK")
</pallas_src>

<mosaic_0001>
module attributes {stable_mosaic.version = 11 : i64} {
  func.func @_bottleneck_kernel(%arg0: i32, %arg1: memref<1x16x16x4xf32, #tpu.memory_space<vmem>>, %arg2: memref<4x4xbf16, #tpu.memory_space<vmem>>, %arg3: memref<1x4xf32, #tpu.memory_space<vmem>>, %arg4: memref<1x4xf32, #tpu.memory_space<vmem>>, %arg5: memref<36x4xbf16, #tpu.memory_space<vmem>>, %arg6: memref<1x4xf32, #tpu.memory_space<vmem>>, %arg7: memref<1x4xf32, #tpu.memory_space<vmem>>, %arg8: memref<4x128xbf16, #tpu.memory_space<vmem>>, %arg9: memref<1x128xf32, #tpu.memory_space<vmem>>, %arg10: memref<1x128xf32, #tpu.memory_space<vmem>>, %arg11: memref<4x128xbf16, #tpu.memory_space<vmem>>, %arg12: memref<1x128xf32, #tpu.memory_space<vmem>>, %arg13: memref<1x128xf32, #tpu.memory_space<vmem>>, %arg14: memref<1x256x128xf32, #tpu.memory_space<vmem>>, %arg15: memref<18x18x4xf32, #tpu.memory_space<vmem>>) attributes {dimension_semantics = [#tpu.dimension_semantics<parallel>], iteration_bounds = array<i64: 2>, scalar_prefetch = 0 : i64, scratch_operands = 1 : i64, tpu.core_type = #tpu.core_type<tc>, window_params = [{transform_indices = @transform_0, window_bounds = array<i64: 1, 16, 16, 4>}, {pipeline_mode = #tpu.pipeline_mode<synchronous>, transform_indices = @transform_1, window_bounds = array<i64: 4, 4>}, {pipeline_mode = #tpu.pipeline_mode<synchronous>, transform_indices = @transform_2, window_bounds = array<i64: 1, 4>}, {pipeline_mode = #tpu.pipeline_mode<synchronous>, transform_indices = @transform_3, window_bounds = array<i64: 1, 4>}, {pipeline_mode = #tpu.pipeline_mode<synchronous>, transform_indices = @transform_4, window_bounds = array<i64: 36, 4>}, {pipeline_mode = #tpu.pipeline_mode<synchronous>, transform_indices = @transform_5, window_bounds = array<i64: 1, 4>}, {pipeline_mode = #tpu.pipeline_mode<synchronous>, transform_indices = @transform_6, window_bounds = array<i64: 1, 4>}, {pipeline_mode = #tpu.pipeline_mode<synchronous>, transform_indices = @transform_7, window_bounds = array<i64: 4, 128>}, {pipeline_mode = #tpu.pipeline_mode<synchronous>, transform_indices = @transform_8, window_bounds = array<i64: 1, 128>}, {pipeline_mode = #tpu.pipeline_mode<synchronous>, transform_indices = @transform_9, window_bounds = array<i64: 1, 128>}, {pipeline_mode = #tpu.pipeline_mode<synchronous>, transform_indices = @transform_10, window_bounds = array<i64: 4, 128>}, {pipeline_mode = #tpu.pipeline_mode<synchronous>, transform_indices = @transform_11, window_bounds = array<i64: 1, 128>}, {pipeline_mode = #tpu.pipeline_mode<synchronous>, transform_indices = @transform_12, window_bounds = array<i64: 1, 128>}, {transform_indices = @transform_13, window_bounds = array<i64: 1, 256, 128>}]} {
    %c0 = arith.constant 0 : index
    %c0_0 = arith.constant 0 : index
    %c0_1 = arith.constant 0 : index
    %c0_2 = arith.constant 0 : index
    %0 = vector.load %arg1[%c0, %c0_0, %c0_1, %c0_2] : memref<1x16x16x4xf32, #tpu.memory_space<vmem>>, vector<1x16x16x4xf32>
    %1 = vector.shape_cast %0 : vector<1x16x16x4xf32> to vector<16x16x4xf32>
    %2 = vector.shape_cast %1 : vector<16x16x4xf32> to vector<256x4xf32>
    %3 = arith.truncf %2 : vector<256x4xf32> to vector<256x4xbf16>
    %c0_3 = arith.constant 0 : index
    %c0_4 = arith.constant 0 : index
    %4 = vector.load %arg2[%c0_3, %c0_4] : memref<4x4xbf16, #tpu.memory_space<vmem>>, vector<4x4xbf16>
    %cst = arith.constant dense<0.000000e+00> : vector<256x4xf32>
    %5 = tpu.matmul %3, %4, %cst {dimension_numbers = #tpu.dot_dimension_numbers<[1], [0], [0], [1], [0, 0, 1, 1], [], []>} : vector<256x4xbf16>, vector<4x4xbf16>, vector<256x4xf32> -> vector<256x4xf32>
    %c0_5 = arith.constant 0 : index
    %c0_6 = arith.constant 0 : index
    %6 = vector.load %arg3[%c0_5, %c0_6] : memref<1x4xf32, #tpu.memory_space<vmem>>, vector<1x4xf32>
    %7 = vector.broadcast %6 : vector<1x4xf32> to vector<256x4xf32>
    %8 = arith.mulf %5, %7 : vector<256x4xf32>
    %c0_7 = arith.constant 0 : index
    %c0_8 = arith.constant 0 : index
    %9 = vector.load %arg4[%c0_7, %c0_8] : memref<1x4xf32, #tpu.memory_space<vmem>>, vector<1x4xf32>
    %10 = vector.broadcast %9 : vector<1x4xf32> to vector<256x4xf32>
    %11 = arith.addf %8, %10 : vector<256x4xf32>
    %cst_9 = arith.constant 0.000000e+00 : f32
    %12 = vector.broadcast %cst_9 : f32 to vector<256x4xf32>
    %13 = arith.maximumf %11, %12 : vector<256x4xf32>
    %cst_10 = arith.constant 0.000000e+00 : f32
    %14 = vector.broadcast %cst_10 : f32 to vector<18x18x4xf32>
    %c0_11 = arith.constant 0 : index
    %c0_12 = arith.constant 0 : index
    %c0_13 = arith.constant 0 : index
    %15 = vector.load %arg15[%c0_11, %c0_12, %c0_13] : memref<18x18x4xf32, #tpu.memory_space<vmem>>, vector<18x18x4xf32>
    tpu.vector_store %arg15[%c0_11, %c0_12, %c0_13], %14 {strides = array<i32>} : memref<18x18x4xf32, #tpu.memory_space<vmem>>, vector<18x18x4xf32>,
    %16 = vector.shape_cast %13 : vector<256x4xf32> to vector<16x16x4xf32>
    %c1 = arith.constant 1 : index
    %c1_14 = arith.constant 1 : index
    %c0_15 = arith.constant 0 : index
    %17 = vector.load %arg15[%c1, %c1_14, %c0_15] : memref<18x18x4xf32, #tpu.memory_space<vmem>>, vector<16x16x4xf32>
    tpu.vector_store %arg15[%c1, %c1_14, %c0_15], %16 {strides = array<i32>} : memref<18x18x4xf32, #tpu.memory_space<vmem>>, vector<16x16x4xf32>,
    %c0_16 = arith.constant 0 : index
    %c0_17 = arith.constant 0 : index
    %c0_18 = arith.constant 0 : index
    %18 = vector.load %arg15[%c0_16, %c0_17, %c0_18] : memref<18x18x4xf32, #tpu.memory_space<vmem>>, vector<18x18x4xf32>
    %19 = vector.extract_strided_slice %18 {offsets = [0, 0, 0], sizes = [16, 16, 4], strides = [1, 1, 1]} : vector<18x18x4xf32> to vector<16x16x4xf32>
    %20 = vector.shape_cast %19 : vector<16x16x4xf32> to vector<256x4xf32>
    %21 = arith.truncf %20 : vector<256x4xf32> to vector<256x4xbf16>
    %22 = vector.extract_strided_slice %18 {offsets = [0, 1, 0], sizes = [16, 16, 4], strides = [1, 1, 1]} : vector<18x18x4xf32> to vector<16x16x4xf32>
    %23 = vector.shape_cast %22 : vector<16x16x4xf32> to vector<256x4xf32>
    %24 = arith.truncf %23 : vector<256x4xf32> to vector<256x4xbf16>
    %25 = vector.extract_strided_slice %18 {offsets = [0, 2, 0], sizes = [16, 16, 4], strides = [1, 1, 1]} : vector<18x18x4xf32> to vector<16x16x4xf32>
    %26 = vector.shape_cast %25 : vector<16x16x4xf32> to vector<256x4xf32>
    %27 = arith.truncf %26 : vector<256x4xf32> to vector<256x4xbf16>
    %28 = vector.extract_strided_slice %18 {offsets = [1, 0, 0], sizes = [16, 16, 4], strides = [1, 1, 1]} : vector<18x18x4xf32> to vector<16x16x4xf32>
    %29 = vector.shape_cast %28 : vector<16x16x4xf32> to vector<256x4xf32>
    %30 = arith.truncf %29 : vector<256x4xf32> to vector<256x4xbf16>
    %31 = vector.extract_strided_slice %18 {offsets = [1, 1, 0], sizes = [16, 16, 4], strides = [1, 1, 1]} : vector<18x18x4xf32> to vector<16x16x4xf32>
    %32 = vector.shape_cast %31 : vector<16x16x4xf32> to vector<256x4xf32>
    %33 = arith.truncf %32 : vector<256x4xf32> to vector<256x4xbf16>
    %34 = vector.extract_strided_slice %18 {offsets = [1, 2, 0], sizes = [16, 16, 4], strides = [1, 1, 1]} : vector<18x18x4xf32> to vector<16x16x4xf32>
    %35 = vector.shape_cast %34 : vector<16x16x4xf32> to vector<256x4xf32>
    %36 = arith.truncf %35 : vector<256x4xf32> to vector<256x4xbf16>
    %37 = vector.extract_strided_slice %18 {offsets = [2, 0, 0], sizes = [16, 16, 4], strides = [1, 1, 1]} : vector<18x18x4xf32> to vector<16x16x4xf32>
    %38 = vector.shape_cast %37 : vector<16x16x4xf32> to vector<256x4xf32>
    %39 = arith.truncf %38 : vector<256x4xf32> to vector<256x4xbf16>
    %40 = vector.extract_strided_slice %18 {offsets = [2, 1, 0], sizes = [16, 16, 4], strides = [1, 1, 1]} : vector<18x18x4xf32> to vector<16x16x4xf32>
    %41 = vector.shape_cast %40 : vector<16x16x4xf32> to vector<256x4xf32>
    %42 = arith.truncf %41 : vector<256x4xf32> to vector<256x4xbf16>
    %43 = vector.extract_strided_slice %18 {offsets = [2, 2, 0], sizes = [16, 16, 4], strides = [1, 1, 1]} : vector<18x18x4xf32> to vector<16x16x4xf32>
    %44 = vector.shape_cast %43 : vector<16x16x4xf32> to vector<256x4xf32>
    %45 = arith.truncf %44 : vector<256x4xf32> to vector<256x4xbf16>
    %46 = tpu.concatenate %21, %24, %27, %30, %33, %36, %39, %42, %45 in 1 : vector<256x4xbf16>, vector<256x4xbf16>, vector<256x4xbf16>, vector<256x4xbf16>, vector<256x4xbf16>, vector<256x4xbf16>, vector<256x4xbf16>, vector<256x4xbf16>, vector<256x4xbf16> -> vector<256x36xbf16>
    %c0_19 = arith.constant 0 : index
    %c0_20 = arith.constant 0 : index
    %47 = vector.load %arg5[%c0_19, %c0_20] : memref<36x4xbf16, #tpu.memory_space<vmem>>, vector<36x4xbf16>
    %cst_21 = arith.constant dense<0.000000e+00> : vector<256x4xf32>
    %48 = tpu.matmul %46, %47, %cst_21 {dimension_numbers = #tpu.dot_dimension_numbers<[1], [0], [0], [1], [0, 0, 1, 1], [], []>} : vector<256x36xbf16>, vector<36x4xbf16>, vector<256x4xf32> -> vector<256x4xf32>
    %c0_22 = arith.constant 0 : index
    %c0_23 = arith.constant 0 : index
    %49 = vector.load %arg6[%c0_22, %c0_23] : memref<1x4xf32, #tpu.memory_space<vmem>>, vector<1x4xf32>
    %50 = vector.broadcast %49 : vector<1x4xf32> to vector<256x4xf32>
    %51 = arith.mulf %48, %50 : vector<256x4xf32>
    %c0_24 = arith.constant 0 : index
    %c0_25 = arith.constant 0 : index
    %52 = vector.load %arg7[%c0_24, %c0_25] : memref<1x4xf32, #tpu.memory_space<vmem>>, vector<1x4xf32>
    %53 = vector.broadcast %52 : vector<1x4xf32> to vector<256x4xf32>
    %54 = arith.addf %51, %53 : vector<256x4xf32>
    %cst_26 = arith.constant 0.000000e+00 : f32
    %55 = vector.broadcast %cst_26 : f32 to vector<256x4xf32>
    %56 = arith.maximumf %54, %55 : vector<256x4xf32>
    %57 = arith.truncf %56 : vector<256x4xf32> to vector<256x4xbf16>
    %c0_27 = arith.constant 0 : index
    %c0_28 = arith.constant 0 : index
    %58 = vector.load %arg8[%c0_27, %c0_28] : memref<4x128xbf16, #tpu.memory_space<vmem>>, vector<4x128xbf16>
    %cst_29 = arith.constant dense<0.000000e+00> : vector<256x128xf32>
    %59 = tpu.matmul %57, %58, %cst_29 {dimension_numbers = #tpu.dot_dimension_numbers<[1], [0], [0], [1], [0, 0, 1, 1], [], []>} : vector<256x4xbf16>, vector<4x128xbf16>, vector<256x128xf32> -> vector<256x128xf32>
    %c0_30 = arith.constant 0 : index
    %c0_31 = arith.constant 0 : index
    %60 = vector.load %arg9[%c0_30, %c0_31] : memref<1x128xf32, #tpu.memory_space<vmem>>, vector<1x128xf32>
    %61 = vector.broadcast %60 : vector<1x128xf32> to vector<256x128xf32>
    %62 = arith.mulf %59, %61 : vector<256x128xf32>
    %c0_32 = arith.constant 0 : index
    %c0_33 = arith.constant 0 : index
    %63 = vector.load %arg10[%c0_32, %c0_33] : memref<1x128xf32, #tpu.memory_space<vmem>>, vector<1x128xf32>
    %64 = vector.broadcast %63 : vector<1x128xf32> to vector<256x128xf32>
    %65 = arith.addf %62, %64 : vector<256x128xf32>
    %66 = vector.shape_cast %1 : vector<16x16x4xf32> to vector<256x4xf32>
    %67 = arith.truncf %66 : vector<256x4xf32> to vector<256x4xbf16>
    %c0_34 = arith.constant 0 : index
    %c0_35 = arith.constant 0 : index
    %68 = vector.load %arg11[%c0_34, %c0_35] : memref<4x128xbf16, #tpu.memory_space<vmem>>, vector<4x128xbf16>
    %cst_36 = arith.constant dense<0.000000e+00> : vector<256x128xf32>
    %69 = tpu.matmul %67, %68, %cst_36 {dimension_numbers = #tpu.dot_dimension_numbers<[1], [0], [0], [1], [0, 0, 1, 1], [], []>} : vector<256x4xbf16>, vector<4x128xbf16>, vector<256x128xf32> -> vector<256x128xf32>
    %c0_37 = arith.constant 0 : index
    %c0_38 = arith.constant 0 : index
    %70 = vector.load %arg12[%c0_37, %c0_38] : memref<1x128xf32, #tpu.memory_space<vmem>>, vector<1x128xf32>
    %71 = vector.broadcast %70 : vector<1x128xf32> to vector<256x128xf32>
    %72 = arith.mulf %69, %71 : vector<256x128xf32>
    %c0_39 = arith.constant 0 : index
    %c0_40 = arith.constant 0 : index
    %73 = vector.load %arg13[%c0_39, %c0_40] : memref<1x128xf32, #tpu.memory_space<vmem>>, vector<1x128xf32>
    %74 = vector.broadcast %73 : vector<1x128xf32> to vector<256x128xf32>
    %75 = arith.addf %72, %74 : vector<256x128xf32>
    %76 = arith.addf %65, %75 : vector<256x128xf32>
    %cst_41 = arith.constant 0.000000e+00 : f32
    %77 = vector.broadcast %cst_41 : f32 to vector<256x128xf32>
    %78 = arith.maximumf %76, %77 : vector<256x128xf32>
    %c0_42 = arith.constant 0 : index
    %c0_43 = arith.constant 0 : index
    %c0_44 = arith.constant 0 : index
    %79 = vector.load %arg14[%c0_42, %c0_43, %c0_44] : memref<1x256x128xf32, #tpu.memory_space<vmem>>, vector<1x256x128xf32>
    %80 = vector.shape_cast %79 : vector<1x256x128xf32> to vector<256x128xf32>
    %81 = vector.shape_cast %78 : vector<256x128xf32> to vector<1x256x128xf32>
    tpu.vector_store %arg14[%c0_42, %c0_43, %c0_44], %81 {strides = array<i32>} : memref<1x256x128xf32, #tpu.memory_space<vmem>>, vector<1x256x128xf32>,
    return
  }
  func.func @transform_0(%arg0: i32) -> (i32, i32, i32, i32) {
    %c0_i32 = arith.constant 0 : i32
    %c0_i32_0 = arith.constant 0 : i32
    %c0_i32_1 = arith.constant 0 : i32
    %c0_i32_2 = arith.constant 0 : i32
    return %arg0, %c0_i32, %c0_i32_0, %c0_i32_1 : i32, i32, i32, i32
  }
  func.func @transform_1(%arg0: i32) -> (i32, i32) {
    %c0_i32 = arith.constant 0 : i32
    %c0_i32_0 = arith.constant 0 : i32
    %c0_i32_1 = arith.constant 0 : i32
    return %c0_i32, %c0_i32_0 : i32, i32
  }
  func.func @transform_2(%arg0: i32) -> (i32, i32) {
    %c0_i32 = arith.constant 0 : i32
    %c0_i32_0 = arith.constant 0 : i32
    %c0_i32_1 = arith.constant 0 : i32
    return %c0_i32, %c0_i32_0 : i32, i32
  }
  func.func @transform_3(%arg0: i32) -> (i32, i32) {
    %c0_i32 = arith.constant 0 : i32
    %c0_i32_0 = arith.constant 0 : i32
    %c0_i32_1 = arith.constant 0 : i32
    return %c0_i32, %c0_i32_0 : i32, i32
  }
  func.func @transform_4(%arg0: i32) -> (i32, i32) {
    %c0_i32 = arith.constant 0 : i32
    %c0_i32_0 = arith.constant 0 : i32
    %c0_i32_1 = arith.constant 0 : i32
    return %c0_i32, %c0_i32_0 : i32, i32
  }
  func.func @transform_5(%arg0: i32) -> (i32, i32) {
    %c0_i32 = arith.constant 0 : i32
    %c0_i32_0 = arith.constant 0 : i32
    %c0_i32_1 = arith.constant 0 : i32
    return %c0_i32, %c0_i32_0 : i32, i32
  }
  func.func @transform_6(%arg0: i32) -> (i32, i32) {
    %c0_i32 = arith.constant 0 : i32
    %c0_i32_0 = arith.constant 0 : i32
    %c0_i32_1 = arith.constant 0 : i32
    return %c0_i32, %c0_i32_0 : i32, i32
  }
  func.func @transform_7(%arg0: i32) -> (i32, i32) {
    %c0_i32 = arith.constant 0 : i32
    %c0_i32_0 = arith.constant 0 : i32
    %c0_i32_1 = arith.constant 0 : i32
    return %c0_i32, %c0_i32_0 : i32, i32
  }
  func.func @transform_8(%arg0: i32) -> (i32, i32) {
    %c0_i32 = arith.constant 0 : i32
    %c0_i32_0 = arith.constant 0 : i32
    %c0_i32_1 = arith.constant 0 : i32
    return %c0_i32, %c0_i32_0 : i32, i32
  }
  func.func @transform_9(%arg0: i32) -> (i32, i32) {
    %c0_i32 = arith.constant 0 : i32
    %c0_i32_0 = arith.constant 0 : i32
    %c0_i32_1 = arith.constant 0 : i32
    return %c0_i32, %c0_i32_0 : i32, i32
  }
  func.func @transform_10(%arg0: i32) -> (i32, i32) {
    %c0_i32 = arith.constant 0 : i32
    %c0_i32_0 = arith.constant 0 : i32
    %c0_i32_1 = arith.constant 0 : i32
    return %c0_i32, %c0_i32_0 : i32, i32
  }
  func.func @transform_11(%arg0: i32) -> (i32, i32) {
    %c0_i32 = arith.constant 0 : i32
    %c0_i32_0 = arith.constant 0 : i32
    %c0_i32_1 = arith.constant 0 : i32
    return %c0_i32, %c0_i32_0 : i32, i32
  }
  func.func @transform_12(%arg0: i32) -> (i32, i32) {
    %c0_i32 = arith.constant 0 : i32
    %c0_i32_0 = arith.constant 0 : i32
    %c0_i32_1 = arith.constant 0 : i32
    return %c0_i32, %c0_i32_0 : i32, i32
  }
  func.func @transform_13(%arg0: i32) -> (i32, i32, i32) {
    %c0_i32 = arith.constant 0 : i32
    %c0_i32_0 = arith.constant 0 : i32
    %c0_i32_1 = arith.constant 0 : i32
    return %arg0, %c0_i32, %c0_i32_0 : i32, i32, i32
  }
}

</mosaic_0001>

<bundles_post_ra>
// kernel: tpu_custom_call.1
= control target key start
LH: loop header
LB: loop body
LE: loop exit
PB: predicated region body
PF: predicated region fallthrough
CT: control target
= control target key end

     0   :  { %s4530_s0 = inlined_call_operand.vmem [shape: f32[2,16,16,4], index: 0, kind: input, shape index: {}]   ;;  %s4531_s1 = inlined_call_operand.vmem [shape: bf16[4,4], index: 1, kind: input, shape index: {}]   ;;  %s4532_s2 = inlined_call_operand.vmem [shape: f32[1,4], index: 2, kind: input, shape index: {}]   ;;  %s4533_s3 = inlined_call_operand.vmem [shape: f32[1,4], index: 3, kind: input, shape index: {}]   ;;  %s4534_s4 = inlined_call_operand.vmem [shape: bf16[36,4], index: 4, kind: input, shape index: {}]   ;;  %s4535_s5 = inlined_call_operand.vmem [shape: f32[1,4], index: 5, kind: input, shape index: {}]   ;;  %s4536_s6 = inlined_call_operand.vmem [shape: f32[1,4], index: 6, kind: input, shape index: {}]   ;;  %s4537_s7 = inlined_call_operand.vmem [shape: bf16[4,128], index: 7, kind: input, shape index: {}]   ;;  %s4538_s8 = inlined_call_operand.vmem [shape: f32[1,128], index: 8, kind: input, shape index: {}]   ;;  %s4539_s9 = inlined_call_operand.vmem [shape: f32[1,128], index: 9, kind: input, shape index: {}]   ;;  %s4540_s10 = inlined_call_operand.vmem [shape: bf16[4,128], index: 10, kind: input, shape index: {}]   ;;  %s4541_s11 = inlined_call_operand.vmem [shape: f32[1,128], index: 11, kind: input, shape index: {}]   ;;  %s4542_s12 = inlined_call_operand.vmem [shape: f32[1,128], index: 12, kind: input, shape index: {}]   ;;  %s4543_s13 = inlined_call_operand.hbm [shape: f32[2,256,128], index: 13, kind: output, shape index: {}]  }
   0x1   :  { %4560 = sst [smem:[#allocation7_spill]] %s4530_s0 }
   0x2   :  { %4561 = sst [smem:[#allocation8_spill]] %s4531_s1 }
   0x3   :  { %4562 = sst [smem:[#allocation9_spill]] %s4534_s4 }
   0x4   :  { %18 = vsyncpa [#allocation4], 0 }
   0x5   :  { %20 = vsyncpa [#allocation4 + $0x1], 0  ;;  %s3208_s25 = smov 0   ;;  %s3210_s26 = smov 0  }
   0x6   :  { %s3212_s27 = smov 0   ;;  %s3214_s28 = smov 0  }
   0x7 LB: > { %s3229_s29 = sadd.s32 4294967295, %s3126_s28   ;;  %s2915_s30 = sadd.s32 4294967294, %s3126_s28   ;;  %s3126_s28 = sphi %s3214_s28, %s4581_s28   ;;  %s3122_s27 = sphi %s3212_s27, %s4580_s27   ;;  %s3118_s26 = sphi %s3210_s26, %s4579_s26   ;;  %s3114_s25 = sphi %s3208_s25, %s4578_s25  }
   0x8   : > { %s3233_s14 = sadd.s32 1, %s3126_s28   ;;  %s311_s15 = sadd.s32 1, %s3122_s27 }
   0x9   : > { %s308_s16 = ssub.s32 %s3126_s28, %s3233_s14  ;;  %p321_p0 = scmp.ne.s32.totalorder %s3122_s27, %s3118_s26 }
   0xa   : > { %p309_p1 = scmp.eq.s32.totalorder %s308_s16, 0  ;;  %p322_p2 = scmp.eq.s32.totalorder %s3229_s29, 1 }
   0xb   : > { %p327_p3 = scmp.ne.s32.totalorder %s3118_s26, %s3114_s25  ;;  %p328_p4 = scmp.eq.s32.totalorder %s2915_s30, 1 }
   0xc   : > { %s3244_s17 = scalar_select %p309_p1, %s3122_s27, %s311_s15  }
   0xd   : > { %p3246_p5 = por %p322_p2, %p321_p0  ;;  %p3250_p6 = por %p328_p4, %p327_p3 }
   0xe   : > { %4563 = sst [smem:[#allocation6_spill]] %s3244_s17  ;;  %p2918_p7 = scmp.ge.s32.totalorder %s3126_s28, 1 }
   0xf   : > { %p390_p8 = scmp.lt.s32.totalorder %s3126_s28, 3 }
  0x11   : > { %p391_p9 = pnand %p2918_p7, %p390_p8 }
  0x12   : > { %s4566_s1 = sld [smem:[#allocation8_spill]] (!%p391_p9)  ;;  %p434_p10 = scmp.lt.s32.totalorder (!%p391_p9), %s3229_s29, 1 }
  0x13   : > { %394 = sbr.rel (%p391_p9) target bundleno = 931 (0x3a3), region = 72  ;;  %s4567_s0 = sld [smem:[#allocation7_spill]] (!%p391_p9) }
  0x14   : > { %s4552_s24 = smov (!%p391_p9), 8   ;;  %s4544_s30 = smov (!%p391_p9), 12  }
  0x15   : > { %s4546_s16 = smov (!%p391_p9), 20   ;;  %s4554_s20 = smov (!%p391_p9), 16  }
  0x16   : > { %s4556_s21 = smov (!%p391_p9), 28   ;;  %s4572_s4 = sld [smem:[#allocation9_spill]] (!%p391_p9) }
  0x17   : > { %s4574_s17 = smov (!%p391_p9), 28  }
  0x18   : > { %v488_v0 = vld [vmem:[%s4566_s1] sm:$0x3]  ;;  %vm538_vm0 = vcmask 1041408   ;;  %s435_s22 = scalar_select %p434_p10, %s3229_s29, 1  ;;  %vm489_vm1 = vcmask 31744   ;;  %v3128_v23 = vmov 0.0  }
  0x19   : > { %v540_v1 = vsel %vm538_vm0, %v488_v0, 0  ;;  %739 = vst.msk [vmem:[#allocation2 + $0x18] sm:$0xff] %vm489_vm1, %v3128_v23  ;;  %v3378_v27 = vld [vmem:[%s4532_s2] ss:$0 sm:$0xff]  ;;  %vm737_vm2 = vcmask 25600   ;;  %vm957_vm3 = vcmask 1046528  }
  0x1a   : > { %549 = vmatpush.bf16.msra.mxu0 %v540_v1  ;;  %s2999_s23 = sshll.u32 %s435_s22, 8  ;;  %740 = vst.msk [vmem:[#allocation2 + $0x20] sm:$0xff] %vm489_vm1, %v3128_v23  ;;  %v3387_v28 = vld [vmem:[%s4533_s3] ss:$0 sm:$0xff]  ;;  %vm1102_vm4 = vcmask 1045504   ;;  %s4550_s22 = smov 24  }
  0x1b   : > { %s3265_s15 = scalar_lea.vmem %s4567_s0, %s2999_s23  ;;  %735 = vst.msk [vmem:[#allocation2] sm:$0xff] %vm489_vm1, %v3128_v23  ;;  %s4558_s23 = smov 4   ;;  %vm1867_vm5 = vcmask 64512   ;;  %vm1900_vm6 = vcmask 97280   ;;  %vm1933_vm7 = vcmask 130048   ;;  %vm1966_vm8 = vcmask 162816  }
  0x1c   : > { %v440_v2 = vld [vmem:[%s3265_s15] sm:$0xff]  ;;  %v441_v3 = vld [vmem:[%s3265_s15 + $0x8] sm:$0xff]  ;;  %v442_v5 = vld [vmem:[%s3265_s15 + $0x10] sm:$0xff]  ;;  %736 = vst.msk [vmem:[#allocation2 + $0x8] sm:$0xff] %vm489_vm1, %v3128_v23  ;;  %s4573_s0 = smov 8   ;;  %s4575_s1 = smov 16  }
  0x1d   : > { %v3269_v4 = vpack.c.bf16 %v441_v3, %v440_v2  ;;  %v443_v6 = vld [vmem:[%s3265_s15 + $0x18] sm:$0xff]  ;;  %v444_v8 = vld [vmem:[%s3265_s15 + $0x20] sm:$0xff]  ;;  %v445_v9 = vld [vmem:[%s3265_s15 + $0x28] sm:$0xff]  ;;  %742 = vst.msk [vmem:[#allocation2 + $0x30] sm:$0xff] %vm489_vm1, %v3128_v23  ;;  %vm1999_vm9 = vcmask 195584   ;;  %vm2032_vm10 = vcmask 228352  }
  0x1e   : > { %v3275_v7 = vpack.c.bf16 %v443_v6, %v442_v5  ;;  %v3281_v10 = vpack.c.bf16 %v445_v9, %v444_v8  ;;  %v446_v11 = vld [vmem:[%s3265_s15 + $0x30] sm:$0xff]  ;;  %v447_v12 = vld [vmem:[%s3265_s15 + $0x38] sm:$0xff]  ;;  %v448_v14 = vld [vmem:[%s3265_s15 + $0x40] sm:$0xff]  ;;  %743 = vst.msk [vmem:[#allocation2 + $0x38] sm:$0xff] %vm489_vm1, %v3128_v23  ;;  %vm2065_vm11 = vcmask 261120   ;;  %vm2118_vm12 = vcmask 293888  }
  0x1f   : > { %2922 = vmatmul.msk.bf16.vlgmr.msra.gmra.mxu0 %vm489_vm1, %v3269_v4  ;;  %v3287_v13 = vpack.c.bf16 %v447_v12, %v446_v11  ;;  %v449_v15 = vld [vmem:[%s3265_s15 + $0x48] sm:$0xff]  ;;  %v450_v17 = vld [vmem:[%s3265_s15 + $0x50] sm:$0xff]  ;;  %v451_v18 = vld [vmem:[%s3265_s15 + $0x58] sm:$0xff]  ;;  %745 = vst.msk [vmem:[#allocation2 + $0x48] sm:$0xff] %vm489_vm1, %v3128_v23 }
  0x20   : > { %v3293_v16 = vpack.c.bf16 %v449_v15, %v448_v14  ;;  %v3299_v19 = vpack.c.bf16 %v451_v18, %v450_v17  ;;  %v452_v20 = vld [vmem:[%s3265_s15 + $0x60] sm:$0xff]  ;;  %v453_v21 = vld [vmem:[%s3265_s15 + $0x68] sm:$0xff]  ;;  %746 = vst.msk [vmem:[#allocation2 + $0x50] sm:$0xff] %vm489_vm1, %v3128_v23  ;;  %v454_v24 = vld [vmem:[%s3265_s15 + $0x70] sm:$0xff] }
  0x21   : > { %v3305_v22 = vpack.c.bf16 %v453_v21, %v452_v20  ;;  %748 = vst.msk [vmem:[#allocation2 + $0x60] sm:$0xff] %vm489_vm1, %v3128_v23  ;;  %v455_v25 = vld [vmem:[%s3265_s15 + $0x78] sm:$0xff]  ;;  %v456_v36 = vld [vmem:[%s3265_s15 + $0x80] sm:$0xff]  ;;  %v457_v37 = vld [vmem:[%s3265_s15 + $0x88] sm:$0xff] }
  0x22   : > { %749 = vst.msk [vmem:[#allocation2 + $0x68] sm:$0xff] %vm489_vm1, %v3128_v23  ;;  %v3345_v26 = vpack.c.bf16 %v455_v25, %v454_v24  ;;  %v3396_v31 = vld [vmem:[#allocation2] sm:$0xff]  ;;  %v3413_v39 = vpack.c.bf16 %v457_v37, %v456_v36  ;;  %v458_v17 = vld [vmem:[%s3265_s15 + $0x90] sm:$0xff]  ;;  %v459_v18 = vld [vmem:[%s3265_s15 + $0x98] sm:$0xff] }
  0x23   : > { %751 = vst.msk [vmem:[#allocation2 + $0x78] sm:$0xff] %vm489_vm1, %v3128_v23  ;;  %v3398_v32 = vld [vmem:[#allocation2 + $0x8] sm:$0xff]  ;;  %v958_v34 = vrot.slane %v3396_v31, 1  ;;  %v1103_v43 = vrot.slane %v3396_v31, 2 }
  0x24   : > { %752 = vst.msk [vmem:[#allocation2 + $0x80] sm:$0xff] %vm489_vm1, %v3128_v23  ;;  %v959_v35 = vrot.slane %v3398_v32, 1  ;;  %v1104_v44 = vrot.slane %v3398_v32, 2 }
  0x25   : > { %754 = vst.msk [vmem:[#allocation2 + $0x90] sm:$0xff] %vm489_vm1, %v3128_v23 }
  0x26   : > { %755 = vst.msk [vmem:[#allocation2 + $0x98] sm:$0xff] %vm489_vm1, %v3128_v23  ;;  %v960_v41 = vsel %vm957_vm3, %v958_v34, %v959_v35  ;;  %v1105_v51 = vsel %vm1102_vm4, %v1103_v43, %v1104_v44 }
  0x27   : > { %757 = vst.msk [vmem:[#allocation2 + $0xa8] sm:$0xff] %vm489_vm1, %v3128_v23  ;;  %v1070_v47 = vpack.c.bf16 %v960_v41, %v960_v41  ;;  %v1215_v57 = vpack.c.bf16 %v1105_v51, %v1105_v51 }
  0x28   : > { %758 = vst.msk [vmem:[#allocation2 + $0xb0] sm:$0xff] %vm489_vm1, %v3128_v23 }
  0x29   : > { %760 = vst.msk [vmem:[#allocation2 + $0xc0] sm:$0xff] %vm489_vm1, %v3128_v23  ;;  %v1405_v55 = vunpack.c.l.b16 %v1070_v47  ;;  %v1517_v0 = vunpack.c.l.b16 %v1215_v57 }
  0x2a   : > { %761 = vst.msk [vmem:[#allocation2 + $0xc8] sm:$0xff] %vm489_vm1, %v3128_v23 }
  0x2b   : > { %763 = vst.msk [vmem:[#allocation2 + $0xd8] sm:$0xff] %vm489_vm1, %v3128_v23 }
  0x2c   : > { %764 = vst.msk [vmem:[#allocation2 + $0xe0] sm:$0xff] %vm489_vm1, %v3128_v23 }
  0x2d   : > { %766 = vst.msk [vmem:[#allocation2 + $0xf0] sm:$0xff] %vm489_vm1, %v3128_v23 }
  0x2e   : > { %767 = vst.msk [vmem:[#allocation2 + $0xf8] sm:$0xff] %vm489_vm1, %v3128_v23 }
  0x2f   : > { %2923 = vmatmul.msk.bf16.gmra.mxu0 %vm489_vm1, %v3275_v7  ;;  %769 = vst.msk [vmem:[#allocation2 + $0x108] sm:$0xff] %vm489_vm1, %v3128_v23 }
  0x30   : > { %770 = vst.msk [vmem:[#allocation2 + $0x110] sm:$0xff] %vm489_vm1, %v3128_v23 }
  0x31   : > { %772 = vst.msk [vmem:[#allocation2 + $0x120] sm:$0xff] %vm489_vm1, %v3128_v23 }
  0x32   : > { %773 = vst.msk [vmem:[#allocation2 + $0x128] sm:$0xff] %vm489_vm1, %v3128_v23 }
  0x33   : > { %775 = vst.msk [vmem:[#allocation2 + $0x138] sm:$0xff] %vm489_vm1, %v3128_v23 }
  0x34   : > { %776 = vst.msk [vmem:[#allocation2 + $0x140] sm:$0xff] %vm489_vm1, %v3128_v23 }
  0x35   : > { %778 = vst.msk [vmem:[#allocation2 + $0x150] sm:$0xff] %vm489_vm1, %v3128_v23 }
  0x36   : > { %779 = vst.msk [vmem:[#allocation2 + $0x158] sm:$0xff] %vm489_vm1, %v3128_v23 }
  0x37   : > { %781 = vst.msk [vmem:[#allocation2 + $0x168] sm:$0xff] %vm489_vm1, %v3128_v23 }
  0x38   : > { %782 = vst.msk [vmem:[#allocation2 + $0x170] sm:$0xff] %vm489_vm1, %v3128_v23 }
  0x39   : > { %784 = vst.msk [vmem:[#allocation2 + $0x180] sm:$0xff] %vm489_vm1, %v3128_v23 }
  0x3a   : > { %785 = vst.msk [vmem:[#allocation2 + $0x188] sm:$0xff] %vm489_vm1, %v3128_v23 }
  0x3b   : > { %787 = vst.msk [vmem:[#allocation2 + $0x198] sm:$0xff] %vm489_vm1, %v3128_v23 }
  0x3c   : > { %788 = vst.msk [vmem:[#allocation2 + $0x1a0] sm:$0xff] %vm489_vm1, %v3128_v23 }
  0x3d   : > { %741 = vst.msk [vmem:[#allocation2 + $0x28] sm:$0x3] %vm737_vm2, %v3128_v23 }
  0x3e   : > { %738 = vst.msk [vmem:[#allocation2 + $0x10] sm:$0x3] %vm737_vm2, %v3128_v23 }
  0x3f   : > { %2924 = vmatmul.msk.bf16.gmra.mxu0 %vm489_vm1, %v3281_v10  ;;  %744 = vst.msk [vmem:[#allocation2 + $0x40] sm:$0x3] %vm737_vm2, %v3128_v23 }
  0x40   : > { %747 = vst.msk [vmem:[#allocation2 + $0x58] sm:$0x3] %vm737_vm2, %v3128_v23 }
  0x41   : > { %750 = vst.msk [vmem:[#allocation2 + $0x70] sm:$0x3] %vm737_vm2, %v3128_v23 }
  0x42   : > { %753 = vst.msk [vmem:[#allocation2 + $0x88] sm:$0x3] %vm737_vm2, %v3128_v23 }
  0x43   : > { %756 = vst.msk [vmem:[#allocation2 + $0xa0] sm:$0x3] %vm737_vm2, %v3128_v23 }
  0x44   : > { %759 = vst.msk [vmem:[#allocation2 + $0xb8] sm:$0x3] %vm737_vm2, %v3128_v23 }
  0x45   : > { %v825_v46 = vld [vmem:[#allocation2 + $0x10] sm:$0x3]  ;;  %762 = vst.msk [vmem:[#allocation2 + $0xd0] sm:$0x3] %vm737_vm2, %v3128_v23 }
  0x46   : > { %v961_v48 = vrot.slane %v825_v46, 1  ;;  %v1106_v49 = vrot.slane %v825_v46, 2  ;;  %765 = vst.msk [vmem:[#allocation2 + $0xe8] sm:$0x3] %vm737_vm2, %v3128_v23 }
  0x47   : > { %768 = vst.msk [vmem:[#allocation2 + $0x100] sm:$0x3] %vm737_vm2, %v3128_v23 }
  0x48   : > { %v962_v52 = vsel %vm957_vm3, %v959_v35, %v961_v48  ;;  %v1107_v53 = vsel %vm1102_vm4, %v1104_v44, %v1106_v49  ;;  %771 = vst.msk [vmem:[#allocation2 + $0x118] sm:$0x3] %vm737_vm2, %v3128_v23 }
  0x49   : > { %v1071_v54 = vpack.c.bf16 %v962_v52, %v962_v52  ;;  %v1216_v58 = vpack.c.bf16 %v1107_v53, %v1107_v53  ;;  %774 = vst.msk [vmem:[#allocation2 + $0x130] sm:$0x3] %vm737_vm2, %v3128_v23 }
  0x4a   : > { %777 = vst.msk [vmem:[#allocation2 + $0x148] sm:$0x3] %vm737_vm2, %v3128_v23 }
  0x4b   : > { %v1406_v59 = vunpack.c.l.b16 %v1071_v54  ;;  %780 = vst.msk [vmem:[#allocation2 + $0x160] sm:$0x3] %vm737_vm2, %v3128_v23  ;;  %v1518_v1 = vunpack.c.l.b16 %v1216_v58 }
  0x4c   : > { %783 = vst.msk [vmem:[#allocation2 + $0x178] sm:$0x3] %vm737_vm2, %v3128_v23 }
  0x4d   : > { %v1437_v62 = vpack.c.b16 %v1406_v59, %v1405_v55  ;;  %786 = vst.msk [vmem:[#allocation2 + $0x190] sm:$0x3] %vm737_vm2, %v3128_v23  ;;  %v1549_v20 = vpack.c.b16 %v1518_v1, %v1517_v0 }
  0x4e   : > { %789 = vst.msk [vmem:[#allocation2 + $0x1a8] sm:$0x3] %vm737_vm2, %v3128_v23 }
  0x4f   : > { %2925 = vmatmul.msk.bf16.gmra.mxu0 %vm489_vm1, %v3287_v13  ;;  %1453 = vrot.lane.b32.xlu0 %v1437_v62, %s4558_s23 }
  0x57   : > { %1565 = vrot.lane.b32.xlu0 %v1549_v20, %s4552_s24 }
  0x5f   : > { %2926 = vmatmul.msk.bf16.gmra.mxu0 %vm489_vm1, %v3293_v16 }
  0x6f   : > { %2927 = vmatmul.msk.bf16.gmra.mxu0 %vm489_vm1, %v3299_v19 }
  0x7f   : > { %2928 = vmatmul.msk.bf16.gmra.mxu0 %vm489_vm1, %v3305_v22 }
  0x8f   : > { %2929 = vmatmul.msk.bf16.gmra.mxu0 %vm489_vm1, %v3345_v26 }
  0x9c   : > { %v551_v29 = vpop.f32.mrf.mxu0 }
  0x9d   : > { %v635_v30 = vmul.f32 %v3378_v27, %v551_v29  ;;  %v3463_v29 = vpack.c.bf16 %v459_v18, %v458_v17 }
  0x9f   : > { %v671_v33 = vadd.f32 %v3387_v28, %v635_v30  ;;  %2930 = vmatmul.msk.bf16.gmra.mxu0 %vm489_vm1, %v3413_v39 }
  0xa1   : > { %v703_v38 = vmax.f32 %v671_v33, 0.0 }
  0xa3   : > { %791 = vst.msk [vmem:[#allocation2 + $0x19] sm:$0xff] %vm489_vm1, %v703_v38 }
  0xa4   : > { %v553_v40 = vpop.f32.mrf.mxu0 }
  0xa5   : > { %v636_v42 = vmul.f32 %v3378_v27, %v553_v40 }
  0xa7   : > { %v672_v45 = vadd.f32 %v3387_v28, %v636_v42 }
  0xa9   : > { %v704_v50 = vmax.f32 %v672_v45, 0.0 }
  0xaa   : > { %v826_v61 = vld [vmem:[#allocation2 + $0x18] sm:$0xff] }
  0xab   : > { %792 = vst.msk [vmem:[#allocation2 + $0x21] sm:$0xff] %vm489_vm1, %v704_v50  ;;  %v879_v2 = vpack.c.bf16 %v826_v61, %v826_v61  ;;  %v963_v5 = vrot.slane %v826_v61, 1  ;;  %v1108_v8 = vrot.slane %v826_v61, 2 }
  0xac   : > { %v556_v56 = vpop.f32.mrf.mxu0 }
  0xad   : > { %v637_v60 = vmul.f32 %v3378_v27, %v556_v56  ;;  %v1327_v24 = vunpack.c.l.b16 %v879_v2 }
  0xaf   : > { %v673_v63 = vadd.f32 %v3387_v28, %v637_v60  ;;  %2931 = vmatmul.msk.bf16.gmra.mxu0 %vm489_vm1, %v3463_v29 }
  0xb1   : > { %v705_v3 = vmax.f32 %v673_v63, 0.0 }
  0xb2   : > { %v827_v6 = vld [vmem:[#allocation2 + $0x20] sm:$0xff]  ;;  %v828_v9 = vld [vmem:[#allocation2 + $0x28] sm:$0x3] }
  0xb3   : > { %793 = vst.msk [vmem:[#allocation2 + $0x31] sm:$0xff] %vm489_vm1, %v705_v3  ;;  %v880_v11 = vpack.c.bf16 %v827_v6, %v827_v6  ;;  %v964_v12 = vrot.slane %v827_v6, 1  ;;  %v1109_v14 = vrot.slane %v827_v6, 2  ;;  %v1111_v15 = vrot.slane %v828_v9, 2 }
  0xb4   : > { %v558_v21 = vpop.f32.mrf.mxu0  ;;  %v966_v25 = vrot.slane %v828_v9, 1 }
  0xb5   : > { %v638_v30 = vmul.f32 %v3378_v27, %v558_v21  ;;  %v1328_v23 = vunpack.c.l.b16 %v880_v11  ;;  %v1110_v33 = vsel %vm1102_vm4, %v1108_v8, %v1109_v14  ;;  %v1112_v34 = vsel %vm1102_vm4, %v1109_v14, %v1111_v15  ;;  %v460_v11 = vld [vmem:[%s3265_s15 + $0xa0] sm:$0xff] }
  0xb6   : > { %v1217_v35 = vpack.c.bf16 %v1110_v33, %v1110_v33  ;;  %v1218_v36 = vpack.c.bf16 %v1112_v34, %v1112_v34  ;;  %v965_v37 = vsel %vm957_vm3, %v963_v5, %v964_v12  ;;  %v967_v38 = vsel %vm957_vm3, %v964_v12, %v966_v25  ;;  %v461_v12 = vld [vmem:[%s3265_s15 + $0xa8] sm:$0xff] }
  0xb7   : > { %v674_v40 = vadd.f32 %v3387_v28, %v638_v30  ;;  %v3473_v41 = vpack.c.b16 %v1328_v23, %v1327_v24  ;;  %v1072_v42 = vpack.c.bf16 %v965_v37, %v965_v37  ;;  %v1073_v43 = vpack.c.bf16 %v967_v38, %v967_v38 }
  0xb8   : > { %v1519_v44 = vunpack.c.l.b16 %v1217_v35  ;;  %v1520_v45 = vunpack.c.l.b16 %v1218_v36  ;;  %v3496_v33 = vpack.c.bf16 %v461_v12, %v460_v11  ;;  %v462_v11 = vld [vmem:[%s3265_s15 + $0xb0] sm:$0xff]  ;;  %v463_v12 = vld [vmem:[%s3265_s15 + $0xb8] sm:$0xff] }
  0xb9   : > { %v706_v46 = vmax.f32 %v674_v40, 0.0  ;;  %1602 = vrot.lane.b32.xlu1 %v3473_v41, %s4544_s30  ;;  %v1407_v48 = vunpack.c.l.b16 %v1072_v42  ;;  %v1408_v49 = vunpack.c.l.b16 %v1073_v43 }
  0xba   : > { %v1550_v47 = vpack.c.b16 %v1520_v45, %v1519_v44  ;;  %v829_v52 = vld [vmem:[#allocation2 + $0x30] sm:$0xff] }
  0xbb   : > { %794 = vst.msk [vmem:[#allocation2 + $0x39] sm:$0xff] %vm489_vm1, %v706_v46  ;;  %v1438_v54 = vpack.c.b16 %v1408_v49, %v1407_v48  ;;  %v881_v55 = vpack.c.bf16 %v829_v52, %v829_v52  ;;  %v968_v58 = vrot.slane %v829_v52, 1  ;;  %v1113_v1 = vrot.slane %v829_v52, 2 }
  0xbc   : > { %1676 = vrot.lane.b32.xlu2 %v1550_v47, %s4546_s16  ;;  %v561_v50 = vpop.f32.mrf.mxu0  ;;  %1567 = vrot.lane.b32.xlu0 %v1550_v47, %s4552_s24 }
  0xbd   : > { %v639_v51 = vmul.f32 %v3378_v27, %v561_v50  ;;  %v1329_v2 = vunpack.c.l.b16 %v881_v55 }
  0xbf   : > { %v675_v53 = vadd.f32 %v3387_v28, %v639_v51  ;;  %2932 = vmatmul.msk.bf16.gmra.mxu0 %vm489_vm1, %v3496_v33 }
  0xc1   : > { %v707_v56 = vmax.f32 %v675_v53, 0.0  ;;  %1639 = vrot.lane.b32.xlu1 %v1438_v54, %s4554_s20 }
  0xc2   : > { %v830_v57 = vld [vmem:[#allocation2 + $0x38] sm:$0xff]  ;;  %v831_v59 = vld [vmem:[#allocation2 + $0x40] sm:$0x3] }
  0xc3   : > { %795 = vst.msk [vmem:[#allocation2 + $0x49] sm:$0xff] %vm489_vm1, %v707_v56  ;;  %v882_v60 = vpack.c.bf16 %v830_v57, %v830_v57  ;;  %v969_v61 = vrot.slane %v830_v57, 1  ;;  %v1114_v62 = vrot.slane %v830_v57, 2  ;;  %v971_v63 = vrot.slane %v831_v59, 1 }
  0xc4   : > { %1455 = vrot.lane.b32.xlu2 %v1438_v54, %s4558_s23  ;;  %v563_v0 = vpop.f32.mrf.mxu0  ;;  %v1116_v3 = vrot.slane %v831_v59, 2 }
  0xc5   : > { %v640_v5 = vmul.f32 %v3378_v27, %v563_v0  ;;  %v1330_v6 = vunpack.c.l.b16 %v882_v60  ;;  %v970_v8 = vsel %vm957_vm3, %v968_v58, %v969_v61  ;;  %v972_v9 = vsel %vm957_vm3, %v969_v61, %v971_v63 }
  0xc6   : > { %v1074_v14 = vpack.c.bf16 %v970_v8, %v970_v8  ;;  %v1075_v15 = vpack.c.bf16 %v972_v9, %v972_v9  ;;  %v1115_v17 = vsel %vm1102_vm4, %v1113_v1, %v1114_v62  ;;  %v1117_v18 = vsel %vm1102_vm4, %v1114_v62, %v1116_v3 }
  0xc7   : > { %v676_v20 = vadd.f32 %v3387_v28, %v640_v5  ;;  %v3494_v21 = vpack.c.b16 %v1330_v6, %v1329_v2  ;;  %v1219_v24 = vpack.c.bf16 %v1115_v17, %v1115_v17  ;;  %v1220_v25 = vpack.c.bf16 %v1117_v18, %v1117_v18 }
  0xc8   : > { %v1409_v30 = vunpack.c.l.b16 %v1074_v14  ;;  %v1410_v23 = vunpack.c.l.b16 %v1075_v15  ;;  %v3528_v15 = vpack.c.bf16 %v463_v12, %v462_v11 }
  0xc9   : > { %v708_v34 = vmax.f32 %v676_v20, 0.0  ;;  %1604 = vrot.lane.b32.xlu1 %v3494_v21, %s4544_s30  ;;  %v1521_v36 = vunpack.c.l.b16 %v1219_v24  ;;  %v1522_v37 = vunpack.c.l.b16 %v1220_v25  ;;  %s4548_s30 = smov 32  }
  0xca   : > { %v1439_v35 = vpack.c.b16 %v1410_v23, %v1409_v30  ;;  %v832_v44 = vld [vmem:[#allocation2 + $0x48] sm:$0xff] }
  0xcb   : > { %796 = vst.msk [vmem:[#allocation2 + $0x51] sm:$0xff] %vm489_vm1, %v708_v34  ;;  %v1551_v42 = vpack.c.b16 %v1522_v37, %v1521_v36  ;;  %v883_v47 = vpack.c.bf16 %v832_v44, %v832_v44  ;;  %v973_v48 = vrot.slane %v832_v44, 1  ;;  %v1118_v49 = vrot.slane %v832_v44, 2 }
  0xcc   : > { %1750 = vrot.lane.b32.xlu0 %v1439_v35, %s4556_s21  ;;  %1713 = vrot.lane.b32.xlu2 %v3494_v21, %s4550_s22  ;;  %v566_v38 = vpop.f32.mrf.mxu0 }
  0xcd   : > { %v641_v40 = vmul.f32 %v3378_v27, %v566_v38  ;;  %v1331_v58 = vunpack.c.l.b16 %v883_v47 }
  0xcf   : > { %v677_v43 = vadd.f32 %v3387_v28, %v641_v40  ;;  %2933 = vmatmul.msk.bf16.gmra.mxu0 %vm489_vm1, %v3528_v15 }
  0xd1   : > { %1787 = vrot.lane.b32.xlu1 %v1551_v42, %s4548_s30  ;;  %v709_v45 = vmax.f32 %v677_v43, 0.0 }
  0xd2   : > { %v833_v46 = vld [vmem:[#allocation2 + $0x50] sm:$0xff]  ;;  %v834_v50 = vld [vmem:[#allocation2 + $0x58] sm:$0x3] }
  0xd3   : > { %797 = vst.msk [vmem:[#allocation2 + $0x61] sm:$0xff] %vm489_vm1, %v709_v45  ;;  %v884_v51 = vpack.c.bf16 %v833_v46, %v833_v46  ;;  %v974_v52 = vrot.slane %v833_v46, 1  ;;  %v1119_v53 = vrot.slane %v833_v46, 2  ;;  %v976_v54 = vrot.slane %v834_v50, 1 }
  0xd4   : > { %1678 = vrot.lane.b32.xlu0 %v1551_v42, %s4546_s16  ;;  %1641 = vrot.lane.b32.xlu2 %v1439_v35, %s4554_s20  ;;  %v568_v55 = vpop.f32.mrf.mxu0  ;;  %v1121_v56 = vrot.slane %v834_v50, 2  ;;  %s4568_s16 = smov 12  }
  0xd5   : > { %v642_v57 = vmul.f32 %v3378_v27, %v568_v55  ;;  %v1332_v59 = vunpack.c.l.b16 %v884_v51  ;;  %v975_v60 = vsel %vm957_vm3, %v973_v48, %v974_v52  ;;  %v977_v62 = vsel %vm957_vm3, %v974_v52, %v976_v54 }
  0xd6   : > { %v1120_v63 = vsel %vm1102_vm4, %v1118_v49, %v1119_v53  ;;  %v1122_v0 = vsel %vm1102_vm4, %v1119_v53, %v1121_v56  ;;  %v1076_v2 = vpack.c.bf16 %v975_v60, %v975_v60  ;;  %v1077_v5 = vpack.c.bf16 %v977_v62, %v977_v62 }
  0xd7   : > { %v678_v61 = vadd.f32 %v3387_v28, %v642_v57  ;;  %v3519_v3 = vpack.c.b16 %v1332_v59, %v1331_v58  ;;  %v1221_v6 = vpack.c.bf16 %v1120_v63, %v1120_v63  ;;  %v1222_v8 = vpack.c.bf16 %v1122_v0, %v1122_v0  ;;  %v464_v0 = vld [vmem:[%s3265_s15 + $0xc0] sm:$0xff] }
  0xd8   : > { %v1411_v17 = vunpack.c.l.b16 %v1076_v2  ;;  %v1412_v18 = vunpack.c.l.b16 %v1077_v5 }
  0xd9   : > { %1457 = vrot.lane.b32.xlu1 %v1439_v35, %s4558_s23  ;;  %v710_v1 = vmax.f32 %v678_v61, 0.0  ;;  %v1523_v20 = vunpack.c.l.b16 %v1221_v6  ;;  %v1524_v24 = vunpack.c.l.b16 %v1222_v8 }
  0xda   : > { %v1440_v23 = vpack.c.b16 %v1412_v18, %v1411_v17  ;;  %v835_v36 = vld [vmem:[#allocation2 + $0x60] sm:$0xff] }
  0xdb   : > { %798 = vst.msk [vmem:[#allocation2 + $0x69] sm:$0xff] %vm489_vm1, %v710_v1  ;;  %v1552_v34 = vpack.c.b16 %v1524_v24, %v1523_v20  ;;  %v978_v43 = vrot.slane %v835_v36, 1  ;;  %v885_v47 = vpack.c.bf16 %v835_v36, %v835_v36  ;;  %v1123_v49 = vrot.slane %v835_v36, 2  ;;  %v465_v1 = vld [vmem:[%s3265_s15 + $0xc8] sm:$0xff] }
  0xdc   : > { %1569 = vrot.lane.b32.xlu2 %v1551_v42, %s4552_s24  ;;  %1606 = vrot.lane.b32.xlu0 %v3519_v3, %s4568_s16  ;;  %v571_v9 = vpop.f32.mrf.mxu0  ;;  %v3555_v8 = vpack.c.bf16 %v465_v1, %v464_v0 }
  0xdd   : > { %v643_v14 = vmul.f32 %v3378_v27, %v571_v9  ;;  %v1333_v56 = vunpack.c.l.b16 %v885_v47 }
  0xdf   : > { %v679_v25 = vadd.f32 %v3387_v28, %v643_v14  ;;  %2934 = vmatmul.msk.bf16.gmra.mxu0 %vm489_vm1, %v3555_v8 }
  0xe1   : > { %1715 = vrot.lane.b32.xlu1 %v3519_v3, %s4550_s22  ;;  %v711_v30 = vmax.f32 %v679_v25, 0.0 }
  0xe2   : > { %v836_v37 = vld [vmem:[#allocation2 + $0x68] sm:$0xff]  ;;  %v837_v40 = vld [vmem:[#allocation2 + $0x70] sm:$0x3] }
  0xe3   : > { %799 = vst.msk [vmem:[#allocation2 + $0x79] sm:$0xff] %vm489_vm1, %v711_v30  ;;  %v979_v44 = vrot.slane %v836_v37, 1  ;;  %v981_v45 = vrot.slane %v837_v40, 1  ;;  %v886_v48 = vpack.c.bf16 %v836_v37, %v836_v37  ;;  %v1124_v50 = vrot.slane %v836_v37, 2 }
  0xe4   : > { %1752 = vrot.lane.b32.xlu2 %v1440_v23, %s4556_s21  ;;  %1789 = vrot.lane.b32.xlu0 %v1552_v34, %s4548_s30  ;;  %v573_v35 = vpop.f32.mrf.mxu0  ;;  %v1126_v52 = vrot.slane %v837_v40, 2  ;;  %s4569_s30 = smov 20  }
  0xe5   : > { %v644_v38 = vmul.f32 %v3378_v27, %v573_v35  ;;  %v980_v51 = vsel %vm957_vm3, %v978_v43, %v979_v44  ;;  %v982_v53 = vsel %vm957_vm3, %v979_v44, %v981_v45  ;;  %v1334_v57 = vunpack.c.l.b16 %v886_v48 }
  0xe6   : > { %v1078_v58 = vpack.c.bf16 %v980_v51, %v980_v51  ;;  %v1079_v59 = vpack.c.bf16 %v982_v53, %v982_v53  ;;  %v1125_v61 = vsel %vm1102_vm4, %v1123_v49, %v1124_v50  ;;  %v1127_v62 = vsel %vm1102_vm4, %v1124_v50, %v1126_v52 }
  0xe7   : > { %v680_v42 = vadd.f32 %v3387_v28, %v644_v38  ;;  %v3553_v2 = vpack.c.b16 %v1334_v57, %v1333_v56  ;;  %v1223_v5 = vpack.c.bf16 %v1125_v61, %v1125_v61  ;;  %v1224_v6 = vpack.c.bf16 %v1127_v62, %v1127_v62 }
  0xe8   : > { %v1413_v9 = vunpack.c.l.b16 %v1078_v58  ;;  %v1414_v11 = vunpack.c.l.b16 %v1079_v59 }
  0xe9   : > { %1643 = vrot.lane.b32.xlu1 %v1440_v23, %s4554_s20  ;;  %v712_v46 = vmax.f32 %v680_v42, 0.0  ;;  %v1525_v17 = vunpack.c.l.b16 %v1223_v5  ;;  %v1526_v18 = vunpack.c.l.b16 %v1224_v6  ;;  %v466_v6 = vld [vmem:[%s3265_s15 + $0xd0] sm:$0xff] }
  0xea   : > { %v1441_v20 = vpack.c.b16 %v1414_v11, %v1413_v9  ;;  %v838_v25 = vld [vmem:[#allocation2 + $0x78] sm:$0xff] }
  0xeb   : > { %800 = vst.msk [vmem:[#allocation2 + $0x81] sm:$0xff] %vm489_vm1, %v712_v46  ;;  %v1553_v35 = vpack.c.b16 %v1526_v18, %v1525_v17  ;;  %v983_v36 = vrot.slane %v838_v25, 1  ;;  %v887_v43 = vpack.c.bf16 %v838_v25, %v838_v25  ;;  %v1128_v48 = vrot.slane %v838_v25, 2  ;;  %v467_v9 = vld [vmem:[%s3265_s15 + $0xd8] sm:$0xff] }
  0xec   : > { %1680 = vrot.lane.b32.xlu2 %v1552_v34, %s4569_s30  ;;  %1459 = vrot.lane.b32.xlu0 %v1440_v23, %s4558_s23  ;;  %v576_v54 = vpop.f32.mrf.mxu0 }
  0xed   : > { %v645_v55 = vmul.f32 %v3378_v27, %v576_v54  ;;  %v1335_v54 = vunpack.c.l.b16 %v887_v43 }
  0xef   : > { %v681_v60 = vadd.f32 %v3387_v28, %v645_v55 }
  0xf1   : > { %1571 = vrot.lane.b32.xlu1 %v1552_v34, %s4552_s24  ;;  %v713_v63 = vmax.f32 %v681_v60, 0.0 }
  0xf2   : > { %v839_v30 = vld [vmem:[#allocation2 + $0x80] sm:$0xff]  ;;  %v840_v23 = vld [vmem:[#allocation2 + $0x88] sm:$0x3] }
  0xf3   : > { %801 = vst.msk [vmem:[#allocation2 + $0x91] sm:$0xff] %vm489_vm1, %v713_v63  ;;  %v984_v37 = vrot.slane %v839_v30, 1  ;;  %v986_v38 = vrot.slane %v840_v23, 1  ;;  %v888_v44 = vpack.c.bf16 %v839_v30, %v839_v30  ;;  %v1129_v49 = vrot.slane %v839_v30, 2 }
  0xf4   : > { %1608 = vrot.lane.b32.xlu2 %v3553_v2, %s4568_s16  ;;  %1717 = vrot.lane.b32.xlu0 %v3553_v2, %s4550_s22  ;;  %v578_v12 = vpop.f32.mrf.mxu0  ;;  %s4570_s22 = smov 32   ;;  %v1131_v50 = vrot.slane %v840_v23, 2 }
  0xf5   : > { %v646_v14 = vmul.f32 %v3378_v27, %v578_v12  ;;  %v985_v45 = vsel %vm957_vm3, %v983_v36, %v984_v37  ;;  %v987_v46 = vsel %vm957_vm3, %v984_v37, %v986_v38  ;;  %v1336_v55 = vunpack.c.l.b16 %v888_v44 }
  0xf6   : > { %v1080_v52 = vpack.c.bf16 %v985_v45, %v985_v45  ;;  %v1081_v53 = vpack.c.bf16 %v987_v46, %v987_v46  ;;  %v1130_v56 = vsel %vm1102_vm4, %v1128_v48, %v1129_v49  ;;  %v1132_v57 = vsel %vm1102_vm4, %v1129_v49, %v1131_v50 }
  0xf7   : > { %v682_v24 = vadd.f32 %v3387_v28, %v646_v14  ;;  %v3581_v62 = vpack.c.b16 %v1336_v55, %v1335_v54  ;;  %v1225_v63 = vpack.c.bf16 %v1130_v56, %v1130_v56  ;;  %v1226_v0 = vpack.c.bf16 %v1132_v57, %v1132_v57 }
  0xf8   : > { %v1415_v60 = vunpack.c.l.b16 %v1080_v52  ;;  %v1416_v61 = vunpack.c.l.b16 %v1081_v53  ;;  %v3588_v12 = vpack.c.bf16 %v467_v9, %v466_v6  ;;  %v469_v6 = vld [vmem:[%s3265_s15 + $0xe8] sm:$0xff] }
  0xf9   : > { %1754 = vrot.lane.b32.xlu1 %v1441_v20, %s4556_s21  ;;  %v714_v34 = vmax.f32 %v682_v24, 0.0  ;;  %v1527_v14 = vunpack.c.l.b16 %v1225_v63  ;;  %v1528_v17 = vunpack.c.l.b16 %v1226_v0 }
  0xfa   : > { %v1442_v11 = vpack.c.b16 %v1416_v61, %v1415_v60  ;;  %2935 = vmatmul.msk.bf16.gmra.mxu0 %vm489_vm1, %v3588_v12  ;;  %v841_v24 = vld [vmem:[#allocation2 + $0x90] sm:$0xff] }
  0xfb   : > { %802 = vst.msk [vmem:[#allocation2 + $0x99] sm:$0xff] %vm489_vm1, %v714_v34  ;;  %v1554_v30 = vpack.c.b16 %v1528_v17, %v1527_v14  ;;  %v988_v38 = vrot.slane %v841_v24, 1 }
  0xfc   : > { %1791 = vrot.lane.b32.xlu2 %v1553_v35, %s4570_s22  ;;  %1645 = vrot.lane.b32.xlu0 %v1441_v20, %s4554_s20  ;;  %v581_v40 = vpop.f32.mrf.mxu0 }
  0xfd   : > { %v647_v42 = vmul.f32 %v3378_v27, %v581_v40 }
  0xff   : > { %v683_v47 = vadd.f32 %v3387_v28, %v647_v42  ;;  %v1133_v42 = vrot.slane %v841_v24, 2 }
 0x101   : > { %1682 = vrot.lane.b32.xlu1 %v1553_v35, %s4569_s30  ;;  %v715_v51 = vmax.f32 %v683_v47, 0.0 }
 0x102   : > { %v842_v25 = vld [vmem:[#allocation2 + $0x98] sm:$0xff]  ;;  %v843_v34 = vld [vmem:[#allocation2 + $0xa0] sm:$0x3] }
 0x103   : > { %803 = vst.msk [vmem:[#allocation2 + $0xa9] sm:$0xff] %vm489_vm1, %v715_v51  ;;  %v890_v36 = vpack.c.bf16 %v842_v25, %v842_v25  ;;  %v989_v40 = vrot.slane %v842_v25, 1  ;;  %v1134_v43 = vrot.slane %v842_v25, 2  ;;  %v991_v44 = vrot.slane %v843_v34, 1  ;;  %v3001_v25 = vld [vmem:[%s4572_s4 + $0x8] sm:$0xff] }
 0x104   : > { %1461 = vrot.lane.b32.xlu2 %v1441_v20, %s4558_s23  ;;  %1573 = vrot.lane.b32.xlu0 %v1553_v35, %s4552_s24  ;;  %v583_v58 = vpop.f32.mrf.mxu0  ;;  %s4571_s24 = smov 24   ;;  %v889_v35 = vpack.c.bf16 %v841_v24, %v841_v24  ;;  %v1136_v45 = vrot.slane %v843_v34, 2 }
 0x105   : > { %v648_v59 = vmul.f32 %v3378_v27, %v583_v58  ;;  %v1338_v48 = vunpack.c.l.b16 %v890_v36  ;;  %v990_v51 = vsel %vm957_vm3, %v988_v38, %v989_v40  ;;  %v992_v52 = vsel %vm957_vm3, %v989_v40, %v991_v44  ;;  %v1454_v36 = vpop.permute.xlu0 %1453  ;;  %v3000_v38 = vld [vmem:[%s4572_s4] sm:$0xff] }
 0x106   : > { %v1337_v47 = vunpack.c.l.b16 %v889_v35  ;;  %v1135_v53 = vsel %vm1102_vm4, %v1133_v42, %v1134_v43  ;;  %v1137_v54 = vsel %vm1102_vm4, %v1134_v43, %v1136_v45  ;;  %v1082_v57 = vpack.c.bf16 %v990_v51, %v990_v51 }
 0x107   : > { %v684_v1 = vadd.f32 %v3387_v28, %v648_v59  ;;  %v2102_v59 = vld [vmem:[%s4572_s4 + $0x10] sm:$0x3]  ;;  %v1083_v60 = vpack.c.bf16 %v992_v52, %v992_v52  ;;  %v1227_v61 = vpack.c.bf16 %v1135_v53, %v1135_v53  ;;  %v1228_v63 = vpack.c.bf16 %v1137_v54, %v1137_v54 }
 0x108   : > { %v3611_v56 = vpack.c.b16 %v1338_v48, %v1337_v47  ;;  %v2112_v0 = vunpack.c.l.b16 %v2102_v59  ;;  %v1417_v9 = vunpack.c.l.b16 %v1082_v57  ;;  %v878_v51 = vpack.c.bf16 %v3398_v32, %v3398_v32 }
 0x109   : > { %1610 = vrot.lane.b32.xlu1 %v3581_v62, %s4568_s16  ;;  %v716_v5 = vmax.f32 %v684_v1, 0.0  ;;  %v1418_v17 = vunpack.c.l.b16 %v1083_v60  ;;  %v877_v52 = vpack.c.bf16 %v3396_v31, %v3396_v31 }
 0x10a   : > { %v2115_v1 = vpack.c.b16 %v2112_v0, %v2112_v0  ;;  %v844_v40 = vld [vmem:[#allocation2 + $0xa8] sm:$0xff]  ;;  %v470_v0 = vld [vmem:[%s3265_s15 + $0xf0] sm:$0xff] }
 0x10b   : > { %804 = vst.msk [vmem:[#allocation2 + $0xb1] sm:$0xff] %vm489_vm1, %v716_v5  ;;  %v468_v5 = vld [vmem:[%s3265_s15 + $0xe0] sm:$0xff]  ;;  %v1443_v34 = vpack.c.b16 %v1418_v17, %v1417_v9  ;;  %v891_v54 = vpack.c.bf16 %v844_v40, %v844_v40  ;;  %v1138_v57 = vrot.slane %v844_v40, 2 }
 0x10c   : > { %1756 = vrot.lane.b32.xlu0 %v1442_v11, %s4556_s21  ;;  %1719 = vrot.lane.b32.xlu2 %v3581_v62, %s4571_s24  ;;  %v586_v18 = vpop.f32.mrf.mxu0  ;;  %v2152_v24 = vsel %vm538_vm0, %v2115_v1, 0  ;;  %v471_v1 = vld [vmem:[%s3265_s15 + $0xf8] sm:$0xff]  ;;  %s431_s15 = sand.u32 1, %s3118_s26  }
 0x10d   : > { %v649_v20 = vmul.f32 %v3378_v27, %v586_v18  ;;  %v1529_v18 = vunpack.c.l.b16 %v1227_v61  ;;  %2159 = vmatpush.bf16.msra.mxu1 %v2152_v24  ;;  %v1566_v32 = vpop.permute.xlu0 %1565  ;;  %v3657_v17 = vpack.c.bf16 %v471_v1, %v470_v0 }
 0x10f   : > { %v685_v23 = vadd.f32 %v3387_v28, %v649_v20  ;;  %v1530_v20 = vunpack.c.l.b16 %v1228_v63 }
 0x111   : > { %1793 = vrot.lane.b32.xlu1 %v1554_v30, %s4570_s22  ;;  %v717_v37 = vmax.f32 %v685_v23, 0.0  ;;  %v1555_v35 = vpack.c.b16 %v1530_v20, %v1529_v18  ;;  %2160 = vmatpush.bf16.msra.mxu1 %v3001_v25  ;;  %v1339_v20 = vunpack.c.l.b16 %v891_v54 }
 0x112   : > { %v845_v42 = vld [vmem:[#allocation2 + $0xb0] sm:$0xff]  ;;  %v846_v43 = vld [vmem:[#allocation2 + $0xb8] sm:$0x3] }
 0x113   : > { %805 = vst.msk [vmem:[#allocation2 + $0xc1] sm:$0xff] %vm489_vm1, %v717_v37  ;;  %v994_v47 = vrot.slane %v845_v42, 1  ;;  %v996_v48 = vrot.slane %v846_v43, 1  ;;  %v1139_v59 = vrot.slane %v845_v42, 2  ;;  %v1141_v61 = vrot.slane %v846_v43, 2 }
 0x114   : > { %1684 = vrot.lane.b32.xlu0 %v1554_v30, %s4569_s30  ;;  %1647 = vrot.lane.b32.xlu2 %v1442_v11, %s4554_s20  ;;  %v588_v46 = vpop.f32.mrf.mxu0  ;;  %s2919_s20 = sshll.u32 %s431_s15, 8 }
 0x115   : > { %v650_v49 = vmul.f32 %v3378_v27, %v588_v46  ;;  %v993_v46 = vrot.slane %v844_v40, 1  ;;  %2161 = vmatpush.bf16.msra.mxu1 %v3000_v38  ;;  %v997_v31 = vsel %vm957_vm3, %v994_v47, %v996_v48  ;;  %s4261_s21 = scalar_lea.vmem [#allocation3], %s2919_s20 }
 0x116   : > { %v3603_v50 = vpop.permute.xlu2 %1676  ;;  %s2850_s20 = sshll.u32 %s4261_s21, 4  ;;  %s2851_s20 = int_to_ptr.vmem [resolvable:$true] %s2850_s20 }
 0x117   : > { %v686_v55 = vadd.f32 %v3387_v28, %v650_v49  ;;  %v995_v60 = vsel %vm957_vm3, %v993_v46, %v994_v47 }
 0x118   : > { %v1084_v25 = vpack.c.bf16 %v995_v60, %v995_v60 }
 0x119   : > { %1463 = vrot.lane.b32.xlu1 %v1442_v11, %s4558_s23  ;;  %v718_v58 = vmax.f32 %v686_v55, 0.0  ;;  %v3622_v11 = vpack.c.bf16 %v469_v6, %v468_v5  ;;  %v892_v55 = vpack.c.bf16 %v845_v42, %v845_v42  ;;  %s4576_s23 = smov 4   ;;  %v1326_v5 = vunpack.c.l.b16 %v878_v51 }
 0x11a   : > { %v1325_v6 = vunpack.c.l.b16 %v877_v52 }
 0x11b   : > { %806 = vst.msk [vmem:[#allocation2 + $0xc9] sm:$0xff] %vm489_vm1, %v718_v58  ;;  %2936 = vmatmul.msk.bf16.gmra.mxu0 %vm489_vm1, %v3622_v11  ;;  %v1340_v24 = vunpack.c.l.b16 %v892_v55 }
 0x11c   : > { %1575 = vrot.lane.b32.xlu2 %v1554_v30, %s4573_s0  ;;  %1612 = vrot.lane.b32.xlu0 %v3611_v56, %s4568_s16  ;;  %v591_v30 = vpop.f32.mrf.mxu0 }
 0x11d   : > { %v651_v23 = vmul.f32 %v3378_v27, %v591_v30  ;;  %v1085_v30 = vpack.c.bf16 %v997_v31, %v997_v31  ;;  %v3667_v38 = vpack.c.b16 %v1340_v24, %v1339_v20 }
 0x11e   : > { %v3624_v14 = vpop.permute.xlu2 %1455 }
 0x11f   : > { %v687_v37 = vadd.f32 %v3387_v28, %v651_v23  ;;  %v1140_v23 = vsel %vm1102_vm4, %v1138_v57, %v1139_v59  ;;  %v1420_v46 = vunpack.c.l.b16 %v1085_v30 }
 0x120   : > { %v1229_v40 = vpack.c.bf16 %v1140_v23, %v1140_v23 }
 0x121   : > { %1721 = vrot.lane.b32.xlu1 %v3611_v56, %s4571_s24  ;;  %v719_v44 = vmax.f32 %v687_v37, 0.0  ;;  %v1142_v37 = vsel %vm1102_vm4, %v1139_v59, %v1141_v61  ;;  %v847_v59 = vld [vmem:[#allocation2 + $0xc0] sm:$0xff] }
 0x122   : > { %v1230_v42 = vpack.c.bf16 %v1142_v37, %v1142_v37  ;;  %v1531_v52 = vunpack.c.l.b16 %v1229_v40  ;;  %v848_v60 = vld [vmem:[#allocation2 + $0xc8] sm:$0xff]  ;;  %v849_v61 = vld [vmem:[#allocation2 + $0xd0] sm:$0x3]  ;;  %v998_v1 = vrot.slane %v847_v59, 1 }
 0x123   : > { %807 = vst.msk [vmem:[#allocation2 + $0xd9] sm:$0xff] %vm489_vm1, %v719_v44  ;;  %v1419_v44 = vunpack.c.l.b16 %v1084_v25  ;;  %v893_v25 = vpack.c.bf16 %v847_v59, %v847_v59  ;;  %v894_v30 = vpack.c.bf16 %v848_v60, %v848_v60 }
 0x124   : > { %1758 = vrot.lane.b32.xlu2 %v1443_v34, %s4574_s17  ;;  %1795 = vrot.lane.b32.xlu0 %v1555_v35, %s4570_s22  ;;  %v593_v49 = vpop.f32.mrf.mxu0 }
 0x125   : > { %v652_v53 = vmul.f32 %v3378_v27, %v593_v49  ;;  %v1444_v54 = vpack.c.b16 %v1420_v46, %v1419_v44  ;;  %v1146_v44 = vrot.slane %v849_v61, 2 }
 0x126   : > { %v3641_v45 = vpop.permute.xlu2 %1713 }
 0x127   : > { %v688_v63 = vadd.f32 %v3387_v28, %v652_v53  ;;  %v1532_v53 = vunpack.c.l.b16 %v1230_v42  ;;  %v1143_v42 = vrot.slane %v847_v59, 2 }
 0x129   : > { %1649 = vrot.lane.b32.xlu1 %v1443_v34, %s4575_s1  ;;  %v720_v9 = vmax.f32 %v688_v63, 0.0  ;;  %v1556_v63 = vpack.c.b16 %v1532_v53, %v1531_v52  ;;  %v1341_v52 = vunpack.c.l.b16 %v893_v25  ;;  %v1342_v53 = vunpack.c.l.b16 %v894_v30 }
 0x12b   : > { %v1603_v58 = vpop.permute.xlu1 %1602  ;;  %808 = vst.msk [vmem:[#allocation2 + $0xe1] sm:$0xff] %vm489_vm1, %v720_v9  ;;  %2937 = vmatmul.msk.bf16.gmra.mxu0 %vm489_vm1, %v3657_v17 }
 0x12c   : > { %1686 = vrot.lane.b32.xlu2 %v1555_v35, %s4569_s30  ;;  %1465 = vrot.lane.b32.xlu0 %v1443_v34, %s4576_s23  ;;  %v1357_v34 = vpack.c.b16 %v1326_v5, %v1325_v6  ;;  %v596_v47 = vpop.f32.mrf.mxu0  ;;  %v999_v5 = vrot.slane %v848_v60, 1  ;;  %v1001_v6 = vrot.slane %v849_v61, 1 }
 0x12d   : > { %v653_v49 = vmul.f32 %v3378_v27, %v596_v47 }
 0x12e   : > { %v3659_v18 = vpop.permute.xlu2 %1641  ;;  %v1821_v48 = vsel %vm489_vm1, %v1357_v34, %v1454_v36  ;;  %v1000_v37 = vsel %vm957_vm3, %v998_v1, %v999_v5  ;;  %v1002_v34 = vsel %vm957_vm3, %v999_v5, %v1001_v6 }
 0x12f   : > { %v689_v55 = vadd.f32 %v3387_v28, %v653_v49  ;;  %v1869_v57 = vsel %vm1867_vm5, %v1821_v48, %v1566_v32  ;;  %v1086_v47 = vpack.c.bf16 %v1000_v37, %v1000_v37 }
 0x130   : > { %v1902_v31 = vsel %vm1900_vm6, %v1869_v57, %v1603_v58 }
 0x131   : > { %1577 = vrot.lane.b32.xlu1 %v1555_v35, %s4573_s0  ;;  %v3675_v35 = vpop.permute.xlu0 %1567  ;;  %v721_v36 = vmax.f32 %v689_v55, 0.0 }
 0x133   : > { %v1640_v43 = vpop.permute.xlu1 %1639  ;;  %809 = vst.msk [vmem:[#allocation2 + $0xf1] sm:$0xff] %vm489_vm1, %v721_v36  ;;  %v3710_v36 = vpack.c.b16 %v1342_v53, %v1341_v52 }
 0x134   : > { %1614 = vrot.lane.b32.xlu2 %v3667_v38, %s4568_s16  ;;  %1723 = vrot.lane.b32.xlu0 %v3667_v38, %s4571_s24  ;;  %v1935_v32 = vsel %vm1933_vm7, %v1902_v31, %v1640_v43  ;;  %v598_v9 = vpop.f32.mrf.mxu0  ;;  %v1144_v43 = vrot.slane %v848_v60, 2  ;;  %v1421_v60 = vunpack.c.l.b16 %v1086_v47  ;;  %v852_v47 = vld [vmem:[#allocation2 + $0xe8] sm:$0x3] }
 0x135   : > { %v654_v20 = vmul.f32 %v3378_v27, %v598_v9  ;;  %v1968_v23 = vsel %vm1966_vm8, %v1935_v32, %v3603_v50  ;;  %v1087_v50 = vpack.c.bf16 %v1002_v34, %v1002_v34  ;;  %v3723_v32 = vld [vmem:[%s4533_s3] ss:$0 sm:$0xff] }
 0x136   : > { %v3677_v51 = vpop.permute.xlu2 %1569  ;;  %v2001_v46 = vsel %vm1999_vm9, %v1968_v23, %v3641_v45  ;;  %v1145_v55 = vsel %vm1102_vm4, %v1143_v42, %v1144_v43  ;;  %v1147_v45 = vsel %vm1102_vm4, %v1144_v43, %v1146_v44  ;;  %v1824_v23 = vsel %vm489_vm1, %v3473_v41, %v3624_v14  ;;  %v850_v42 = vld [vmem:[#allocation2 + $0xd8] sm:$0xff]  ;;  %v851_v43 = vld [vmem:[#allocation2 + $0xe0] sm:$0xff] }
 0x137   : > { %v690_v40 = vadd.f32 %v3387_v28, %v654_v20  ;;  %v1422_v61 = vunpack.c.l.b16 %v1087_v50  ;;  %v1231_v31 = vpack.c.bf16 %v1145_v55, %v1145_v55  ;;  %v1232_v1 = vpack.c.bf16 %v1147_v45, %v1147_v45 }
 0x138   : > { %v1871_v37 = vsel %vm1867_vm5, %v1824_v23, %v3675_v35  ;;  %v895_v41 = vpack.c.bf16 %v850_v42, %v850_v42  ;;  %v896_v14 = vpack.c.bf16 %v851_v43, %v851_v43  ;;  %v1003_v35 = vrot.slane %v850_v42, 1 }
 0x139   : > { %1760 = vrot.lane.b32.xlu1 %v1444_v54, %s4574_s17  ;;  %v722_v27 = vmax.f32 %v690_v40, 0.0  ;;  %v1445_v6 = vpack.c.b16 %v1422_v61, %v1421_v60  ;;  %v1534_v25 = vunpack.c.l.b16 %v1232_v1  ;;  %v1148_v52 = vrot.slane %v850_v42, 2 }
 0x13a   : > { %v1149_v55 = vrot.slane %v851_v43, 2  ;;  %v1006_v45 = vrot.slane %v852_v47, 1  ;;  %v1151_v60 = vrot.slane %v852_v47, 2  ;;  %v1343_v1 = vunpack.c.l.b16 %v895_v41 }
 0x13b   : > { %v3683_v0 = vpop.permute.xlu1 %1604  ;;  %810 = vst.msk [vmem:[#allocation2 + $0xf9] sm:$0xff] %vm489_vm1, %v722_v27 }
 0x13c   : > { %1797 = vrot.lane.b32.xlu2 %v1556_v63, %s4570_s22  ;;  %1651 = vrot.lane.b32.xlu0 %v1444_v54, %s4575_s1  ;;  %v1904_v44 = vsel %vm1900_vm6, %v1871_v37, %v3683_v0  ;;  %v1152_v23 = vsel %vm1102_vm4, %v1149_v55, %v1151_v60 }
 0x13e   : > { %v1751_v24 = vpop.permute.xlu0 %1750  ;;  %v3690_v58 = vpop.permute.xlu2 %1752 }
 0x13f   : > { %v2034_v48 = vsel %vm2032_vm10, %v2001_v46, %v1751_v24  ;;  %v1533_v24 = vunpack.c.l.b16 %v1231_v31 }
 0x141   : > { %1688 = vrot.lane.b32.xlu1 %v1556_v63, %s4569_s30  ;;  %v1557_v27 = vpack.c.b16 %v1534_v25, %v1533_v24 }
 0x143   : > { %v1788_v49 = vpop.permute.xlu1 %1787 }
 0x144   : > { %1467 = vrot.lane.b32.xlu2 %v1444_v54, %s4576_s23  ;;  %1579 = vrot.lane.b32.xlu0 %v1556_v63, %s4573_s0  ;;  %v2067_v28 = vsel %vm2065_vm11, %v2034_v48, %v1788_v49  ;;  %v601_v54 = vpop.f32.mrf.mxu0  ;;  %v3715_v63 = vld [vmem:[%s4532_s2] ss:$0 sm:$0xff]  ;;  %v1937_v48 = vsel %vm1933_vm7, %v1904_v44, %v3659_v18  ;;  %v1004_v49 = vrot.slane %v851_v43, 1  ;;  %v1234_v44 = vpack.c.bf16 %v1152_v23, %v1152_v23 }
 0x145   : > { %2946 = vmatmul.msk.bf16.vlgmr.msra.gmra.mxu1 %vm2118_vm12, %v2067_v28  ;;  %v655_v5 = vmul.f32 %v3715_v63, %v601_v54  ;;  %v1344_v54 = vunpack.c.l.b16 %v896_v14 }
 0x146   : > { %v1679_v57 = vpop.permute.xlu0 %1678  ;;  %v3708_v59 = vpop.permute.xlu2 %1680  ;;  %v1007_v25 = vsel %vm957_vm3, %v1004_v49, %v1006_v45 }
 0x147   : > { %v691_v9 = vadd.f32 %v3723_v32, %v655_v5  ;;  %v1970_v28 = vsel %vm1966_vm8, %v1937_v48, %v1679_v57  ;;  %v1005_v57 = vsel %vm957_vm3, %v1003_v35, %v1004_v49  ;;  %v1089_v42 = vpack.c.bf16 %v1007_v25, %v1007_v25 }
 0x148   : > { %v1088_v37 = vpack.c.bf16 %v1005_v57, %v1005_v57  ;;  %v1536_v49 = vunpack.c.l.b16 %v1234_v44 }
 0x149   : > { %1616 = vrot.lane.b32.xlu1 %v3710_v36, %s4568_s16  ;;  %v723_v30 = vmax.f32 %v691_v9, 0.0  ;;  %v1424_v35 = vunpack.c.l.b16 %v1089_v42 }
 0x14b   : > { %v3726_v20 = vpop.permute.xlu1 %1457  ;;  %811 = vst.msk [vmem:[#allocation2 + $0x109] sm:$0xff] %vm489_vm1, %v723_v30  ;;  %v1150_v30 = vsel %vm1102_vm4, %v1148_v52, %v1149_v55 }
 0x14c   : > { %1762 = vrot.lane.b32.xlu0 %v1445_v6, %s4574_s17  ;;  %1725 = vrot.lane.b32.xlu2 %v3710_v36, %s4571_s24  ;;  %v603_v46 = vpop.f32.mrf.mxu0  ;;  %v1233_v43 = vpack.c.bf16 %v1150_v30, %v1150_v30 }
 0x14d   : > { %v656_v50 = vmul.f32 %v3715_v63, %v603_v46 }
 0x14e   : > { %v3736_v34 = vpop.permute.xlu0 %1606  ;;  %v3738_v40 = vpop.permute.xlu2 %1608  ;;  %v1535_v48 = vunpack.c.l.b16 %v1233_v43 }
 0x14f   : > { %v692_v53 = vadd.f32 %v3723_v32, %v656_v50 }
 0x151   : > { %1799 = vrot.lane.b32.xlu1 %v1557_v27, %s4570_s22  ;;  %v724_v31 = vmax.f32 %v692_v53, 0.0 }
 0x153   : > { %v1716_v0 = vpop.permute.xlu1 %1715  ;;  %812 = vst.msk [vmem:[#allocation2 + $0x111] sm:$0xff] %vm489_vm1, %v724_v31 }
 0x154   : > { %v2003_v61 = vsel %vm1999_vm9, %v1970_v28, %v1716_v0  ;;  %1690 = vrot.lane.b32.xlu0 %v1557_v27, %s4569_s30  ;;  %1653 = vrot.lane.b32.xlu2 %v1445_v6, %s4575_s1  ;;  %v606_v47 = vpop.f32.mrf.mxu0  ;;  %v1558_v0 = vpack.c.b16 %v1536_v49, %v1535_v48 }
 0x155   : > { %v2036_v18 = vsel %vm2032_vm10, %v2003_v61, %v3690_v58  ;;  %v3764_v58 = vpack.c.b16 %v1344_v54, %v1343_v1  ;;  %v657_v50 = vmul.f32 %v3715_v63, %v606_v47  ;;  %v853_v61 = vld [vmem:[#allocation2 + $0xf0] sm:$0xff] }
 0x156   : > { %v1790_v5 = vpop.permute.xlu0 %1789  ;;  %v3754_v9 = vpop.permute.xlu2 %1791  ;;  %v1008_v57 = vrot.slane %v853_v61, 1  ;;  %v1153_v44 = vrot.slane %v853_v61, 2 }
 0x157   : > { %v2069_v24 = vsel %vm2065_vm11, %v2036_v18, %v1790_v5  ;;  %v693_v52 = vadd.f32 %v3723_v32, %v657_v50 }
 0x158   : > { %2947 = vmatmul.msk.bf16.gmra.mxu1 %vm2118_vm12, %v2069_v24 }
 0x159   : > { %1469 = vrot.lane.b32.xlu1 %v1445_v6, %s4576_s23  ;;  %v1423_v6 = vunpack.c.l.b16 %v1088_v37  ;;  %v725_v53 = vmax.f32 %v693_v52, 0.0  ;;  %v897_v37 = vpack.c.bf16 %v853_v61, %v853_v61 }
 0x15b   : > { %v1644_v46 = vpop.permute.xlu1 %1643  ;;  %v1446_v28 = vpack.c.b16 %v1424_v35, %v1423_v6  ;;  %813 = vst.msk [vmem:[#allocation2 + $0x121] sm:$0xff] %vm489_vm1, %v725_v53  ;;  %v1345_v52 = vunpack.c.l.b16 %v897_v37  ;;  %v856_v37 = vld [vmem:[#allocation2 + $0x108] sm:$0xff] }
 0x15c   : > { %1581 = vrot.lane.b32.xlu2 %v1557_v27, %s4573_s0  ;;  %1618 = vrot.lane.b32.xlu0 %v3764_v58, %s4568_s16  ;;  %v1827_v27 = vsel %vm489_vm1, %v3494_v21, %v3726_v20  ;;  %v608_v60 = vpop.f32.mrf.mxu0  ;;  %v854_v21 = vld [vmem:[#allocation2 + $0xf8] sm:$0xff]  ;;  %v855_v20 = vld [vmem:[#allocation2 + $0x100] sm:$0x3] }
 0x15d   : > { %v1873_v55 = vsel %vm1867_vm5, %v1827_v27, %v3677_v51  ;;  %v658_v31 = vmul.f32 %v3715_v63, %v608_v60  ;;  %v1009_v24 = vrot.slane %v854_v21, 1  ;;  %v1011_v25 = vrot.slane %v855_v20, 1 }
 0x15e   : > { %v3770_v41 = vpop.permute.xlu0 %1459  ;;  %v3772_v14 = vpop.permute.xlu2 %1461  ;;  %v1906_v18 = vsel %vm1900_vm6, %v1873_v55, %v3736_v34  ;;  %v898_v42 = vpack.c.bf16 %v854_v21, %v854_v21  ;;  %v1154_v47 = vrot.slane %v854_v21, 2  ;;  %v1156_v50 = vrot.slane %v855_v20, 2 }
 0x15f   : > { %v1939_v51 = vsel %vm1933_vm7, %v1906_v18, %v1644_v46  ;;  %v694_v5 = vadd.f32 %v3723_v32, %v658_v31  ;;  %v1010_v6 = vsel %vm957_vm3, %v1008_v57, %v1009_v24 }
 0x160   : > { %v1972_v23 = vsel %vm1966_vm8, %v1939_v51, %v3708_v59  ;;  %v1012_v59 = vsel %vm957_vm3, %v1009_v24, %v1011_v25  ;;  %v1346_v27 = vunpack.c.l.b16 %v898_v42  ;;  %v1090_v53 = vpack.c.bf16 %v1010_v6, %v1010_v6  ;;  %v857_v42 = vld [vmem:[#allocation2 + $0x110] sm:$0xff] }
 0x161   : > { %1727 = vrot.lane.b32.xlu1 %v3764_v58, %s4571_s24  ;;  %v726_v30 = vmax.f32 %v694_v5, 0.0  ;;  %v1091_v55 = vpack.c.bf16 %v1012_v59, %v1012_v59  ;;  %v1155_v60 = vsel %vm1102_vm4, %v1153_v44, %v1154_v47  ;;  %v1013_v6 = vrot.slane %v856_v37, 1 }
 0x162   : > { %v3812_v61 = vpack.c.b16 %v1346_v27, %v1345_v52  ;;  %v1235_v21 = vpack.c.bf16 %v1155_v60, %v1155_v60  ;;  %v1425_v18 = vunpack.c.l.b16 %v1090_v53  ;;  %v1014_v59 = vrot.slane %v857_v42, 1 }
 0x163   : > { %v3782_v45 = vpop.permute.xlu1 %1571  ;;  %814 = vst.msk [vmem:[#allocation2 + $0x129] sm:$0xff] %vm489_vm1, %v726_v30  ;;  %v900_v60 = vpack.c.bf16 %v857_v42, %v857_v42 }
 0x164   : > { %1764 = vrot.lane.b32.xlu2 %v1446_v28, %s4574_s17  ;;  %1801 = vrot.lane.b32.xlu0 %v1558_v0, %s4570_s22  ;;  %v1537_v24 = vunpack.c.l.b16 %v1235_v21  ;;  %v1015_v21 = vsel %vm957_vm3, %v1013_v6, %v1014_v59 }
 0x166   : > { %v1718_v1 = vpop.permute.xlu0 %1717  ;;  %v3790_v54 = vpop.permute.xlu2 %1719 }
 0x167   : > { %v2005_v34 = vsel %vm1999_vm9, %v1972_v23, %v1718_v1  ;;  %v1426_v1 = vunpack.c.l.b16 %v1091_v55  ;;  %v899_v55 = vpack.c.bf16 %v856_v37, %v856_v37 }
 0x169   : > { %1655 = vrot.lane.b32.xlu1 %v1446_v28, %s4575_s1  ;;  %v1447_v30 = vpack.c.b16 %v1426_v1, %v1425_v18  ;;  %v1158_v18 = vrot.slane %v856_v37, 2  ;;  %v1159_v1 = vrot.slane %v857_v42, 2 }
 0x16b   : > { %v1755_v43 = vpop.permute.xlu1 %1754  ;;  %v1160_v42 = vsel %vm1102_vm4, %v1158_v18, %v1159_v1 }
 0x16c   : > { %v2038_v46 = vsel %vm2032_vm10, %v2005_v34, %v1755_v43  ;;  %1692 = vrot.lane.b32.xlu2 %v1558_v0, %s4569_s30  ;;  %1471 = vrot.lane.b32.xlu0 %v1446_v28, %s4576_s23  ;;  %v1157_v28 = vsel %vm1102_vm4, %v1154_v47, %v1156_v50  ;;  %v858_v34 = vld [vmem:[#allocation2 + $0x118] sm:$0x3]  ;;  %v1830_v43 = vsel %vm489_vm1, %v3519_v3, %v3770_v41 }
 0x16d   : > { %v2071_v35 = vsel %vm2065_vm11, %v2038_v46, %v3754_v9  ;;  %v1236_v20 = vpack.c.bf16 %v1157_v28, %v1157_v28  ;;  %v611_v9 = vpop.f32.mrf.mxu0  ;;  %v1875_v44 = vsel %vm1867_vm5, %v1830_v43, %v3782_v45 }
 0x16e   : > { %2948 = vmatmul.msk.bf16.gmra.mxu1 %vm2118_vm12, %v2071_v35  ;;  %v1646_v48 = vpop.permute.xlu0 %1645  ;;  %v3807_v49 = vpop.permute.xlu2 %1647  ;;  %v659_v51 = vmul.f32 %v3715_v63, %v611_v9  ;;  %v1016_v35 = vrot.slane %v858_v34, 1  ;;  %v1908_v3 = vsel %vm1900_vm6, %v1875_v44, %v3738_v40 }
 0x16f   : > { %v1538_v25 = vunpack.c.l.b16 %v1236_v20  ;;  %v1941_v27 = vsel %vm1933_vm7, %v1908_v3, %v1646_v48  ;;  %v1092_v48 = vpack.c.bf16 %v1015_v21, %v1015_v21 }
 0x170   : > { %v695_v5 = vadd.f32 %v3723_v32, %v659_v51  ;;  %v1017_v20 = vsel %vm957_vm3, %v1014_v59, %v1016_v35  ;;  %v1161_v51 = vrot.slane %v858_v34, 2  ;;  %v1237_v59 = vpack.c.bf16 %v1160_v42, %v1160_v42 }
 0x171   : > { %1583 = vrot.lane.b32.xlu1 %v1558_v0, %s4573_s0  ;;  %v1559_v47 = vpack.c.b16 %v1538_v25, %v1537_v24  ;;  %v1347_v25 = vunpack.c.l.b16 %v899_v55  ;;  %v1427_v44 = vunpack.c.l.b16 %v1092_v48 }
 0x172   : > { %v727_v23 = vmax.f32 %v695_v5, 0.0  ;;  %v1093_v5 = vpack.c.bf16 %v1017_v20, %v1017_v20  ;;  %v1162_v34 = vsel %vm1102_vm4, %v1159_v1, %v1161_v51  ;;  %v1539_v3 = vunpack.c.l.b16 %v1237_v59  ;;  %v859_v20 = vld [vmem:[#allocation2 + $0x120] sm:$0xff] }
 0x173   : > { %v1683_v31 = vpop.permute.xlu1 %1682  ;;  %v1238_v35 = vpack.c.bf16 %v1162_v34, %v1162_v34  ;;  %v901_v48 = vpack.c.bf16 %v859_v20, %v859_v20 }
 0x174   : > { %1620 = vrot.lane.b32.xlu2 %v3812_v61, %s4568_s16  ;;  %1729 = vrot.lane.b32.xlu0 %v3812_v61, %s4571_s24  ;;  %815 = vst.msk [vmem:[#allocation2 + $0x139] sm:$0xff] %vm489_vm1, %v727_v23  ;;  %v1974_v28 = vsel %vm1966_vm8, %v1941_v27, %v1683_v31  ;;  %v1348_v23 = vunpack.c.l.b16 %v900_v60 }
 0x175   : > { %v613_v50 = vpop.f32.mrf.mxu0  ;;  %v2007_v40 = vsel %vm1999_vm9, %v1974_v28, %v3790_v54 }
 0x176   : > { %v3820_v57 = vpop.permute.xlu0 %1573  ;;  %v3822_v0 = vpop.permute.xlu2 %1575  ;;  %v660_v52 = vmul.f32 %v3715_v63, %v613_v50  ;;  %v1428_v50 = vunpack.c.l.b16 %v1093_v5  ;;  %v3856_v6 = vpack.c.b16 %v1348_v23, %v1347_v25 }
 0x178   : > { %v696_v41 = vadd.f32 %v3723_v32, %v660_v52 }
 0x179   : > { %1766 = vrot.lane.b32.xlu1 %v1447_v30, %s4574_s17 }
 0x17a   : > { %v728_v9 = vmax.f32 %v696_v41, 0.0  ;;  %v1540_v41 = vunpack.c.l.b16 %v1238_v35 }
 0x17b   : > { %v1611_v46 = vpop.permute.xlu1 %1610 }
 0x17c   : > { %1803 = vrot.lane.b32.xlu2 %v1559_v47, %s4570_s22  ;;  %1657 = vrot.lane.b32.xlu0 %v1447_v30, %s4575_s1  ;;  %816 = vst.msk [vmem:[#allocation2 + $0x141] sm:$0xff] %vm489_vm1, %v728_v9  ;;  %v860_v9 = vld [vmem:[#allocation2 + $0x128] sm:$0xff]  ;;  %v1560_v1 = vpack.c.b16 %v1540_v41, %v1539_v3 }
 0x17d   : > { %v1019_v5 = vrot.slane %v860_v9, 1 }
 0x17e   : > { %v1757_v45 = vpop.permute.xlu0 %1756  ;;  %v3838_v53 = vpop.permute.xlu2 %1758 }
 0x17f   : > { %v2040_v24 = vsel %vm2032_vm10, %v2007_v40, %v1757_v45  ;;  %v1833_v45 = vsel %vm489_vm1, %v3553_v2, %v3772_v14  ;;  %v861_v40 = vld [vmem:[#allocation2 + $0x130] sm:$0x3]  ;;  %v902_v2 = vpack.c.bf16 %v860_v9, %v860_v9  ;;  %v1018_v14 = vrot.slane %v859_v20, 1 }
 0x180   : > { %v1877_v60 = vsel %vm1867_vm5, %v1833_v45, %v3820_v57  ;;  %v1166_v42 = vrot.slane %v861_v40, 2 }
 0x181   : > { %1694 = vrot.lane.b32.xlu1 %v1559_v47, %s4569_s30  ;;  %v1910_v18 = vsel %vm1900_vm6, %v1877_v60, %v1611_v46  ;;  %v1350_v59 = vunpack.c.l.b16 %v902_v2  ;;  %v1020_v3 = vsel %vm957_vm3, %v1018_v14, %v1019_v5 }
 0x182   : > { %v1943_v57 = vsel %vm1933_vm7, %v1910_v18, %v3807_v49 }
 0x183   : > { %v1794_v31 = vpop.permute.xlu1 %1793 }
 0x184   : > { %1473 = vrot.lane.b32.xlu2 %v1447_v30, %s4576_s23  ;;  %1585 = vrot.lane.b32.xlu0 %v1559_v47, %s4573_s0  ;;  %v2073_v37 = vsel %vm2065_vm11, %v2040_v24, %v1794_v31  ;;  %v1448_v30 = vpack.c.b16 %v1428_v50, %v1427_v44  ;;  %v616_v47 = vpop.f32.mrf.mxu0  ;;  %v1163_v24 = vrot.slane %v859_v20, 2  ;;  %v1164_v31 = vrot.slane %v860_v9, 2 }
 0x185   : > { %2949 = vmatmul.msk.bf16.gmra.mxu1 %vm2118_vm12, %v2073_v37  ;;  %v661_v27 = vmul.f32 %v3715_v63, %v616_v47  ;;  %v1021_v37 = vrot.slane %v861_v40, 1  ;;  %v1349_v50 = vunpack.c.l.b16 %v901_v48  ;;  %v1094_v20 = vpack.c.bf16 %v1020_v3, %v1020_v3 }
 0x186   : > { %v1685_v54 = vpop.permute.xlu0 %1684  ;;  %v3854_v43 = vpop.permute.xlu2 %1686  ;;  %v1165_v41 = vsel %vm1102_vm4, %v1163_v24, %v1164_v31 }
 0x187   : > { %v697_v55 = vadd.f32 %v3723_v32, %v661_v27  ;;  %v1976_v23 = vsel %vm1966_vm8, %v1943_v57, %v1685_v54  ;;  %v1022_v45 = vsel %vm957_vm3, %v1019_v5, %v1021_v37  ;;  %v1239_v18 = vpack.c.bf16 %v1165_v41, %v1165_v41 }
 0x188   : > { %v1095_v9 = vpack.c.bf16 %v1022_v45, %v1022_v45  ;;  %v1429_v57 = vunpack.c.l.b16 %v1094_v20 }
 0x189   : > { %1622 = vrot.lane.b32.xlu1 %v3856_v6, %s4568_s16  ;;  %v729_v51 = vmax.f32 %v697_v55, 0.0  ;;  %v1167_v55 = vsel %vm1102_vm4, %v1164_v31, %v1166_v42  ;;  %v1541_v24 = vunpack.c.l.b16 %v1239_v18 }
 0x18a   : > { %v1430_v5 = vunpack.c.l.b16 %v1095_v9 }
 0x18b   : > { %v3860_v52 = vpop.permute.xlu1 %1463  ;;  %817 = vst.msk [vmem:[#allocation2 + $0x151] sm:$0xff] %vm489_vm1, %v729_v51  ;;  %v1240_v51 = vpack.c.bf16 %v1167_v55, %v1167_v55 }
 0x18c   : > { %1768 = vrot.lane.b32.xlu0 %v1448_v30, %s4574_s17  ;;  %1731 = vrot.lane.b32.xlu2 %v3856_v6, %s4571_s24  ;;  %v618_v25 = vpop.f32.mrf.mxu0 }
 0x18d   : > { %v662_v34 = vmul.f32 %v3715_v63, %v618_v25  ;;  %v1542_v31 = vunpack.c.l.b16 %v1240_v51 }
 0x18e   : > { %v3872_v28 = vpop.permute.xlu0 %1612  ;;  %v3874_v21 = vpop.permute.xlu2 %1614 }
 0x18f   : > { %v698_v35 = vadd.f32 %v3723_v32, %v662_v34  ;;  %v1561_v37 = vpack.c.b16 %v1542_v31, %v1541_v24 }
 0x191   : > { %1805 = vrot.lane.b32.xlu1 %v1560_v1, %s4570_s22  ;;  %v730_v60 = vmax.f32 %v698_v35, 0.0 }
 0x193   : > { %v1722_v46 = vpop.permute.xlu1 %1721  ;;  %818 = vst.msk [vmem:[#allocation2 + $0x159] sm:$0xff] %vm489_vm1, %v730_v60 }
 0x194   : > { %v2009_v44 = vsel %vm1999_vm9, %v1976_v23, %v1722_v46  ;;  %1696 = vrot.lane.b32.xlu0 %v1560_v1, %s4569_s30  ;;  %1659 = vrot.lane.b32.xlu2 %v1448_v30, %s4575_s1  ;;  %v1449_v46 = vpack.c.b16 %v1430_v5, %v1429_v57 }
 0x195   : > { %v2042_v49 = vsel %vm2032_vm10, %v2009_v44, %v3838_v53  ;;  %v3898_v53 = vpack.c.b16 %v1350_v59, %v1349_v50 }
 0x196   : > { %v1796_v47 = vpop.permute.xlu0 %1795  ;;  %v3889_v54 = vpop.permute.xlu2 %1797 }
 0x197   : > { %v2075_v27 = vsel %vm2065_vm11, %v2042_v49, %v1796_v47  ;;  %v862_v49 = vld [vmem:[#allocation2 + $0x138] sm:$0xff] }
 0x198   : > { %2950 = vmatmul.msk.bf16.gmra.mxu1 %vm2118_vm12, %v2075_v27  ;;  %v621_v48 = vpop.f32.mrf.mxu0  ;;  %v1023_v41 = vrot.slane %v862_v49, 1  ;;  %v903_v55 = vpack.c.bf16 %v862_v49, %v862_v49  ;;  %v1168_v18 = vrot.slane %v862_v49, 2 }
 0x199   : > { %1475 = vrot.lane.b32.xlu1 %v1448_v30, %s4576_s23  ;;  %v663_v2 = vmul.f32 %v3715_v63, %v621_v48 }
 0x19b   : > { %v1650_v40 = vpop.permute.xlu1 %1649  ;;  %v699_v25 = vadd.f32 %v3723_v32, %v663_v2 }
 0x19c   : > { %1587 = vrot.lane.b32.xlu2 %v1560_v1, %s4573_s0  ;;  %1624 = vrot.lane.b32.xlu0 %v3898_v53, %s4568_s16  ;;  %v1836_v1 = vsel %vm489_vm1, %v3581_v62, %v3860_v52  ;;  %v863_v62 = vld [vmem:[#allocation2 + $0x140] sm:$0xff]  ;;  %v864_v52 = vld [vmem:[#allocation2 + $0x148] sm:$0x3] }
 0x19d   : > { %v731_v23 = vmax.f32 %v699_v25, 0.0  ;;  %v1879_v42 = vsel %vm1867_vm5, %v1836_v1, %v3822_v0  ;;  %v1024_v27 = vrot.slane %v863_v62, 1  ;;  %v1026_v45 = vrot.slane %v864_v52, 1 }
 0x19e   : > { %v3905_v14 = vpop.permute.xlu0 %1465  ;;  %v3907_v30 = vpop.permute.xlu2 %1467  ;;  %v1912_v59 = vsel %vm1900_vm6, %v1879_v42, %v3872_v28  ;;  %v904_v9 = vpack.c.bf16 %v863_v62, %v863_v62  ;;  %v1169_v28 = vrot.slane %v863_v62, 2  ;;  %v1171_v2 = vrot.slane %v864_v52, 2 }
 0x19f   : > { %819 = vst.msk [vmem:[#allocation2 + $0x169] sm:$0xff] %vm489_vm1, %v731_v23  ;;  %v1945_v0 = vsel %vm1933_vm7, %v1912_v59, %v1650_v40  ;;  %v1025_v57 = vsel %vm957_vm3, %v1023_v41, %v1024_v27  ;;  %v1027_v5 = vsel %vm957_vm3, %v1024_v27, %v1026_v45  ;;  %v1351_v23 = vunpack.c.l.b16 %v903_v55 }
 0x1a0   : > { %v623_v44 = vpop.f32.mrf.mxu0  ;;  %v1978_v20 = vsel %vm1966_vm8, %v1945_v0, %v3854_v43  ;;  %v1352_v42 = vunpack.c.l.b16 %v904_v9  ;;  %v1097_v49 = vpack.c.bf16 %v1027_v5, %v1027_v5  ;;  %v1172_v62 = vsel %vm1102_vm4, %v1169_v28, %v1171_v2  ;;  %v867_v5 = vld [vmem:[#allocation2 + $0x160] sm:$0x3] }
 0x1a1   : > { %1733 = vrot.lane.b32.xlu1 %v3898_v53, %s4571_s24  ;;  %v664_v50 = vmul.f32 %v3715_v63, %v623_v44  ;;  %v1170_v44 = vsel %vm1102_vm4, %v1168_v18, %v1169_v28  ;;  %v1242_v27 = vpack.c.bf16 %v1172_v62, %v1172_v62 }
 0x1a2   : > { %v1241_v41 = vpack.c.bf16 %v1170_v44, %v1170_v44  ;;  %v1031_v44 = vrot.slane %v867_v5, 1 }
 0x1a3   : > { %v3917_v34 = vpop.permute.xlu1 %1577  ;;  %v700_v3 = vadd.f32 %v3723_v32, %v664_v50  ;;  %v2576_v50 = vld [vmem:[%s4540_s10] sm:$0x3] }
 0x1a4   : > { %1770 = vrot.lane.b32.xlu2 %v1449_v46, %s4574_s17  ;;  %1807 = vrot.lane.b32.xlu0 %v1561_v37, %s4570_s22  ;;  %v1543_v28 = vunpack.c.l.b16 %v1241_v41 }
 0x1a5   : > { %v732_v60 = vmax.f32 %v700_v3, 0.0  ;;  %v3957_v3 = vpack.c.b16 %v1352_v42, %v1351_v23 }
 0x1a6   : > { %v1724_v35 = vpop.permute.xlu0 %1723  ;;  %v3925_v47 = vpop.permute.xlu2 %1725 }
 0x1a7   : > { %v2011_v51 = vsel %vm1999_vm9, %v1978_v20, %v1724_v35  ;;  %820 = vst.msk [vmem:[#allocation2 + $0x171] sm:$0xff] %vm489_vm1, %v732_v60  ;;  %v2578_v35 = vsel %vm538_vm0, %v2576_v50, 0  ;;  %v1432_v60 = vunpack.c.l.b16 %v1097_v49 }
 0x1a8   : > { %v626_v43 = vpop.f32.mrf.mxu0  ;;  %2587 = vmatpush.bf16.msra.mxu3 %v2578_v35  ;;  %v1176_v35 = vrot.slane %v867_v5, 2  ;;  %v4014_v5 = vld [vmem:[%s4536_s6] ss:$0 sm:$0xff] }
 0x1a9   : > { %1661 = vrot.lane.b32.xlu1 %v1449_v46, %s4575_s1  ;;  %v665_v31 = vmul.f32 %v3715_v63, %v626_v43  ;;  %v1839_v43 = vsel %vm489_vm1, %v3611_v56, %v3905_v14 }
 0x1ab   : > { %v1761_v48 = vpop.permute.xlu1 %1760  ;;  %v701_v52 = vadd.f32 %v3723_v32, %v665_v31  ;;  %2978 = vmatmul.msk.bf16.vlgmr.msra.gmra.mxu3 %vm489_vm1, %v3269_v4  ;;  %v1881_v4 = vsel %vm1867_vm5, %v1839_v43, %v3917_v34 }
 0x1ac   : > { %v2044_v40 = vsel %vm2032_vm10, %v2011_v51, %v1761_v48  ;;  %1698 = vrot.lane.b32.xlu2 %v1561_v37, %s4569_s30  ;;  %1477 = vrot.lane.b32.xlu0 %v1449_v46, %s4576_s23  ;;  %v1096_v46 = vpack.c.bf16 %v1025_v57, %v1025_v57  ;;  %v1544_v51 = vunpack.c.l.b16 %v1242_v27  ;;  %v866_v57 = vld [vmem:[#allocation2 + $0x158] sm:$0xff]  ;;  %v1914_v56 = vsel %vm1900_vm6, %v1881_v4, %v3874_v21 }
 0x1ad   : > { %v2077_v24 = vsel %vm2065_vm11, %v2044_v40, %v3889_v54  ;;  %v2363_v54 = vld [vmem:[%s4537_s7] sm:$0x3]  ;;  %v733_v0 = vmax.f32 %v701_v52, 0.0  ;;  %v865_v40 = vld [vmem:[#allocation2 + $0x150] sm:$0xff]  ;;  %v1029_v42 = vrot.slane %v866_v57, 1  ;;  %v906_v62 = vpack.c.bf16 %v866_v57, %v866_v57 }
 0x1ae   : > { %2951 = vmatmul.msk.bf16.gmra.mxu1 %vm2118_vm12, %v2077_v24  ;;  %v1652_v25 = vpop.permute.xlu0 %1651  ;;  %v3943_v1 = vpop.permute.xlu2 %1653  ;;  %v2413_v59 = vsel %vm538_vm0, %v2363_v54, 0  ;;  %v1431_v55 = vunpack.c.l.b16 %v1096_v46  ;;  %v1562_v24 = vpack.c.b16 %v1544_v51, %v1543_v28  ;;  %v1028_v23 = vrot.slane %v865_v40, 1 }
 0x1af   : > { %2422 = vmatpush.bf16.msra.mxu2 %v2413_v59  ;;  %821 = vst.msk [vmem:[#allocation2 + $0x181] sm:$0xff] %vm489_vm1, %v733_v0  ;;  %v905_v34 = vpack.c.bf16 %v865_v40, %v865_v40  ;;  %v1032_v54 = vsel %vm957_vm3, %v1029_v42, %v1031_v44  ;;  %v1173_v50 = vrot.slane %v865_v40, 2  ;;  %v1174_v59 = vrot.slane %v866_v57, 2 }
 0x1b0   : > { %v628_v20 = vpop.f32.mrf.mxu0  ;;  %v1450_v48 = vpack.c.b16 %v1432_v60, %v1431_v55  ;;  %v1030_v52 = vsel %vm957_vm3, %v1028_v23, %v1029_v42  ;;  %v1099_v41 = vpack.c.bf16 %v1032_v54, %v1032_v54 }
 0x1b1   : > { %1589 = vrot.lane.b32.xlu1 %v1561_v37, %s4573_s0  ;;  %v666_v37 = vmul.f32 %v3715_v63, %v628_v20  ;;  %v1098_v0 = vpack.c.bf16 %v1030_v52, %v1030_v52  ;;  %v1353_v60 = vunpack.c.l.b16 %v905_v34  ;;  %v1354_v20 = vunpack.c.l.b16 %v906_v62  ;;  %v869_v62 = vld [vmem:[#allocation2 + $0x170] sm:$0xff] }
 0x1b2   : > { %v1177_v28 = vsel %vm1102_vm4, %v1174_v59, %v1176_v35  ;;  %v1434_v57 = vunpack.c.l.b16 %v1099_v41 }
 0x1b3   : > { %v1689_v45 = vpop.permute.xlu1 %1688  ;;  %v702_v2 = vadd.f32 %v3723_v32, %v666_v37  ;;  %v1947_v32 = vsel %vm1933_vm7, %v1914_v56, %v1652_v25  ;;  %v1433_v40 = vunpack.c.l.b16 %v1098_v0  ;;  %v4016_v43 = vpack.c.b16 %v1354_v20, %v1353_v60  ;;  %v870_v0 = vld [vmem:[#allocation2 + $0x178] sm:$0x3] }
 0x1b4   : > { %1626 = vrot.lane.b32.xlu2 %v3957_v3, %s4568_s16  ;;  %1735 = vrot.lane.b32.xlu0 %v3957_v3, %s4571_s24  ;;  %v1980_v49 = vsel %vm1966_vm8, %v1947_v32, %v1689_v45  ;;  %v3998_v45 = vld [vmem:[%s4535_s5] ss:$0 sm:$0xff]  ;;  %v1244_v4 = vpack.c.bf16 %v1177_v28, %v1177_v28  ;;  %v1179_v20 = vrot.slane %v869_v62, 2 }
 0x1b5   : > { %v734_v63 = vmax.f32 %v702_v2, 0.0  ;;  %v2013_v21 = vsel %vm1999_vm9, %v1980_v49, %v3925_v47  ;;  %v1175_v47 = vsel %vm1102_vm4, %v1173_v50, %v1174_v59  ;;  %v868_v49 = vld [vmem:[#allocation2 + $0x168] sm:$0xff] }
 0x1b6   : > { %v3967_v9 = vpop.permute.xlu0 %1579  ;;  %v3969_v18 = vpop.permute.xlu2 %1581  ;;  %v1546_v32 = vunpack.c.l.b16 %v1244_v4  ;;  %v907_v41 = vpack.c.bf16 %v868_v49, %v868_v49  ;;  %v1178_v60 = vrot.slane %v868_v49, 2 }
 0x1b7   : > { %822 = vst.msk [vmem:[#allocation2 + $0x189] sm:$0xff] %vm489_vm1, %v734_v63  ;;  %v1243_v63 = vpack.c.bf16 %v1175_v47, %v1175_v47  ;;  %v1181_v47 = vrot.slane %v870_v0, 2 }
 0x1b9   : > { %1772 = vrot.lane.b32.xlu1 %v1450_v48, %s4574_s17  ;;  %v1545_v56 = vunpack.c.l.b16 %v1243_v63  ;;  %v1355_v63 = vunpack.c.l.b16 %v907_v41 }
 0x1bb   : > { %v3978_v31 = vpop.permute.xlu1 %1616  ;;  %2979 = vmatmul.msk.bf16.gmra.mxu3 %vm489_vm1, %v3275_v7 }
 0x1bc   : > { %1809 = vrot.lane.b32.xlu2 %v1562_v24, %s4570_s22  ;;  %1663 = vrot.lane.b32.xlu0 %v1450_v48, %s4575_s1 }
 0x1be   : > { %v1763_v14 = vpop.permute.xlu0 %1762  ;;  %v3986_v46 = vpop.permute.xlu2 %1764 }
 0x1bf   : > { %v2046_v27 = vsel %vm2032_vm10, %v2013_v21, %v1763_v14  ;;  %v1842_v14 = vsel %vm489_vm1, %v3667_v38, %v3907_v30  ;;  %v908_v38 = vpack.c.bf16 %v869_v62, %v869_v62 }
 0x1c0   : > { %v1883_v52 = vsel %vm1867_vm5, %v1842_v14, %v3967_v9 }
 0x1c1   : > { %1700 = vrot.lane.b32.xlu1 %v1562_v24, %s4569_s30  ;;  %v1916_v59 = vsel %vm1900_vm6, %v1883_v52, %v3978_v31 }
 0x1c2   : > { %v2163_v25 = vpop.f32.mrf.mxu1  ;;  %v1949_v9 = vsel %vm1933_vm7, %v1916_v59, %v3943_v1  ;;  %v1356_v1 = vunpack.c.l.b16 %v908_v38  ;;  %v871_v59 = vld [vmem:[#allocation2 + $0x180] sm:$0xff]  ;;  %v872_v38 = vld [vmem:[#allocation2 + $0x188] sm:$0xff] }
 0x1c3   : > { %v1800_v55 = vpop.permute.xlu1 %1799 }
 0x1c4   : > { %1479 = vrot.lane.b32.xlu2 %v1450_v48, %s4576_s23  ;;  %1591 = vrot.lane.b32.xlu0 %v1562_v24, %s4573_s0  ;;  %v2079_v37 = vsel %vm2065_vm11, %v2046_v27, %v1800_v55  ;;  %v2247_v48 = vmul.f32 %v3998_v45, %v2163_v25  ;;  %v1451_v24 = vpack.c.b16 %v1434_v57, %v1433_v40  ;;  %v1033_v27 = vrot.slane %v868_v49, 1 }
 0x1c5   : > { %2952 = vmatmul.msk.bf16.gmra.mxu1 %vm2118_vm12, %v2079_v37  ;;  %v1563_v25 = vpack.c.b16 %v1546_v32, %v1545_v56  ;;  %v1034_v55 = vrot.slane %v869_v62, 1  ;;  %v1036_v37 = vrot.slane %v870_v0, 1  ;;  %v1182_v56 = vsel %vm1102_vm4, %v1179_v20, %v1181_v47 }
 0x1c6   : > { %v1691_v51 = vpop.permute.xlu0 %1690  ;;  %v4008_v2 = vpop.permute.xlu2 %1692  ;;  %v2283_v23 = vadd.f32 %v4014_v5, %v2247_v48  ;;  %v4061_v62 = vpack.c.b16 %v1356_v1, %v1355_v63  ;;  %v1253_v47 = vrot.slane %v872_v38, 1 }
 0x1c7   : > { %v1982_v31 = vsel %vm1966_vm8, %v1949_v9, %v1691_v51 }
 0x1c8   : > { %v2315_v35 = vmax.f32 %v2283_v23, 0.0  ;;  %v1037_v23 = vsel %vm957_vm3, %v1034_v55, %v1036_v37 }
 0x1c9   : > { %1628 = vrot.lane.b32.xlu1 %v4016_v43, %s4568_s16  ;;  %v1101_v14 = vpack.c.bf16 %v1037_v23, %v1037_v23 }
 0x1ca   : > { %v2165_v7 = vpop.f32.mrf.mxu1 }
 0x1cb   : > { %v2248_v42 = vmul.f32 %v3998_v45, %v2165_v7  ;;  %v4022_v44 = vpop.permute.xlu1 %1469  ;;  %2980 = vmatmul.msk.bf16.gmra.mxu3 %vm489_vm1, %v3281_v10  ;;  %v1035_v7 = vsel %vm957_vm3, %v1033_v27, %v1034_v55  ;;  %v1436_v0 = vunpack.c.l.b16 %v1101_v14 }
 0x1cc   : > { %1774 = vrot.lane.b32.xlu0 %v1451_v24, %s4574_s17  ;;  %1737 = vrot.lane.b32.xlu2 %v4016_v43, %s4571_s24 }
 0x1cd   : > { %v2284_v34 = vadd.f32 %v4014_v5, %v2248_v42  ;;  %v1180_v42 = vsel %vm1102_vm4, %v1178_v60, %v1179_v20  ;;  %v1845_v20 = vsel %vm489_vm1, %v3710_v36, %v4022_v44 }
 0x1ce   : > { %v4033_v54 = vpop.permute.xlu0 %1618  ;;  %v4035_v50 = vpop.permute.xlu2 %1620  ;;  %v1245_v10 = vpack.c.bf16 %v1180_v42, %v1180_v42  ;;  %v1885_v23 = vsel %vm1867_vm5, %v1845_v20, %v3969_v18 }
 0x1cf   : > { %v2316_v21 = vmax.f32 %v2284_v34, 0.0  ;;  %v1246_v34 = vpack.c.bf16 %v1182_v56, %v1182_v56 }
 0x1d0   : > { %v1547_v41 = vunpack.c.l.b16 %v1245_v10 }
 0x1d1   : > { %1811 = vrot.lane.b32.xlu1 %v1563_v25, %s4570_s22  ;;  %v2347_v30 = vpack.c.bf16 %v2316_v21, %v2315_v35 }
 0x1d3   : > { %2962 = vmatmul.msk.bf16.vlgmr.msra.gmra.mxu2 %vm489_vm1, %v2347_v30  ;;  %v1728_v28 = vpop.permute.xlu1 %1727  ;;  %v873_v30 = vld [vmem:[#allocation2 + $0x190] sm:$0x3] }
 0x1d4   : > { %v2015_v40 = vsel %vm1999_vm9, %v1982_v31, %v1728_v28  ;;  %1702 = vrot.lane.b32.xlu0 %v1563_v25, %s4569_s30  ;;  %1665 = vrot.lane.b32.xlu2 %v1451_v24, %s4575_s1  ;;  %v1255_v31 = vrot.slane %v873_v30, 1  ;;  %v1264_v44 = vrot.slane %v873_v30, 2 }
 0x1d5   : > { %v2168_v57 = vpop.f32.mrf.mxu1  ;;  %v2048_v48 = vsel %vm2032_vm10, %v2015_v40, %v3986_v46  ;;  %v1100_v46 = vpack.c.bf16 %v1035_v7, %v1035_v7  ;;  %v1262_v7 = vrot.slane %v872_v38, 2 }
 0x1d6   : > { %v1802_v4 = vpop.permute.xlu0 %1801  ;;  %v4051_v51 = vpop.permute.xlu2 %1803  ;;  %v2249_v49 = vmul.f32 %v3998_v45, %v2168_v57  ;;  %v1247_v57 = vpack.c.bf16 %v871_v59, %v871_v59 }
 0x1d7   : > { %v2081_v32 = vsel %vm2065_vm11, %v2048_v48, %v1802_v4  ;;  %v1435_v21 = vunpack.c.l.b16 %v1100_v46  ;;  %v1248_v48 = vpack.c.bf16 %v872_v38, %v872_v38  ;;  %v1261_v4 = vrot.slane %v871_v59, 2 }
 0x1d8   : > { %2953 = vmatmul.msk.bf16.gmra.mxu1 %vm2118_vm12, %v2081_v32  ;;  %v2285_v27 = vadd.f32 %v4014_v5, %v2249_v49  ;;  %v1256_v32 = vsel %vm957_vm3, %v1253_v47, %v1255_v31  ;;  %v1918_v46 = vsel %vm1900_vm6, %v1885_v23, %v4033_v54  ;;  %v1599_v10 = vunpack.c.l.b16 %v1247_v57  ;;  %v874_v57 = vld [vmem:[#allocation2 + $0x198] sm:$0xff] }
 0x1d9   : > { %1481 = vrot.lane.b32.xlu1 %v1451_v24, %s4576_s23  ;;  %v1548_v24 = vunpack.c.l.b16 %v1246_v34  ;;  %v1452_v28 = vpack.c.b16 %v1436_v0, %v1435_v21  ;;  %v1600_v34 = vunpack.c.l.b16 %v1248_v48  ;;  %v1263_v49 = vsel %vm1102_vm4, %v1261_v4, %v1262_v7  ;;  %v875_v48 = vld [vmem:[#allocation2 + $0x1a0] sm:$0xff] }
 0x1da   : > { %v2317_v63 = vmax.f32 %v2285_v27, 0.0  ;;  %v1260_v21 = vpack.c.bf16 %v1256_v32, %v1256_v32  ;;  %v1265_v0 = vsel %vm1102_vm4, %v1262_v7, %v1264_v44  ;;  %v1275_v7 = vrot.slane %v874_v57, 1 }
 0x1db   : > { %v1656_v52 = vpop.permute.xlu1 %1655  ;;  %v4078_v40 = vpack.c.b16 %v1548_v24, %v1547_v41  ;;  %2981 = vmatmul.msk.bf16.gmra.mxu3 %vm489_vm1, %v3287_v13  ;;  %v1601_v54 = vpack.c.b16 %v1600_v34, %v1599_v10  ;;  %v1268_v41 = vpack.c.bf16 %v1263_v49, %v1263_v49  ;;  %v1269_v24 = vpack.c.bf16 %v1265_v0, %v1265_v0 }
 0x1dc   : > { %1593 = vrot.lane.b32.xlu2 %v1563_v25, %s4573_s0  ;;  %1630 = vrot.lane.b32.xlu0 %v4061_v62, %s4568_s16  ;;  %v1252_v25 = vrot.slane %v871_v59, 1  ;;  %v1951_v59 = vsel %vm1933_vm7, %v1918_v46, %v1656_v52  ;;  %v1276_v23 = vrot.slane %v875_v48, 1 }
 0x1dd   : > { %v2170_v35 = vpop.f32.mrf.mxu1  ;;  %v1984_v13 = vsel %vm1966_vm8, %v1951_v59, %v4008_v2  ;;  %v1674_v31 = vunpack.c.l.b16 %v1269_v24 }
 0x1de   : > { %v2250_v55 = vmul.f32 %v3998_v45, %v2170_v35  ;;  %v4068_v60 = vpop.permute.xlu0 %1471  ;;  %v4070_v9 = vpop.permute.xlu2 %1473  ;;  %v1254_v56 = vsel %vm957_vm3, %v1252_v25, %v1253_v47  ;;  %v1637_v25 = vunpack.c.l.b16 %v1260_v21  ;;  %v1673_v47 = vunpack.c.l.b16 %v1268_v41 }
 0x1df   : > { %v1259_v35 = vpack.c.bf16 %v1254_v56, %v1254_v56  ;;  %v1285_v21 = vrot.slane %v875_v48, 2 }
 0x1e0   : > { %v2286_v37 = vadd.f32 %v4014_v5, %v2250_v55 }
 0x1e1   : > { %1739 = vrot.lane.b32.xlu1 %v4061_v62, %s4571_s24  ;;  %v1636_v55 = vunpack.c.l.b16 %v1259_v35  ;;  %v1284_v35 = vrot.slane %v874_v57, 2 }
 0x1e2   : > { %v2318_v1 = vmax.f32 %v2286_v37, 0.0 }
 0x1e3   : > { %v4082_v36 = vpop.permute.xlu1 %1583 }
 0x1e4   : > { %1776 = vrot.lane.b32.xlu2 %v1452_v28, %s4574_s17  ;;  %1813 = vrot.lane.b32.xlu0 %v4078_v40, %s4570_s22  ;;  %v2348_v42 = vpack.c.bf16 %v2318_v1, %v2317_v63  ;;  %v876_v63 = vld [vmem:[#allocation2 + $0x1a8] sm:$0x3]  ;;  %v1638_v1 = vpack.c.b16 %v1637_v25, %v1636_v55  ;;  %v1286_v25 = vsel %vm1102_vm4, %v1284_v35, %v1285_v21 }
 0x1e5   : > { %v1278_v44 = vrot.slane %v876_v63, 1  ;;  %v1287_v0 = vrot.slane %v876_v63, 2 }
 0x1e6   : > { %2963 = vmatmul.msk.bf16.gmra.mxu2 %vm489_vm1, %v2348_v42  ;;  %v1730_v18 = vpop.permute.xlu0 %1729  ;;  %v4094_v14 = vpop.permute.xlu2 %1731  ;;  %v1675_v42 = vpack.c.b16 %v1674_v31, %v1673_v47  ;;  %v1291_v31 = vpack.c.bf16 %v1286_v25, %v1286_v25 }
 0x1e7   : > { %v2017_v38 = vsel %vm1999_vm9, %v1984_v13, %v1730_v18  ;;  %v1277_v18 = vsel %vm957_vm3, %v1275_v7, %v1276_v23  ;;  %v1279_v10 = vsel %vm957_vm3, %v1276_v23, %v1278_v44  ;;  %v1848_v13 = vsel %vm489_vm1, %v3764_v58, %v4068_v60 }
 0x1e8   : > { %v1282_v24 = vpack.c.bf16 %v1277_v18, %v1277_v18  ;;  %v1784_v44 = vunpack.c.l.b16 %v1291_v31 }
 0x1e9   : > { %1667 = vrot.lane.b32.xlu1 %v1452_v28, %s4575_s1 }
 0x1eb   : > { %v2173_v30 = vpop.f32.mrf.mxu1  ;;  %v1767_v27 = vpop.permute.xlu1 %1766  ;;  %2982 = vmatmul.msk.bf16.gmra.mxu3 %vm489_vm1, %v3293_v16  ;;  %v1283_v16 = vpack.c.bf16 %v1279_v10, %v1279_v10 }
 0x1ec   : > { %v2050_v52 = vsel %vm2032_vm10, %v2017_v38, %v1767_v27  ;;  %1704 = vrot.lane.b32.xlu2 %v4078_v40, %s4569_s30  ;;  %1741 = vrot.lane.b32.xlu0 %v1601_v54, %s4571_s24  ;;  %v2251_v4 = vmul.f32 %v3998_v45, %v2173_v30  ;;  %v1887_v38 = vsel %vm1867_vm5, %v1848_v13, %v4082_v36 }
 0x1ed   : > { %v2083_v20 = vsel %vm2065_vm11, %v2050_v52, %v4051_v51  ;;  %v1270_v30 = vpack.c.bf16 %v874_v57, %v874_v57  ;;  %v1271_v27 = vpack.c.bf16 %v875_v48, %v875_v48  ;;  %v1288_v52 = vsel %vm1102_vm4, %v1285_v21, %v1287_v0 }
 0x1ee   : > { %2954 = vmatmul.msk.bf16.gmra.mxu1 %vm2118_vm12, %v2083_v20  ;;  %v1658_v2 = vpop.permute.xlu0 %1657  ;;  %v4110_v37 = vpop.permute.xlu2 %1659  ;;  %v2287_v32 = vadd.f32 %v4014_v5, %v2251_v4  ;;  %v1920_v58 = vsel %vm1900_vm6, %v1887_v38, %v4035_v50  ;;  %v1748_v47 = vunpack.c.l.b16 %v1283_v16  ;;  %v1292_v57 = vpack.c.bf16 %v1288_v52, %v1288_v52 }
 0x1ef   : > { %v1710_v60 = vunpack.c.l.b16 %v1270_v30  ;;  %v1711_v36 = vunpack.c.l.b16 %v1271_v27  ;;  %v1953_v48 = vsel %vm1933_vm7, %v1920_v58, %v1658_v2  ;;  %v1851_v0 = vsel %vm489_vm1, %v3812_v61, %v4070_v9 }
 0x1f1   : > { %1778 = vrot.lane.b32.xlu1 %v1638_v1, %s4574_s17  ;;  %v1712_v23 = vpack.c.b16 %v1711_v36, %v1710_v60 }
 0x1f3   : > { %v2175_v51 = vpop.f32.mrf.mxu1  ;;  %v1695_v56 = vpop.permute.xlu1 %1694 }
 0x1f4   : > { %v2252_v46 = vmul.f32 %v3998_v45, %v2175_v51  ;;  %1815 = vrot.lane.b32.xlu2 %v1675_v42, %s4570_s22  ;;  %1483 = vrot.lane.b32.xlu0 %v1452_v28, %s4576_s23  ;;  %v2319_v28 = vmax.f32 %v2287_v32, 0.0  ;;  %v1986_v4 = vsel %vm1966_vm8, %v1953_v48, %v1695_v56 }
 0x1f5   : > { %v2019_v51 = vsel %vm1999_vm9, %v1986_v4, %v4094_v14 }
 0x1f6   : > { %v2288_v34 = vadd.f32 %v4014_v5, %v2252_v46  ;;  %v1586_v49 = vpop.permute.xlu0 %1585  ;;  %v4123_v59 = vpop.permute.xlu2 %1587 }
 0x1f8   : > { %v2320_v41 = vmax.f32 %v2288_v34, 0.0 }
 0x1f9   : > { %1595 = vrot.lane.b32.xlu1 %v4078_v40, %s4573_s0  ;;  %v1747_v40 = vunpack.c.l.b16 %v1282_v24 }
 0x1fa   : > { %v2349_v55 = vpack.c.bf16 %v2320_v41, %v2319_v28  ;;  %v1889_v28 = vsel %vm1867_vm5, %v1851_v0, %v1586_v49 }
 0x1fb   : > { %v1623_v20 = vpop.permute.xlu1 %1622  ;;  %v1749_v50 = vpack.c.b16 %v1748_v47, %v1747_v40  ;;  %2983 = vmatmul.msk.bf16.gmra.mxu3 %vm489_vm1, %v3299_v19 }
 0x1fc   : > { %2964 = vmatmul.msk.bf16.gmra.mxu2 %vm489_vm1, %v2349_v55  ;;  %1632 = vrot.lane.b32.xlu2 %v1601_v54, %s4568_s16  ;;  %v1785_v54 = vunpack.c.l.b16 %v1292_v57  ;;  %v1922_v41 = vsel %vm1900_vm6, %v1889_v28, %v1623_v20 }
 0x1fd   : > { %1669 = vrot.lane.b32.xlu0 %v1638_v1, %s4575_s1  ;;  %v1955_v30 = vsel %vm1933_vm7, %v1922_v41, %v4110_v37  ;;  %s3084_s1 = scalar_lea.hbm %s4543_s13, 512 }
 0x1fe   : > { %v1769_v63 = vpop.permute.xlu0 %1768  ;;  %v1771_v7 = vpop.permute.xlu2 %1770  ;;  %v1786_v2 = vpack.c.b16 %v1785_v54, %v1784_v44 }
 0x1ff   : > { %v2052_v32 = vsel %vm2032_vm10, %v2019_v51, %v1769_v63 }
 0x201   : > { %1706 = vrot.lane.b32.xlu1 %v1675_v42, %s4569_s30 }
 0x202   : > { %v2178_v1 = vpop.f32.mrf.mxu1 }
 0x203   : > { %v1806_v46 = vpop.permute.xlu1 %1805  ;;  %v2253_v56 = vmul.f32 %v3998_v45, %v2178_v1 }
 0x204   : > { %v2085_v18 = vsel %vm2065_vm11, %v2052_v32, %v1806_v46  ;;  %1743 = vrot.lane.b32.xlu2 %v1712_v23, %s4571_s24 }
 0x205   : > { %1780 = vrot.lane.b32.xlu0 %v1749_v50, %s4574_s17  ;;  %2955 = vmatmul.msk.bf16.gmra.mxu1 %vm2118_vm12, %v2085_v18  ;;  %v2289_v34 = vadd.f32 %v4014_v5, %v2253_v56 }
 0x206   : > { %v1697_v42 = vpop.permute.xlu0 %1696  ;;  %v1699_v14 = vpop.permute.xlu2 %1698 }
 0x207   : > { %v2321_v24 = vmax.f32 %v2289_v34, 0.0  ;;  %v1988_v27 = vsel %vm1966_vm8, %v1955_v30, %v1697_v42 }
 0x209   : > { %1817 = vrot.lane.b32.xlu1 %v1786_v2, %s4570_s22  ;;  %s3002_s22 = sshll.u32 %s3229_s29, 8  ;;  %s2838_s29 = scalar_lea.sflag [#allocation4], %s431_s15 }
 0x20a   : > { %v2180_v10 = vpop.f32.mrf.mxu1  ;;  %s2849_s4 = scalar_lea.hbm %s4543_s13, %s3002_s22 }
 0x20b   : > { %v2254_v35 = vmul.f32 %v3998_v45, %v2180_v10  ;;  %v1476_v21 = vpop.permute.xlu1 %1475  ;;  %2984 = vmatmul.msk.bf16.gmra.mxu3 %vm489_vm1, %v3305_v22  ;;  %s2852_s17 = sshll.u32 %s2849_s4, 4  ;;  %s2853_s17 = int_to_ptr.hbm [resolvable:$true] %s2852_s17 }
 0x20c   : > { %v1854_v57 = vsel %vm489_vm1, %v3856_v6, %v1476_v21  ;;  %s3078_s24 = sshra.s32 %s2853_s17, 4  ;;  %s3079_s24 = int_to_ptr.hbm [resolvable:$true] %s3078_s24 }
 0x20d   : > { %v2290_v13 = vadd.f32 %v4014_v5, %v2254_v35  ;;  %v1891_v4 = vsel %vm1867_vm5, %v1854_v57, %v4123_v59  ;;  %s3080_s30 = scalar_lea.hbm %s3079_s24, 256  ;;  %p3085_p0 = scmp.lt.s32.totalorder %s3079_s24, %s4543_s13 }
 0x20e   : > { %v1625_v19 = vpop.permute.xlu0 %1624  ;;  %v1627_v55 = vpop.permute.xlu2 %1626  ;;  %p3081_p11 = scmp.ne.s32.totalorder %s3079_s24, %s3080_s30  ;;  %p3086_p1 = scmp.lt.s32.totalorder %s3084_s1, %s3080_s30 }
 0x20f   : > { %v2322_v38 = vmax.f32 %v2290_v13, 0.0  ;;  %v1924_v50 = vsel %vm1900_vm6, %v1891_v4, %v1625_v19 }
 0x210   : > { %p3082_p12 = pnand %p3081_p11, %p3246_p5  ;;  %p3087_p2 = por %p3086_p1, %p3085_p0 }
 0x211   : > { %v2350_v16 = vpack.c.bf16 %v2322_v38, %v2321_v24 }
 0x212   : > { %p3083_p13 = pneg %p3082_p12 }
 0x213   : > { %2965 = vmatmul.msk.bf16.gmra.mxu2 %vm489_vm1, %v2350_v16  ;;  %v1734_v25 = vpop.permute.xlu1 %1733 }
 0x214   : > { %v2021_v61 = vsel %vm1999_vm9, %v1988_v27, %v1734_v25  ;;  %p3088_p3 = pnand %p3087_p2, %p3083_p13 }
 0x215   : > { %v2183_v9 = vpop.f32.mrf.mxu1  ;;  %v2054_v49 = vsel %vm2032_vm10, %v2021_v61, %v1771_v7 }
 0x216   : > { %v1808_v52 = vpop.permute.xlu0 %1807  ;;  %v2255_v37 = vmul.f32 %v3998_v45, %v2183_v9  ;;  %v1810_v60 = vpop.permute.xlu2 %1809 }
 0x217   : > { %v2087_v20 = vsel %vm2065_vm11, %v2054_v49, %v1808_v52 }
 0x218   : > { %2956 = vmatmul.msk.bf16.gmra.mxu1 %vm2118_vm12, %v2087_v20  ;;  %v2291_v40 = vadd.f32 %v4014_v5, %v2255_v37 }
 0x21a   : > { %v2323_v22 = vmax.f32 %v2291_v40, 0.0 }
 0x21b   : > { %v1662_v58 = vpop.permute.xlu1 %1661  ;;  %2985 = vmatmul.msk.bf16.gmra.mxu3 %vm489_vm1, %v3345_v26 }
 0x21c   : > { %v1957_v54 = vsel %vm1933_vm7, %v1924_v50, %v1662_v58 }
 0x21d   : > { %v2185_v36 = vpop.f32.mrf.mxu1  ;;  %v1990_v51 = vsel %vm1966_vm8, %v1957_v54, %v1699_v14  ;;  %v4227_v54 = vld [vmem:[%s4538_s8] ss:$0 sm:$0xff] }
 0x21e   : > { %v2256_v47 = vmul.f32 %v3998_v45, %v2185_v36  ;;  %v1478_v31 = vpop.permute.xlu0 %1477  ;;  %v1480_v6 = vpop.permute.xlu2 %1479 }
 0x21f   : > { %v1857_v28 = vsel %vm489_vm1, %v3898_v53, %v1478_v31  ;;  %v1860_v40 = vsel %vm489_vm1, %v3957_v3, %v1480_v6 }
 0x220   : > { %v2292_v48 = vadd.f32 %v4014_v5, %v2256_v47 }
 0x222   : > { %v2324_v63 = vmax.f32 %v2292_v48, 0.0 }
 0x223   : > { %v1590_v7 = vpop.permute.xlu1 %1589 }
 0x224   : > { %v2351_v23 = vpack.c.bf16 %v2324_v63, %v2323_v22  ;;  %v1893_v19 = vsel %vm1867_vm5, %v1857_v28, %v1590_v7  ;;  %v4219_v7 = vld [vmem:[%s4541_s11] ss:$0 sm:$0xff] }
 0x225   : > { %v1926_v16 = vsel %vm1900_vm6, %v1893_v19, %v1627_v55 }
 0x226   : > { %2966 = vmatmul.msk.bf16.gmra.mxu2 %vm489_vm1, %v2351_v23  ;;  %v1736_v44 = vpop.permute.xlu0 %1735  ;;  %v1738_v56 = vpop.permute.xlu2 %1737 }
 0x227   : > { %v2023_v1 = vsel %vm1999_vm9, %v1990_v51, %v1736_v44  ;;  %v4233_v51 = vld [vmem:[%s4542_s12] ss:$0 sm:$0xff] }
 0x22b   : > { %v2188_v32 = vpop.f32.mrf.mxu1  ;;  %v1773_v46 = vpop.permute.xlu1 %1772  ;;  %2986 = vmatmul.msk.bf16.gmra.mxu3 %vm489_vm1, %v3413_v39 }
 0x22c   : > { %v2056_v59 = vsel %vm2032_vm10, %v2023_v1, %v1773_v46  ;;  %v2257_v42 = vmul.f32 %v3998_v45, %v2188_v32  ;;  %v4239_v46 = vld [vmem:[%s4539_s9] ss:$0 sm:$0xff] }
 0x22d   : > { %v2089_v18 = vsel %vm2065_vm11, %v2056_v59, %v1810_v60 }
 0x22e   : > { %2957 = vmatmul.msk.bf16.gmra.mxu1 %vm2118_vm12, %v2089_v18  ;;  %v1664_v2 = vpop.permute.xlu0 %1663  ;;  %v2293_v34 = vadd.f32 %v4014_v5, %v2257_v42  ;;  %v1666_v24 = vpop.permute.xlu2 %1665 }
 0x22f   : > { %v1959_v30 = vsel %vm1933_vm7, %v1926_v16, %v1664_v2  ;;  %v2589_v48 = vpop.f32.mrf.mxu3 }
 0x230   : > { %v2325_v0 = vmax.f32 %v2293_v34, 0.0  ;;  %v2673_v6 = vmul.f32 %v4219_v7, %v2589_v48 }
 0x233   : > { %v2190_v26 = vpop.f32.mrf.mxu1  ;;  %v1701_v10 = vpop.permute.xlu1 %1700 }
 0x234   : > { %v2258_v14 = vmul.f32 %v3998_v45, %v2190_v26  ;;  %v1992_v25 = vsel %vm1966_vm8, %v1959_v30, %v1701_v10  ;;  %v2709_v26 = vadd.f32 %v4233_v51, %v2673_v6 }
 0x235   : > { %v2025_v39 = vsel %vm1999_vm9, %v1992_v25, %v1738_v56 }
 0x236   : > { %v2294_v35 = vadd.f32 %v4014_v5, %v2258_v14  ;;  %v1592_v21 = vpop.permute.xlu0 %1591  ;;  %v1594_v52 = vpop.permute.xlu2 %1593 }
 0x237   : > { %v1895_v31 = vsel %vm1867_vm5, %v1860_v40, %v1592_v21  ;;  %v2591_v34 = vpop.f32.mrf.mxu3 }
 0x238   : > { %v2326_v13 = vmax.f32 %v2294_v35, 0.0 }
 0x23a   : > { %v2352_v41 = vpack.c.bf16 %v2326_v13, %v2325_v0  ;;  %v2674_v13 = vmul.f32 %v4219_v7, %v2591_v34 }
 0x23b   : > { %v1629_v38 = vpop.permute.xlu1 %1628  ;;  %2987 = vmatmul.msk.bf16.gmra.mxu3 %vm489_vm1, %v3463_v29 }
 0x23c   : > { %2967 = vmatmul.msk.bf16.gmra.mxu2 %vm489_vm1, %v2352_v41  ;;  %v1928_v22 = vsel %vm1900_vm6, %v1895_v31, %v1629_v38 }
 0x23d   : > { %v1961_v3 = vsel %vm1933_vm7, %v1928_v22, %v1666_v24 }
 0x23e   : > { %v1775_v27 = vpop.permute.xlu0 %1774  ;;  %v1777_v29 = vpop.permute.xlu2 %1776 }
 0x23f   : > { %v2058_v9 = vsel %vm2032_vm10, %v2025_v39, %v1775_v27  ;;  %v2710_v39 = vadd.f32 %v4233_v51, %v2674_v13 }
 0x242   : > { %v2193_v61 = vpop.f32.mrf.mxu1 }
 0x243   : > { %v1812_v53 = vpop.permute.xlu1 %1811  ;;  %v2259_v55 = vmul.f32 %v3998_v45, %v2193_v61 }
 0x244   : > { %v2091_v49 = vsel %vm2065_vm11, %v2058_v9, %v1812_v53  ;;  %v2594_v53 = vpop.f32.mrf.mxu3 }
 0x245   : > { %2958 = vmatmul.msk.bf16.gmra.mxu1 %vm2118_vm12, %v2091_v49  ;;  %v2295_v58 = vadd.f32 %v4014_v5, %v2259_v55 }
 0x246   : > { %v1703_v20 = vpop.permute.xlu0 %1702  ;;  %v1705_v14 = vpop.permute.xlu2 %1704 }
 0x247   : > { %v2327_v63 = vmax.f32 %v2295_v58, 0.0  ;;  %v1994_v50 = vsel %vm1966_vm8, %v1961_v3, %v1703_v20 }
 0x24a   : > { %v2195_v37 = vpop.f32.mrf.mxu1 }
 0x24b   : > { %v2260_v60 = vmul.f32 %v3998_v45, %v2195_v37  ;;  %v1482_v36 = vpop.permute.xlu1 %1481  ;;  %2988 = vmatmul.msk.bf16.gmra.mxu3 %vm489_vm1, %v3496_v33 }
 0x24c   : > { %v1863_v18 = vsel %vm489_vm1, %v4016_v43, %v1482_v36 }
 0x24d   : > { %v2296_v47 = vadd.f32 %v4014_v5, %v2260_v60  ;;  %v1897_v35 = vsel %vm1867_vm5, %v1863_v18, %v1594_v52 }
 0x24e   : > { %v1631_v57 = vpop.permute.xlu0 %1630  ;;  %v1816_v55 = vpop.permute.xlu2 %1815 }
 0x24f   : > { %v2328_v4 = vmax.f32 %v2296_v47, 0.0  ;;  %v1930_v28 = vsel %vm1900_vm6, %v1897_v35, %v1631_v57  ;;  %v2675_v57 = vmul.f32 %v4219_v7, %v2594_v53 }
 0x251   : > { %v2353_v23 = vpack.c.bf16 %v2328_v4, %v2327_v63  ;;  %v2711_v63 = vadd.f32 %v4233_v51, %v2675_v57  ;;  %v2596_v4 = vpop.f32.mrf.mxu3 }
 0x253   : > { %2968 = vmatmul.msk.bf16.gmra.mxu2 %vm489_vm1, %v2353_v23  ;;  %v1740_v44 = vpop.permute.xlu1 %1739 }
 0x254   : > { %v2027_v1 = vsel %vm1999_vm9, %v1994_v50, %v1740_v44 }
 0x255   : > { %v2198_v32 = vpop.f32.mrf.mxu1  ;;  %v2060_v59 = vsel %vm2032_vm10, %v2027_v1, %v1777_v29 }
 0x256   : > { %v2424_v2 = vpop.f32.mrf.mxu2  ;;  %v1814_v42 = vpop.permute.xlu0 %1813  ;;  %v2261_v21 = vmul.f32 %v3998_v45, %v2198_v32  ;;  %v2676_v32 = vmul.f32 %v4219_v7, %v2596_v4 }
 0x257   : > { %v2508_v56 = vmul.f32 %v4227_v54, %v2424_v2  ;;  %v2093_v10 = vsel %vm2065_vm11, %v2060_v59, %v1814_v42  ;;  %v1633_v44 = vpop.permute.xlu2 %1632 }
 0x258   : > { %2959 = vmatmul.msk.bf16.gmra.mxu1 %vm2118_vm12, %v2093_v10  ;;  %v2297_v38 = vadd.f32 %v4014_v5, %v2261_v21  ;;  %v2712_v10 = vadd.f32 %v4233_v51, %v2676_v32 }
 0x259   : > { %v2544_v43 = vadd.f32 %v4239_v46, %v2508_v56 }
 0x25a   : > { %v2329_v52 = vmax.f32 %v2297_v38, 0.0 }
 0x25b   : > { %v2741_v0 = vadd.f32 %v2709_v26, %v2544_v43  ;;  %v1668_v33 = vpop.permute.xlu1 %1667  ;;  %2989 = vmatmul.msk.bf16.gmra.mxu3 %vm489_vm1, %v3528_v15 }
 0x25c   : > { %v1963_v41 = vsel %vm1933_vm7, %v1930_v28, %v1668_v33 }
 0x25d   : > { %v2773_v19 = vmax.f32 %v2741_v0, 0.0  ;;  %v2200_v24 = vpop.f32.mrf.mxu1  ;;  %v1996_v9 = vsel %vm1966_vm8, %v1963_v41, %v1705_v14 }
 0x25e   : > { %v2262_v16 = vmul.f32 %v3998_v45, %v2200_v24  ;;  %v2426_v30 = vpop.f32.mrf.mxu2  ;;  %v1742_v27 = vpop.permute.xlu0 %1741 }
 0x25f   : > { %2805 = vst [vmem:[%s4261_s21] sm:$0xff] %v2773_v19  ;;  %v2509_v25 = vmul.f32 %v4227_v54, %v2426_v30  ;;  %v2029_v58 = vsel %vm1999_vm9, %v1996_v9, %v1742_v27  ;;  %v1744_v33 = vpop.permute.xlu2 %1743  ;;  %v2599_v19 = vpop.f32.mrf.mxu3 }
 0x260   : > { %v2298_v61 = vadd.f32 %v4014_v5, %v2262_v16  ;;  %v2677_v9 = vmul.f32 %v4219_v7, %v2599_v19 }
 0x261   : > { %v2545_v49 = vadd.f32 %v4239_v46, %v2509_v25 }
 0x262   : > { %v2330_v20 = vmax.f32 %v2298_v61, 0.0 }
 0x263   : > { %v2742_v37 = vadd.f32 %v2710_v39, %v2545_v49  ;;  %v1779_v60 = vpop.permute.xlu1 %1778  ;;  %v2713_v49 = vadd.f32 %v4233_v51, %v2677_v9 }
 0x264   : > { %v2062_v36 = vsel %vm2032_vm10, %v2029_v58, %v1779_v60  ;;  %v2354_v40 = vpack.c.bf16 %v2330_v20, %v2329_v52 }
 0x265   : > { %v2774_v47 = vmax.f32 %v2742_v37, 0.0  ;;  %v2095_v48 = vsel %vm2065_vm11, %v2062_v36, %v1816_v55 }
 0x266   : > { %2969 = vmatmul.msk.bf16.gmra.mxu2 %vm489_vm1, %v2354_v40  ;;  %v1484_v31 = vpop.permute.xlu0 %1483 }
 0x267   : > { %2806 = vst [vmem:[%s4261_s21 + $0x8] sm:$0xff] %v2774_v47  ;;  %v1866_v15 = vsel %vm489_vm1, %v4061_v62, %v1484_v31  ;;  %v2601_v52 = vpop.f32.mrf.mxu3 }
 0x268   : > { %2960 = vmatmul.msk.bf16.gmra.mxu1 %vm2118_vm12, %v2095_v48  ;;  %v2678_v58 = vmul.f32 %v4219_v7, %v2601_v52 }
 0x269   : > { %v2429_v22 = vpop.f32.mrf.mxu2 }
 0x26a   : > { %v2510_v29 = vmul.f32 %v4227_v54, %v2429_v22  ;;  %v2714_v31 = vadd.f32 %v4233_v51, %v2678_v58 }
 0x26b   : > { %v2203_v23 = vpop.f32.mrf.mxu1  ;;  %v1596_v3 = vpop.permute.xlu1 %1595  ;;  %2990 = vmatmul.msk.bf16.gmra.mxu3 %vm489_vm1, %v3555_v8 }
 0x26c   : > { %v2546_v50 = vadd.f32 %v4239_v46, %v2510_v29  ;;  %v1899_v1 = vsel %vm1867_vm5, %v1866_v15, %v1596_v3  ;;  %v2263_v2 = vmul.f32 %v3998_v45, %v2203_v23 }
 0x26d   : > { %v1932_v42 = vsel %vm1900_vm6, %v1899_v1, %v1633_v44 }
 0x26e   : > { %v2743_v6 = vadd.f32 %v2711_v63, %v2546_v50  ;;  %v2299_v62 = vadd.f32 %v4014_v5, %v2263_v2 }
 0x26f   : > { %v1670_v59 = vpop.permute.xlu0 %1669  ;;  %v2604_v23 = vpop.f32.mrf.mxu3 }
 0x270   : > { %v2775_v18 = vmax.f32 %v2743_v6, 0.0  ;;  %v1965_v35 = vsel %vm1933_vm7, %v1932_v42, %v1670_v59  ;;  %v2331_v41 = vmax.f32 %v2299_v62, 0.0  ;;  %v2679_v15 = vmul.f32 %v4219_v7, %v2604_v23 }
 0x271   : > { %v2431_v56 = vpop.f32.mrf.mxu2 }
 0x272   : > { %2807 = vst [vmem:[%s4261_s21 + $0x10] sm:$0xff] %v2775_v18  ;;  %v2511_v26 = vmul.f32 %v4227_v54, %v2431_v56  ;;  %v2715_v59 = vadd.f32 %v4233_v51, %v2679_v15 }
 0x273   : > { %v2205_v34 = vpop.f32.mrf.mxu1  ;;  %v1707_v14 = vpop.permute.xlu1 %1706 }
 0x274   : > { %v2547_v43 = vadd.f32 %v4239_v46, %v2511_v26  ;;  %v2264_v21 = vmul.f32 %v3998_v45, %v2205_v34  ;;  %v1998_v0 = vsel %vm1966_vm8, %v1965_v35, %v1707_v14 }
 0x275   : > { %v2031_v16 = vsel %vm1999_vm9, %v1998_v0, %v1744_v33 }
 0x276   : > { %v2744_v13 = vadd.f32 %v2712_v10, %v2547_v43  ;;  %v2300_v28 = vadd.f32 %v4014_v5, %v2264_v21 }
 0x277   : > { %v1781_v30 = vpop.permute.xlu0 %1780  ;;  %v2606_v18 = vpop.f32.mrf.mxu3 }
 0x278   : > { %v2776_v24 = vmax.f32 %v2744_v13, 0.0  ;;  %v2332_v38 = vmax.f32 %v2300_v28, 0.0  ;;  %v2064_v25 = vsel %vm2032_vm10, %v2031_v16, %v1781_v30  ;;  %v2680_v26 = vmul.f32 %v4219_v7, %v2606_v18 }
 0x27a   : > { %2808 = vst [vmem:[%s4261_s21 + $0x18] sm:$0xff] %v2776_v24  ;;  %v2355_v27 = vpack.c.bf16 %v2332_v38, %v2331_v41  ;;  %v2716_v43 = vadd.f32 %v4233_v51, %v2680_v26 }
 0x27b   : > { %v1818_v39 = vpop.permute.xlu1 %1817  ;;  %2991 = vmatmul.msk.bf16.gmra.mxu3 %vm489_vm1, %v3588_v12 }
 0x27c   : > { %v2097_v61 = vsel %vm2065_vm11, %v2064_v25, %v1818_v39  ;;  %2970 = vmatmul.msk.bf16.gmra.mxu2 %vm489_vm1, %v2355_v27 }
 0x27d   : > { %2961 = vmatmul.msk.bf16.gmra.mxu1 %vm2118_vm12, %v2097_v61 }
 0x27f   : > { %v2434_v8 = vpop.f32.mrf.mxu2  ;;  %v2609_v33 = vpop.f32.mrf.mxu3 }
 0x280   : > { %v2512_v53 = vmul.f32 %v4227_v54, %v2434_v8  ;;  %v2681_v38 = vmul.f32 %v4219_v7, %v2609_v33 }
 0x282   : > { %v2548_v20 = vadd.f32 %v4239_v46, %v2512_v53  ;;  %v2208_v55 = vpop.f32.mrf.mxu1  ;;  %v2717_v27 = vadd.f32 %v4233_v51, %v2681_v38 }
 0x283   : > { %v2265_v36 = vmul.f32 %v3998_v45, %v2208_v55 }
 0x284   : > { %v2745_v37 = vadd.f32 %v2713_v49, %v2548_v20 }
 0x285   : > { %v2301_v22 = vadd.f32 %v4014_v5, %v2265_v36 }
 0x286   : > { %v2777_v60 = vmax.f32 %v2745_v37, 0.0 }
 0x287   : > { %v2436_v40 = vpop.f32.mrf.mxu2  ;;  %v2333_v3 = vmax.f32 %v2301_v22, 0.0  ;;  %v2611_v39 = vpop.f32.mrf.mxu3 }
 0x288   : > { %2809 = vst [vmem:[%s4261_s21 + $0x20] sm:$0xff] %v2777_v60  ;;  %v2513_v47 = vmul.f32 %v4227_v54, %v2436_v40  ;;  %v2682_v8 = vmul.f32 %v4219_v7, %v2611_v39 }
 0x28a   : > { %v2549_v57 = vadd.f32 %v4239_v46, %v2513_v47  ;;  %v2210_v48 = vpop.f32.mrf.mxu1  ;;  %v2718_v20 = vadd.f32 %v4233_v51, %v2682_v8 }
 0x28b   : > { %v2266_v29 = vmul.f32 %v3998_v45, %v2210_v48  ;;  %2992 = vmatmul.msk.bf16.gmra.mxu3 %vm489_vm1, %v3622_v11 }
 0x28c   : > { %v2746_v63 = vadd.f32 %v2714_v31, %v2549_v57 }
 0x28d   : > { %v2302_v4 = vadd.f32 %v4014_v5, %v2266_v29 }
 0x28e   : > { %v2778_v12 = vmax.f32 %v2746_v63, 0.0 }
 0x28f   : > { %v2334_v50 = vmax.f32 %v2302_v4, 0.0  ;;  %v2614_v47 = vpop.f32.mrf.mxu3 }
 0x290   : > { %2810 = vst [vmem:[%s4261_s21 + $0x28] sm:$0xff] %v2778_v12  ;;  %v2683_v29 = vmul.f32 %v4219_v7, %v2614_v47 }
 0x291   : > { %v2356_v44 = vpack.c.bf16 %v2334_v50, %v2333_v3 }
 0x292   : > { %v2719_v12 = vadd.f32 %v4233_v51, %v2683_v29 }
 0x293   : > { %2971 = vmatmul.msk.bf16.gmra.mxu2 %vm489_vm1, %v2356_v44 }
 0x295   : > { %v2213_v6 = vpop.f32.mrf.mxu1 }
 0x296   : > { %v2439_v1 = vpop.f32.mrf.mxu2  ;;  %v2267_v42 = vmul.f32 %v3998_v45, %v2213_v6  ;;  %v4363_v6 = vld [vmem:[%s4535_s5] ss:$0 sm:$0xff] }
 0x297   : > { %v2514_v32 = vmul.f32 %v4227_v54, %v2439_v1 }
 0x298   : > { %v2303_v14 = vadd.f32 %v4014_v5, %v2267_v42 }
 0x299   : > { %v2550_v2 = vadd.f32 %v4239_v46, %v2514_v32 }
 0x29a   : > { %v2335_v13 = vmax.f32 %v2303_v14, 0.0 }
 0x29b   : > { %v2747_v56 = vadd.f32 %v2715_v59, %v2550_v2  ;;  %2993 = vmatmul.msk.bf16.gmra.mxu3 %vm489_vm1, %v3657_v17 }
 0x29d   : > { %v2779_v10 = vmax.f32 %v2747_v56, 0.0  ;;  %v2215_v34 = vpop.f32.mrf.mxu1 }
 0x29e   : > { %v2268_v62 = vmul.f32 %v3998_v45, %v2215_v34  ;;  %v2441_v11 = vpop.f32.mrf.mxu2  ;;  %v4375_v34 = vld [vmem:[%s4536_s6] ss:$0 sm:$0xff] }
 0x29f   : > { %2811 = vst [vmem:[%s4261_s21 + $0x30] sm:$0xff] %v2779_v10  ;;  %v2515_v35 = vmul.f32 %v4227_v54, %v2441_v11 }
 0x2a0   : > { %v2304_v21 = vadd.f32 %v4014_v5, %v2268_v62 }
 0x2a1   : > { %v2551_v0 = vadd.f32 %v4239_v46, %v2515_v35 }
 0x2a2   : > { %v2336_v28 = vmax.f32 %v2304_v21, 0.0 }
 0x2a3   : > { %v2748_v19 = vadd.f32 %v2716_v43, %v2551_v0 }
 0x2a4   : > { %v2357_v41 = vpack.c.bf16 %v2336_v28, %v2335_v13 }
 0x2a5   : > { %v2780_v24 = vmax.f32 %v2748_v19, 0.0 }
 0x2a6   : > { %2972 = vmatmul.msk.bf16.gmra.mxu2 %vm489_vm1, %v2357_v41 }
 0x2a7   : > { %2812 = vst [vmem:[%s4261_s21 + $0x38] sm:$0xff] %v2780_v24 }
 0x2a9   : > { %v2444_v16 = vpop.f32.mrf.mxu2 }
 0x2aa   : > { %v2516_v30 = vmul.f32 %v4227_v54, %v2444_v16 }
 0x2ab   : > { %v2218_v25 = vpop.f32.mrf.mxu1 }
 0x2ac   : > { %v2552_v61 = vadd.f32 %v4239_v46, %v2516_v30  ;;  %v2269_v49 = vmul.f32 %v3998_v45, %v2218_v25 }
 0x2ae   : > { %v2749_v9 = vadd.f32 %v2717_v27, %v2552_v61  ;;  %v2305_v37 = vadd.f32 %v4014_v5, %v2269_v49 }
 0x2b0   : > { %v2781_v53 = vmax.f32 %v2749_v9, 0.0  ;;  %v2337_v31 = vmax.f32 %v2305_v37, 0.0 }
 0x2b1   : > { %v2446_v52 = vpop.f32.mrf.mxu2 }
 0x2b2   : > { %2813 = vst [vmem:[%s4261_s21 + $0x40] sm:$0xff] %v2781_v53  ;;  %v2517_v17 = vmul.f32 %v4227_v54, %v2446_v52 }
 0x2b3   : > { %v2220_v55 = vpop.f32.mrf.mxu1 }
 0x2b4   : > { %v2553_v58 = vadd.f32 %v4239_v46, %v2517_v17  ;;  %v2270_v60 = vmul.f32 %v3998_v45, %v2220_v55  ;;  %v2616_v45 = vpop.f32.mrf.mxu3 }
 0x2b5   : > { %v2684_v44 = vmul.f32 %v4219_v7, %v2616_v45 }
 0x2b6   : > { %v2750_v36 = vadd.f32 %v2718_v20, %v2553_v58  ;;  %v2306_v40 = vadd.f32 %v4014_v5, %v2270_v60 }
 0x2b7   : > { %v2720_v18 = vadd.f32 %v4233_v51, %v2684_v44 }
 0x2b8   : > { %v2782_v57 = vmax.f32 %v2750_v36, 0.0  ;;  %v2338_v48 = vmax.f32 %v2306_v40, 0.0 }
 0x2ba   : > { %2814 = vst [vmem:[%s4261_s21 + $0x48] sm:$0xff] %v2782_v57  ;;  %v2358_v22 = vpack.c.bf16 %v2338_v48, %v2337_v31 }
 0x2bc   : > { %2973 = vmatmul.msk.bf16.gmra.mxu2 %vm489_vm1, %v2358_v22  ;;  %v2619_v11 = vpop.f32.mrf.mxu3 }
 0x2bf   : > { %v2449_v63 = vpop.f32.mrf.mxu2 }
 0x2c0   : > { %v2518_v4 = vmul.f32 %v4227_v54, %v2449_v63 }
 0x2c2   : > { %v2554_v23 = vadd.f32 %v4239_v46, %v2518_v4  ;;  %v2223_v3 = vpop.f32.mrf.mxu1 }
 0x2c3   : > { %v2271_v1 = vmul.f32 %v4363_v6, %v2223_v3 }
 0x2c4   : > { %v2751_v50 = vadd.f32 %v2719_v12, %v2554_v23  ;;  %v2621_v19 = vpop.f32.mrf.mxu3 }
 0x2c5   : > { %v2307_v56 = vadd.f32 %v4014_v5, %v2271_v1  ;;  %v2685_v5 = vmul.f32 %v4219_v7, %v2619_v11  ;;  %v2686_v16 = vmul.f32 %v4219_v7, %v2621_v19 }
 0x2c6   : > { %v2783_v15 = vmax.f32 %v2751_v50, 0.0 }
 0x2c7   : > { %v2451_v32 = vpop.f32.mrf.mxu2  ;;  %v2339_v35 = vmax.f32 %v2307_v56, 0.0  ;;  %v2721_v28 = vadd.f32 %v4233_v51, %v2685_v5  ;;  %v2722_v8 = vadd.f32 %v4233_v51, %v2686_v16 }
 0x2c8   : > { %2815 = vst [vmem:[%s4261_s21 + $0x50] sm:$0xff] %v2783_v15  ;;  %v2519_v59 = vmul.f32 %v4227_v54, %v2451_v32 }
 0x2ca   : > { %v2555_v2 = vadd.f32 %v4239_v46, %v2519_v59  ;;  %v2225_v42 = vpop.f32.mrf.mxu1 }
 0x2cb   : > { %v2272_v26 = vmul.f32 %v4363_v6, %v2225_v42 }
 0x2cc   : > { %v2752_v10 = vadd.f32 %v2720_v18, %v2555_v2  ;;  %v2624_v52 = vpop.f32.mrf.mxu3 }
 0x2cd   : > { %v2308_v14 = vadd.f32 %v4375_v34, %v2272_v26  ;;  %v2687_v36 = vmul.f32 %v4219_v7, %v2624_v52 }
 0x2ce   : > { %v2784_v62 = vmax.f32 %v2752_v10, 0.0 }
 0x2cf   : > { %v2340_v43 = vmax.f32 %v2308_v14, 0.0  ;;  %v2723_v57 = vadd.f32 %v4233_v51, %v2687_v36 }
 0x2d0   : > { %2816 = vst [vmem:[%s4261_s21 + $0x58] sm:$0xff] %v2784_v62 }
 0x2d1   : > { %v2359_v21 = vpack.c.bf16 %v2340_v43, %v2339_v35 }
 0x2d3   : > { %2974 = vmatmul.msk.bf16.gmra.mxu2 %vm489_vm1, %v2359_v21 }
 0x2d4   : > { %v2626_v48 = vpop.f32.mrf.mxu3 }
 0x2d5   : > { %v2228_v0 = vpop.f32.mrf.mxu1  ;;  %v2688_v45 = vmul.f32 %v4219_v7, %v2626_v48 }
 0x2d6   : > { %v2454_v33 = vpop.f32.mrf.mxu2  ;;  %v2273_v24 = vmul.f32 %v4363_v6, %v2228_v0 }
 0x2d7   : > { %v2520_v13 = vmul.f32 %v4227_v54, %v2454_v33  ;;  %v2724_v32 = vadd.f32 %v4233_v51, %v2688_v45 }
 0x2d8   : > { %v2309_v25 = vadd.f32 %v4375_v34, %v2273_v24 }
 0x2d9   : > { %v2556_v41 = vadd.f32 %v4239_v46, %v2520_v13 }
 0x2da   : > { %v2341_v17 = vmax.f32 %v2309_v25, 0.0 }
 0x2db   : > { %v2753_v38 = vadd.f32 %v2721_v28, %v2556_v41 }
 0x2dc   : > { %v2629_v42 = vpop.f32.mrf.mxu3 }
 0x2dd   : > { %v2785_v30 = vmax.f32 %v2753_v38, 0.0  ;;  %v2230_v27 = vpop.f32.mrf.mxu1  ;;  %v2689_v10 = vmul.f32 %v4219_v7, %v2629_v42 }
 0x2de   : > { %v2274_v39 = vmul.f32 %v4363_v6, %v2230_v27  ;;  %v2456_v61 = vpop.f32.mrf.mxu2 }
 0x2df   : > { %2817 = vst [vmem:[%s4261_s21 + $0x60] sm:$0xff] %v2785_v30  ;;  %v2521_v9 = vmul.f32 %v4227_v54, %v2456_v61  ;;  %v2725_v35 = vadd.f32 %v4233_v51, %v2689_v10 }
 0x2e0   : > { %v2310_v53 = vadd.f32 %v4375_v34, %v2274_v39 }
 0x2e1   : > { %v2557_v49 = vadd.f32 %v4239_v46, %v2521_v9 }
 0x2e2   : > { %v2342_v20 = vmax.f32 %v2310_v53, 0.0 }
 0x2e3   : > { %v2754_v55 = vadd.f32 %v2722_v8, %v2557_v49 }
 0x2e4   : > { %v2360_v37 = vpack.c.bf16 %v2342_v20, %v2341_v17  ;;  %v2631_v43 = vpop.f32.mrf.mxu3 }
 0x2e5   : > { %v2786_v58 = vmax.f32 %v2754_v55, 0.0  ;;  %v2233_v60 = vpop.f32.mrf.mxu1  ;;  %v2690_v28 = vmul.f32 %v4219_v7, %v2631_v43 }
 0x2e6   : > { %2975 = vmatmul.msk.bf16.gmra.mxu2 %vm489_vm1, %v2360_v37  ;;  %v2275_v47 = vmul.f32 %v4363_v6, %v2233_v60 }
 0x2e7   : > { %2818 = vst [vmem:[%s4261_s21 + $0x68] sm:$0xff] %v2786_v58  ;;  %v2726_v27 = vadd.f32 %v4233_v51, %v2690_v28 }
 0x2e8   : > { %v2311_v63 = vadd.f32 %v4375_v34, %v2275_v47 }
 0x2e9   : > { %v2459_v40 = vpop.f32.mrf.mxu2 }
 0x2ea   : > { %v2522_v31 = vmul.f32 %v4227_v54, %v2459_v40  ;;  %v2343_v44 = vmax.f32 %v2311_v63, 0.0 }
 0x2ec   : > { %v2558_v22 = vadd.f32 %v4239_v46, %v2522_v31  ;;  %v2634_v9 = vpop.f32.mrf.mxu3 }
 0x2ed   : > { %v2235_v29 = vpop.f32.mrf.mxu1 }
 0x2ee   : > { %v2755_v4 = vadd.f32 %v2723_v57, %v2558_v22  ;;  %v2276_v12 = vmul.f32 %v4363_v6, %v2235_v29 }
 0x2f0   : > { %v2787_v23 = vmax.f32 %v2755_v4, 0.0  ;;  %v2312_v3 = vadd.f32 %v4375_v34, %v2276_v12 }
 0x2f1   : > { %v2461_v50 = vpop.f32.mrf.mxu2 }
 0x2f2   : > { %2819 = vst [vmem:[%s4261_s21 + $0x70] sm:$0xff] %v2787_v23  ;;  %v2344_v15 = vmax.f32 %v2312_v3, 0.0  ;;  %v2523_v1 = vmul.f32 %v4227_v54, %v2461_v50 }
 0x2f4   : > { %v2361_v59 = vpack.c.bf16 %v2344_v15, %v2343_v44  ;;  %v2559_v18 = vadd.f32 %v4239_v46, %v2523_v1  ;;  %v2636_v52 = vpop.f32.mrf.mxu3 }
 0x2f5   : > { %v2692_v55 = vmul.f32 %v4219_v7, %v2636_v52 }
 0x2f6   : > { %v2756_v2 = vadd.f32 %v2724_v32, %v2559_v18  ;;  %2976 = vmatmul.msk.bf16.gmra.mxu2 %vm489_vm1, %v2361_v59 }
 0x2f7   : > { %v2728_v36 = vadd.f32 %v4233_v51, %v2692_v55 }
 0x2f8   : > { %v2788_v56 = vmax.f32 %v2756_v2, 0.0 }
 0x2fa   : > { %2820 = vst [vmem:[%s4261_s21 + $0x78] sm:$0xff] %v2788_v56  ;;  %v2238_v26 = vpop.f32.mrf.mxu1 }
 0x2fb   : > { %v2277_v14 = vmul.f32 %v4363_v6, %v2238_v26 }
 0x2fc   : > { %v2639_v47 = vpop.f32.mrf.mxu3 }
 0x2fd   : > { %v2313_v0 = vadd.f32 %v4375_v34, %v2277_v14  ;;  %v2693_v48 = vmul.f32 %v4219_v7, %v2639_v47 }
 0x2ff   : > { %v2464_v62 = vpop.f32.mrf.mxu2  ;;  %v2345_v24 = vmax.f32 %v2313_v0, 0.0  ;;  %v2729_v63 = vadd.f32 %v4233_v51, %v2693_v48 }
 0x300   : > { %v2524_v11 = vmul.f32 %v4227_v54, %v2464_v62 }
 0x302   : > { %v2560_v21 = vadd.f32 %v4239_v46, %v2524_v11  ;;  %v2240_v5 = vpop.f32.mrf.mxu1 }
 0x303   : > { %v2278_v33 = vmul.f32 %v4363_v6, %v2240_v5 }
 0x304   : > { %v2757_v13 = vadd.f32 %v2725_v35, %v2560_v21  ;;  %v2641_v4 = vpop.f32.mrf.mxu3 }
 0x305   : > { %v2314_v19 = vadd.f32 %v4375_v34, %v2278_v33  ;;  %v2691_v34 = vmul.f32 %v4219_v7, %v2634_v9  ;;  %v2694_v23 = vmul.f32 %v4219_v7, %v2641_v4 }
 0x306   : > { %v2789_v41 = vmax.f32 %v2757_v13, 0.0 }
 0x307   : > { %v2346_v38 = vmax.f32 %v2314_v19, 0.0  ;;  %v2466_v16 = vpop.f32.mrf.mxu2  ;;  %v2727_v49 = vadd.f32 %v4233_v51, %v2691_v34  ;;  %v2730_v15 = vadd.f32 %v4233_v51, %v2694_v23 }
 0x308   : > { %2821 = vst [vmem:[%s4261_s21 + $0x80] sm:$0xff] %v2789_v41  ;;  %v2525_v30 = vmul.f32 %v4227_v54, %v2466_v16 }
 0x309   : > { %v2362_v25 = vpack.c.bf16 %v2346_v38, %v2345_v24 }
 0x30a   : > { %v2561_v39 = vadd.f32 %v4239_v46, %v2525_v30 }
 0x30b   : > { %2977 = vmatmul.msk.bf16.gmra.mxu2 %vm489_vm1, %v2362_v25 }
 0x30c   : > { %v2758_v6 = vadd.f32 %v2726_v27, %v2561_v39  ;;  %v2644_v59 = vpop.f32.mrf.mxu3 }
 0x30d   : > { %v2695_v2 = vmul.f32 %v4219_v7, %v2644_v59 }
 0x30e   : > { %v2790_v61 = vmax.f32 %v2758_v6, 0.0 }
 0x30f   : > { %v2731_v26 = vadd.f32 %v4233_v51, %v2695_v2 }
 0x310   : > { %2822 = vst [vmem:[%s4261_s21 + $0x88] sm:$0xff] %v2790_v61 }
 0x314   : > { %v2646_v10 = vpop.f32.mrf.mxu3 }
 0x315   : > { %v2696_v11 = vmul.f32 %v4219_v7, %v2646_v10 }
 0x316   : > { %v2469_v8 = vpop.f32.mrf.mxu2 }
 0x317   : > { %v2526_v53 = vmul.f32 %v4227_v54, %v2469_v8  ;;  %v2732_v5 = vadd.f32 %v4233_v51, %v2696_v11 }
 0x319   : > { %v2562_v17 = vadd.f32 %v4239_v46, %v2526_v53 }
 0x31b   : > { %v2759_v20 = vadd.f32 %v2727_v49, %v2562_v17 }
 0x31c   : > { %v2649_v33 = vpop.f32.mrf.mxu3 }
 0x31d   : > { %v2791_v37 = vmax.f32 %v2759_v20, 0.0  ;;  %v2697_v19 = vmul.f32 %v4219_v7, %v2649_v33 }
 0x31e   : > { %v2471_v58 = vpop.f32.mrf.mxu2 }
 0x31f   : > { %2823 = vst [vmem:[%s4261_s21 + $0x90] sm:$0xff] %v2791_v37  ;;  %v2527_v60 = vmul.f32 %v4227_v54, %v2471_v58  ;;  %v2733_v16 = vadd.f32 %v4233_v51, %v2697_v19 }
 0x321   : > { %v2563_v40 = vadd.f32 %v4239_v46, %v2527_v60 }
 0x323   : > { %v2760_v31 = vadd.f32 %v2728_v36, %v2563_v40 }
 0x324   : > { %v2651_v41 = vpop.f32.mrf.mxu3 }
 0x325   : > { %v2792_v57 = vmax.f32 %v2760_v31, 0.0  ;;  %v2698_v25 = vmul.f32 %v4219_v7, %v2651_v41 }
 0x327   : > { %2824 = vst [vmem:[%s4261_s21 + $0x98] sm:$0xff] %v2792_v57  ;;  %v2734_v9 = vadd.f32 %v4233_v51, %v2698_v25 }
 0x329   : > { %v2474_v22 = vpop.f32.mrf.mxu2 }
 0x32a   : > { %v2528_v29 = vmul.f32 %v4227_v54, %v2474_v22 }
 0x32c   : > { %v2564_v12 = vadd.f32 %v4239_v46, %v2528_v29  ;;  %v2654_v34 = vpop.f32.mrf.mxu3 }
 0x32d   : > { %v2699_v52 = vmul.f32 %v4219_v7, %v2654_v34 }
 0x32e   : > { %v2761_v45 = vadd.f32 %v2729_v63, %v2564_v12 }
 0x32f   : > { %v2735_v55 = vadd.f32 %v4233_v51, %v2699_v52 }
 0x330   : > { %v2793_v3 = vmax.f32 %v2761_v45, 0.0 }
 0x331   : > { %v2476_v50 = vpop.f32.mrf.mxu2 }
 0x332   : > { %2825 = vst [vmem:[%s4261_s21 + $0xa0] sm:$0xff] %v2793_v3  ;;  %v2529_v44 = vmul.f32 %v4227_v54, %v2476_v50 }
 0x334   : > { %v2565_v1 = vadd.f32 %v4239_v46, %v2529_v44  ;;  %v2656_v20 = vpop.f32.mrf.mxu3 }
 0x335   : > { %v2700_v40 = vmul.f32 %v4219_v7, %v2656_v20 }
 0x336   : > { %v2762_v32 = vadd.f32 %v2730_v15, %v2565_v1 }
 0x337   : > { %v2736_v48 = vadd.f32 %v4233_v51, %v2700_v40 }
 0x338   : > { %v2794_v18 = vmax.f32 %v2762_v32, 0.0 }
 0x33a   : > { %2826 = vst [vmem:[%s4261_s21 + $0xa8] sm:$0xff] %v2794_v18 }
 0x33c   : > { %v2659_v57 = vpop.f32.mrf.mxu3 }
 0x33d   : > { %v2701_v63 = vmul.f32 %v4219_v7, %v2659_v57 }
 0x33f   : > { %v2479_v42 = vpop.f32.mrf.mxu2  ;;  %v2737_v45 = vadd.f32 %v4233_v51, %v2701_v63 }
 0x340   : > { %v2530_v56 = vmul.f32 %v4227_v54, %v2479_v42 }
 0x342   : > { %v2566_v14 = vadd.f32 %v4239_v46, %v2530_v56 }
 0x344   : > { %v2763_v62 = vadd.f32 %v2731_v26, %v2566_v14  ;;  %v2661_v50 = vpop.f32.mrf.mxu3 }
 0x345   : > { %v2702_v1 = vmul.f32 %v4219_v7, %v2661_v50 }
 0x346   : > { %v2795_v35 = vmax.f32 %v2763_v62, 0.0 }
 0x347   : > { %v2481_v43 = vpop.f32.mrf.mxu2  ;;  %v2738_v18 = vadd.f32 %v4233_v51, %v2702_v1 }
 0x348   : > { %2827 = vst [vmem:[%s4261_s21 + $0xb0] sm:$0xff] %v2795_v35  ;;  %v2531_v21 = vmul.f32 %v4227_v54, %v2481_v43 }
 0x34a   : > { %v2567_v0 = vadd.f32 %v4239_v46, %v2531_v21 }
 0x34c   : > { %v2764_v13 = vadd.f32 %v2732_v5, %v2567_v0  ;;  %v2664_v26 = vpop.f32.mrf.mxu3 }
 0x34d   : > { %v2703_v10 = vmul.f32 %v4219_v7, %v2664_v26 }
 0x34e   : > { %v2796_v28 = vmax.f32 %v2764_v13, 0.0 }
 0x34f   : > { %v2739_v62 = vadd.f32 %v4233_v51, %v2703_v10 }
 0x350   : > { %2828 = vst [vmem:[%s4261_s21 + $0xb8] sm:$0xff] %v2796_v28 }
 0x354   : > { %v2666_v43 = vpop.f32.mrf.mxu3 }
 0x355   : > { %v2704_v0 = vmul.f32 %v4219_v7, %v2666_v43 }
 0x356   : > { %v2484_v24 = vpop.f32.mrf.mxu2 }
 0x357   : > { %v2532_v38 = vmul.f32 %v4227_v54, %v2484_v24  ;;  %v2740_v28 = vadd.f32 %v4233_v51, %v2704_v0 }
 0x359   : > { %v2568_v30 = vadd.f32 %v4239_v46, %v2532_v38 }
 0x35b   : > { %v2765_v27 = vadd.f32 %v2733_v16, %v2568_v30 }
 0x35d   : > { %v2797_v39 = vmax.f32 %v2765_v27, 0.0 }
 0x35e   : > { %v2486_v6 = vpop.f32.mrf.mxu2 }
 0x35f   : > { %2829 = vst [vmem:[%s4261_s21 + $0xc0] sm:$0xff] %v2797_v39  ;;  %v2533_v61 = vmul.f32 %v4227_v54, %v2486_v6 }
 0x361   : > { %v2569_v8 = vadd.f32 %v4239_v46, %v2533_v61 }
 0x363   : > { %v2766_v53 = vadd.f32 %v2734_v9, %v2569_v8 }
 0x365   : > { %v2798_v49 = vmax.f32 %v2766_v53, 0.0 }
 0x367   : > { %2830 = vst [vmem:[%s4261_s21 + $0xc8] sm:$0xff] %v2798_v49 }
 0x369   : > { %v2489_v17 = vpop.f32.mrf.mxu2 }
 0x36a   : > { %v2534_v37 = vmul.f32 %v4227_v54, %v2489_v17 }
 0x36c   : > { %v2570_v58 = vadd.f32 %v4239_v46, %v2534_v37 }
 0x36e   : > { %v2767_v60 = vadd.f32 %v2735_v55, %v2570_v58 }
 0x370   : > { %v2799_v36 = vmax.f32 %v2767_v60, 0.0 }
 0x371   : > { %v2491_v47 = vpop.f32.mrf.mxu2 }
 0x372   : > { %2831 = vst [vmem:[%s4261_s21 + $0xd0] sm:$0xff] %v2799_v36  ;;  %v2535_v31 = vmul.f32 %v4227_v54, %v2491_v47 }
 0x374   : > { %v2571_v22 = vadd.f32 %v4239_v46, %v2535_v31 }
 0x376   : > { %v2768_v29 = vadd.f32 %v2736_v48, %v2571_v22 }
 0x378   : > { %v2800_v4 = vmax.f32 %v2768_v29, 0.0 }
 0x379   : > { %v2494_v12 = vpop.f32.mrf.mxu2 }
 0x37a   : > { %2832 = vst [vmem:[%s4261_s21 + $0xd8] sm:$0xff] %v2800_v4  ;;  %v2536_v23 = vmul.f32 %v4227_v54, %v2494_v12 }
 0x37c   : > { %v2572_v3 = vadd.f32 %v4239_v46, %v2536_v23 }
 0x37e   : > { %v2769_v44 = vadd.f32 %v2737_v45, %v2572_v3 }
 0x380   : > { %v2801_v15 = vmax.f32 %v2769_v44, 0.0 }
 0x381   : > { %v2496_v32 = vpop.f32.mrf.mxu2 }
 0x382   : > { %2833 = vst [vmem:[%s4261_s21 + $0xe0] sm:$0xff] %v2801_v15  ;;  %v2537_v59 = vmul.f32 %v4227_v54, %v2496_v32 }
 0x384   : > { %v2573_v2 = vadd.f32 %v4239_v46, %v2537_v59 }
 0x386   : > { %v2770_v42 = vadd.f32 %v2738_v18, %v2573_v2 }
 0x388   : > { %v2802_v56 = vmax.f32 %v2770_v42, 0.0 }
 0x38a   : > { %2834 = vst [vmem:[%s4261_s21 + $0xe8] sm:$0xff] %v2802_v56 }
 0x38e   : > { %v2499_v14 = vpop.f32.mrf.mxu2 }
 0x38f   : > { %v2538_v11 = vmul.f32 %v4227_v54, %v2499_v14 }
 0x391   : > { %v2574_v35 = vadd.f32 %v4239_v46, %v2538_v11 }
 0x393   : > { %v2771_v21 = vadd.f32 %v2739_v62, %v2574_v35 }
 0x395   : > { %v2803_v5 = vmax.f32 %v2771_v21, 0.0 }
 0x396   : > { %v2501_v33 = vpop.f32.mrf.mxu2 }
 0x397   : > { %2835 = vst [vmem:[%s4261_s21 + $0xf0] sm:$0xff] %v2803_v5  ;;  %v2539_v13 = vmul.f32 %v4227_v54, %v2501_v33 }
 0x399   : > { %v2575_v19 = vadd.f32 %v4239_v46, %v2539_v13 }
 0x39b   : > { %v2772_v41 = vadd.f32 %v2740_v28, %v2575_v19 }
 0x39d   : > { %v2804_v24 = vmax.f32 %v2772_v41, 0.0 }
 0x39f   : > { %2836 = vst [vmem:[%s4261_s21 + $0xf8] sm:$0xff] %v2804_v24 }
 0x3a0   : > { %3091 = shalt.err (!%p3088_p3)
}
 0x3a1   : > { %s3137_s15 = smov 128  }
 0x3a2   : > { %3003 = dma.vmem_to_hbm [thread:$0]  (%p3246_p5), %s2851_s20, 4096, %s2853_s17, %s2838_s29, %s3137_s15, %s3137_s15, %s4573_s0  }
 0x3a3 PF: > { %p3009_p4 = scmp.ge.s32.totalorder %s3126_s28, 2  ;;  %s2867_s21 = sand.u32 1, %s3114_s25  }
 0x3a4   : > { %s2868_s16 = scalar_lea.sflag [#allocation4], %s2867_s21 }
 0x3a5   : > { %p3006_p7 = pnand %p3009_p4, %p3250_p6 }
 0x3a7   : > { %p3007_p8 = pneg %p3006_p7 }
 0x3a9   : > { %3109 = dma.done.wait (%p3007_p8), %s2868_s16, 4096  }
 0x3aa   : > { %3111 = vsyncadd (%p3007_p8), %s2868_s16, 4294963200  ;;  %s4577_s24 = sld [smem:[#allocation6_spill]]  ;;  %p23_p9 = scmp.ge.s32.totalorder %s3233_s14, 4  }
 0x3ab   : > { %s4578_s25 = smov %s3118_s26  ;;  %s4579_s26 = smov %s3122_s27 }
 0x3ac   : > { %s4581_s28 = smov %s3233_s14  ;;  %25 = sbr.rel (!%p23_p9) target bundleno = 7 (0x7), region = 108 }
 0x3b0   : > { %s4580_s27 = smov %s4577_s24 }
 0x3b1   :  { %2874 = vsyncpa [#allocation4], 1 }
 0x3b2   :  { %2876 = vsyncpa [#allocation4 + $0x1], 1 }

</bundles_post_ra>
